<compile_context>
chip_gen: v7x
topology: tpu7x:2x2x1
jax: 0.10.0
libtpu: 0.0.40
codegen_flags: <defaults>
</compile_context>

<pallas_src>
import functools

import jax
import jax.numpy as jnp
from jax.experimental import pallas as pl
from jax.experimental.pallas import tpu as pltpu

HEADS = 4
DIM_HEAD = 64                    # x_transformers DEFAULT_DIM_HEAD
INNER = HEADS * DIM_HEAD         # 256
FF_MULT = 4
LN_EPS = 1e-5


def _round_up(x, m):
    return ((x + m - 1) // m) * m


DHP = _round_up(DIM_HEAD, 128)   # per-head width padded to a full 128-lane tile
INNER_PAD = HEADS * DHP          # 512 (zero-padded columns; exact result)


# ----------------------------- in-kernel helpers -----------------------------

def _layernorm(x, g, b):
    mu = jnp.mean(x, axis=-1, keepdims=True)
    var = jnp.mean((x - mu) ** 2, axis=-1, keepdims=True)
    return (x - mu) * jax.lax.rsqrt(var + LN_EPS) * g + b


def _gelu(x):
    # TODO(synk): PyTorch nn.GELU default is the exact erf form; tanh approx used here.
    return jax.nn.gelu(x, approximate=True)


# ----------------------------- Pallas kernel ---------------------------------

def temporal_fused_kernel(x_ref, wqkv_ref, wo_ref, w1_ref, w2_ref, vecs_ref,
                          w_head_ref, w_cls_ref, head_vecs_ref,
                          emb_ref, seqlog_ref, cls_ref):
    """Full forward (4 encoder blocks + head) for TB sequences per grid step."""
    TB, L, D = x_ref.shape
    depth = wqkv_ref.shape[0]
    NTP = seqlog_ref.shape[2]      # padded num_tokens (lane-dense)
    OUTP = cls_ref.shape[2]        # padded out_features (lane-dense)
    EMBP = emb_ref.shape[2]        # padded emb width (lane-dense)
    M = TB * L
    BH = HEADS * TB

    x = x_ref[...].reshape(M, D)                              # (M, D) f32

    def to_heads(region):
        # (M, HEADS*DHP) -> (HEADS*TB, L, DHP); 128-lane-aligned slices only.
        stacked = jnp.concatenate(
            [region[:, hh * DHP:(hh + 1) * DHP] for hh in range(HEADS)], axis=0)
        return stacked.reshape(BH, L, DHP)

    def from_heads(o):
        # (HEADS*TB, L, DHP) -> (M, HEADS*DHP); aligned sublane slices + lane concat.
        o2 = o.reshape(HEADS * M, DHP)
        return jnp.concatenate(
            [o2[hh * M:(hh + 1) * M, :] for hh in range(HEADS)], axis=1)

    for layer in range(depth):                                # static unroll (depth=4)
        # ---- pre-norm multi-head self-attention ----
        h = _layernorm(x, vecs_ref[layer, 0:1, :D], vecs_ref[layer, 1:2, :D])
        qkv = jnp.dot(h.astype(jnp.bfloat16), wqkv_ref[layer],
                      preferred_element_type=jnp.float32)     # (M, 3*INNER_PAD)
        qkv = qkv.astype(jnp.bfloat16)

        q = to_heads(qkv[:, :INNER_PAD])                      # scale folded into wq
        k = to_heads(qkv[:, INNER_PAD:2 * INNER_PAD])
        v = to_heads(qkv[:, 2 * INNER_PAD:])

        # Batched attention over (head, sequence): no mask, no redundant work.
        s = jnp.einsum('bqd,bkd->bqk', q, k,
                       preferred_element_type=jnp.float32)    # (BH, L, L)
        s = s - jnp.max(s, axis=-1, keepdims=True)
        p = jnp.exp(s)
        p = p * pl.reciprocal(jnp.sum(p, axis=-1, keepdims=True), approx=True)
        o = jnp.einsum('bqk,bkd->bqd', p.astype(jnp.bfloat16), v,
                       preferred_element_type=jnp.float32)    # (BH, L, DHP)
        o = o.astype(jnp.bfloat16)

        attn = jnp.dot(from_heads(o), wo_ref[layer],
                       preferred_element_type=jnp.float32) + vecs_ref[layer, 4:5, :D]
        x = x + attn

        # ---- pre-norm feed-forward ----
        h2 = _layernorm(x, vecs_ref[layer, 2:3, :D], vecs_ref[layer, 3:4, :D])
        f = jnp.dot(h2.astype(jnp.bfloat16), w1_ref[layer],
                    preferred_element_type=jnp.float32) + vecs_ref[layer, 6:7, :]
        f = _gelu(f)
        f = jnp.dot(f.astype(jnp.bfloat16), w2_ref[layer],
                    preferred_element_type=jnp.float32) + vecs_ref[layer, 5:6, :D]
        x = x + f

    # ---- head: final LN, to_logits (no bias), classifier on pooled embedding ----
    e = _layernorm(x, head_vecs_ref[0:1, :D], head_vecs_ref[1:2, :D])   # (M, D)

    # Lane-dense emb store: pad D -> EMBP lanes (sliced back in the wrapper).
    if EMBP > D:
        e_store = jnp.concatenate([e, jnp.zeros((M, EMBP - D), jnp.float32)], axis=1)
    else:
        e_store = e
    emb_ref[...] = e_store.reshape(TB, L, EMBP)

    he = jnp.dot(e.astype(jnp.bfloat16), w_head_ref[...],
                 preferred_element_type=jnp.float32)                    # (M, NTP)
    seqlog_ref[...] = he.reshape(TB, L, NTP)

    # classifier(emb).mean(L) == classifier(mean_L(emb))  (linear head, exact)
    e_mean = jnp.mean(e.reshape(TB, L, D), axis=1)                      # (TB, D)
    cls = jnp.dot(e_mean.astype(jnp.bfloat16), w_cls_ref[...],
                  preferred_element_type=jnp.float32) + head_vecs_ref[2:3, :OUTP]
    cls_ref[...] = cls.reshape(TB, 1, OUTP)


# ----------------------------- wrapper ----------------------------------------

def _choose_tb(batch, seq_len, max_rows=512):
    """Largest divisor of `batch` with TB*L <= max_rows (fills the MXU M dim).

    Note: on v7x prefer TB <= batch//2 when batch allows so both TensorCores
    get grid steps; on v5e/v6e (single TC) bigger is strictly better.
    """
    best = 1
    for cand in range(1, batch + 1):
        if batch % cand == 0 and cand * seq_len <= max(max_rows, seq_len):
            best = cand
    return best


@functools.partial(jax.jit, static_argnums=(2, 3))
def temporal_model_forward(seq, packed, num_tokens, out_features):
    """seq: int32 [B, L] token ids.  Returns (seq_emb, seq_logits, logits)."""
    B, L = seq.shape
    token_emb = packed['token_emb']                           # (num_tokens, D) f32
    pos_emb = packed['pos_emb']                               # (max_seq_len, D) f32
    D = token_emb.shape[-1]
    NTP = _round_up(num_tokens, 128)
    OUTP = _round_up(out_features, 128)
    EMBP = _round_up(D, 128)
    TB = _choose_tb(B, L)

    # Embedding lookup is glue (gather), done in plain JAX.
    x = (token_emb[seq] + pos_emb[:L][None, :, :]).astype(jnp.float32)  # (B, L, D)

    ws = (packed['wqkv'], packed['wo'], packed['w1'], packed['w2'],
          packed['vecs'], packed['w_head'], packed['w_cls'], packed['head_vecs'])

    x_spec = pl.BlockSpec((TB, L, D), lambda b: (b, 0, 0))

    # Full-array weight blocks (constant index maps -> DMA'd once, no re-fetch).
    # TODO(synk): at real model sizes on v7x (64 MiB VMEM) stream weights
    # per-layer (depth in the grid) or single-buffer them (pl.Buffered(1)) and
    # raise vmem_limit_bytes; trivial at these demo sizes.
    def const_spec(a):
        if a.ndim == 2:
            return pl.BlockSpec(a.shape, lambda b: (0, 0))
        return pl.BlockSpec(a.shape, lambda b: (0, 0, 0))

    emb_pad, seqlog_pad, cls_pad = pl.pallas_call(
        temporal_fused_kernel,
        out_shape=(jax.ShapeDtypeStruct((B, L, EMBP), jnp.float32),
                   jax.ShapeDtypeStruct((B, L, NTP), jnp.float32),
                   jax.ShapeDtypeStruct((B, 1, OUTP), jnp.float32)),
        grid=(B // TB,),
        in_specs=[x_spec] + [const_spec(a) for a in ws],
        out_specs=(pl.BlockSpec((TB, L, EMBP), lambda b: (b, 0, 0)),
                   pl.BlockSpec((TB, L, NTP), lambda b: (b, 0, 0)),
                   pl.BlockSpec((TB, 1, OUTP), lambda b: (b, 0, 0))),
        compiler_params=pltpu.CompilerParams(
            dimension_semantics=("parallel",)),
    )(x, *ws)

    seq_emb = emb_pad[:, :, :D]
    seq_logits = seqlog_pad[:, :, :num_tokens]
    logits = cls_pad[:, 0, :out_features]
    return seq_emb, seq_logits, logits


# ----------------------------- parameters -------------------------------------

def init_params(key, num_tokens, max_seq_len, emb_features, out_features, depth=4):
    """Natural (unpacked) f32 parameters mirroring the PyTorch module."""
    D = emb_features
    FF = D * FF_MULT
    ks = iter(jax.random.split(key, 64))
    n = lambda shape, s=0.02: (s * jax.random.normal(next(ks), shape)).astype(jnp.float32)
    zeros = lambda shape: jnp.zeros(shape, jnp.float32)
    ones = lambda shape: jnp.ones(shape, jnp.float32)

    layers = []
    for _ in range(depth):
        layers.append(dict(
            ln1_g=ones((D,)), ln1_b=zeros((D,)),
            wq=n((D, INNER)), wk=n((D, INNER)), wv=n((D, INNER)),   # no bias
            wo=n((INNER, D)), bo=zeros((D,)),
            ln2_g=ones((D,)), ln2_b=zeros((D,)),
            w1=n((D, FF)), b1=zeros((FF,)),
            w2=n((FF, D)), b2=zeros((D,)),
        ))

    head = dict(
        lnf_g=ones((D,)), lnf_b=zeros((D,)),
        w_logits=n((D, num_tokens)),          # to_logits: Linear(dim, num_tokens, bias=False)
        w_cls=n((D, out_features)), b_cls=zeros((out_features,)),
    )
    return dict(token_emb=n((num_tokens, D)), pos_emb=n((max_seq_len, D)),
                layers=layers, head=head)


def pack_params(params):
    """Pack/stack/pad parameters into the kernel-friendly layout."""
    token_emb = params['token_emb']
    D = token_emb.shape[-1]
    FF = D * FF_MULT
    layers = params['layers']
    depth = len(layers)
    scale = DIM_HEAD ** -0.5

    def pad_head_cols(w):            # (D, INNER) head-major -> (D, INNER_PAD)
        out = jnp.zeros((w.shape[0], INNER_PAD), w.dtype)
        for hh in range(HEADS):
            out = out.at[:, hh * DHP: hh * DHP + DIM_HEAD].set(
                w[:, hh * DIM_HEAD:(hh + 1) * DIM_HEAD])
        return out

    def pad_head_rows(w):            # (INNER, D) head-major -> (INNER_PAD, D)
        out = jnp.zeros((INNER_PAD, w.shape[1]), w.dtype)
        for hh in range(HEADS):
            out = out.at[hh * DHP: hh * DHP + DIM_HEAD, :].set(
                w[hh * DIM_HEAD:(hh + 1) * DIM_HEAD, :])
        return out

    # matmul weights -> bf16, stacked along a leading depth axis.
    # Attention scale is folded into wq; per-head blocks zero-padded to 128 lanes
    # so all in-kernel head slices are (8,128)-tile aligned (exact result).
    wqkv = jnp.stack([jnp.concatenate([pad_head_cols(l['wq'] * scale),
                                       pad_head_cols(l['wk']),
                                       pad_head_cols(l['wv'])], axis=1)
                      for l in layers]).astype(jnp.bfloat16)      # (depth, D, 3*INNER_PAD)
    wo = jnp.stack([pad_head_rows(l['wo'])
                    for l in layers]).astype(jnp.bfloat16)        # (depth, INNER_PAD, D)
    w1 = jnp.stack([l['w1'] for l in layers]).astype(jnp.bfloat16)  # (depth, D, FF)
    w2 = jnp.stack([l['w2'] for l in layers]).astype(jnp.bfloat16)  # (depth, FF, D)

    # tiny per-layer vectors packed into one (8, FF) slab per layer (f32)
    vecs = jnp.zeros((depth, 8, FF), jnp.float32)
    for i, l in enumerate(layers):
        vecs = (vecs
                .at[i, 0, :D].set(l['ln1_g']).at[i, 1, :D].set(l['ln1_b'])
                .at[i, 2, :D].set(l['ln2_g']).at[i, 3, :D].set(l['ln2_b'])
                .at[i, 4, :D].set(l['bo']).at[i, 5, :D].set(l['b2'])
                .at[i, 6, :].set(l['b1']))

    # head: lane-dense padded to_logits and classifier weights (kept separate:
    # classifier is applied to the pooled embedding inside the kernel)
    head = params['head']
    NT = head['w_logits'].shape[1]
    OUT = head['w_cls'].shape[1]
    NTP, OUTP = _round_up(NT, 128), _round_up(OUT, 128)
    w_head = (jnp.zeros((D, NTP), jnp.float32)
              .at[:, :NT].set(head['w_logits'])).astype(jnp.bfloat16)   # (D, NTP)
    w_cls = (jnp.zeros((D, OUTP), jnp.float32)
             .at[:, :OUT].set(head['w_cls'])).astype(jnp.bfloat16)      # (D, OUTP)

    hvw = max(_round_up(D, 128), OUTP)
    head_vecs = (jnp.zeros((8, hvw), jnp.float32)
                 .at[0, :D].set(head['lnf_g'])
                 .at[1, :D].set(head['lnf_b'])
                 .at[2, :OUT].set(head['b_cls']))

    return dict(token_emb=token_emb, pos_emb=params['pos_emb'],
                wqkv=wqkv, wo=wo, w1=w1, w2=w2, vecs=vecs,
                w_head=w_head, w_cls=w_cls, head_vecs=head_vecs)


# ----------------------------- main --------------------------------------------

if __name__ == "__main__":
    num_tokens = 16
    max_seq_len = 16
    emb_features = 32
    out_features = 8
    B, L = 2, 8

    key = jax.random.PRNGKey(0)
    k_params, k_seq = jax.random.split(key)
    params = init_params(k_params, num_tokens, max_seq_len, emb_features, out_features)
    packed = pack_params(params)
    seq = jax.random.randint(k_seq, (B, L), 0, num_tokens, dtype=jnp.int32)

    seq_emb, seq_logits, logits = temporal_model_forward(
        seq, packed, num_tokens, out_features)
    jax.block_until_ready((seq_emb, seq_logits, logits))

    assert seq_emb.shape == (B, L, emb_features)
    assert seq_logits.shape == (B, L, num_tokens)
    assert logits.shape == (B, out_features)
    print("KERNEL_OK")
</pallas_src>

<mosaic_0001>
module attributes {stable_mosaic.version = 11 : i64} {
  func.func @temporal_fused_kernel(%arg0: i32, %arg1: memref<2x8x32xf32, #tpu.memory_space<vmem>>, %arg2: memref<4x32x1536xbf16, #tpu.memory_space<vmem>>, %arg3: memref<4x512x32xbf16, #tpu.memory_space<vmem>>, %arg4: memref<4x32x128xbf16, #tpu.memory_space<vmem>>, %arg5: memref<4x128x32xbf16, #tpu.memory_space<vmem>>, %arg6: memref<4x8x128xf32, #tpu.memory_space<vmem>>, %arg7: memref<32x128xbf16, #tpu.memory_space<vmem>>, %arg8: memref<32x128xbf16, #tpu.memory_space<vmem>>, %arg9: memref<8x128xf32, #tpu.memory_space<vmem>>, %arg10: memref<2x8x128xf32, #tpu.memory_space<vmem>>, %arg11: memref<2x8x128xf32, #tpu.memory_space<vmem>>, %arg12: memref<2x1x128xf32, #tpu.memory_space<vmem>>) attributes {dimension_semantics = [#tpu.dimension_semantics<parallel>], iteration_bounds = array<i64: 1>, scalar_prefetch = 0 : i64, scratch_operands = 0 : i64, tpu.core_type = #tpu.core_type<tc>, window_params = [{transform_indices = @transform_0, window_bounds = array<i64: 2, 8, 32>}, {pipeline_mode = #tpu.pipeline_mode<synchronous>, transform_indices = @transform_1, window_bounds = array<i64: 4, 32, 1536>}, {pipeline_mode = #tpu.pipeline_mode<synchronous>, transform_indices = @transform_2, window_bounds = array<i64: 4, 512, 32>}, {pipeline_mode = #tpu.pipeline_mode<synchronous>, transform_indices = @transform_3, window_bounds = array<i64: 4, 32, 128>}, {pipeline_mode = #tpu.pipeline_mode<synchronous>, transform_indices = @transform_4, window_bounds = array<i64: 4, 128, 32>}, {pipeline_mode = #tpu.pipeline_mode<synchronous>, transform_indices = @transform_5, window_bounds = array<i64: 4, 8, 128>}, {pipeline_mode = #tpu.pipeline_mode<synchronous>, transform_indices = @transform_6, window_bounds = array<i64: 32, 128>}, {pipeline_mode = #tpu.pipeline_mode<synchronous>, transform_indices = @transform_7, window_bounds = array<i64: 32, 128>}, {pipeline_mode = #tpu.pipeline_mode<synchronous>, transform_indices = @transform_8, window_bounds = array<i64: 8, 128>}, {transform_indices = @transform_9, window_bounds = array<i64: 2, 8, 128>}, {transform_indices = @transform_10, window_bounds = array<i64: 2, 8, 128>}, {transform_indices = @transform_11, window_bounds = array<i64: 2, 1, 128>}]} {
    %c0 = arith.constant 0 : index
    %c0_0 = arith.constant 0 : index
    %c0_1 = arith.constant 0 : index
    %0 = vector.load %arg1[%c0, %c0_0, %c0_1] : memref<2x8x32xf32, #tpu.memory_space<vmem>>, vector<2x8x32xf32>
    %1 = vector.shape_cast %0 : vector<2x8x32xf32> to vector<16x32xf32>
    %c0_2 = arith.constant 0 : index
    %c0_3 = arith.constant 0 : index
    %c0_4 = arith.constant 0 : index
    %2 = vector.load %arg6[%c0_2, %c0_3, %c0_4] : memref<4x8x128xf32, #tpu.memory_space<vmem>>, vector<1x1x32xf32>
    %3 = vector.shape_cast %2 : vector<1x1x32xf32> to vector<1x32xf32>
    %c0_5 = arith.constant 0 : index
    %c1 = arith.constant 1 : index
    %c0_6 = arith.constant 0 : index
    %4 = vector.load %arg6[%c0_5, %c1, %c0_6] : memref<4x8x128xf32, #tpu.memory_space<vmem>>, vector<1x1x32xf32>
    %5 = vector.shape_cast %4 : vector<1x1x32xf32> to vector<1x32xf32>
    %cst = arith.constant dense<0.000000e+00> : vector<16xf32>
    %6 = vector.multi_reduction <add>, %1, %cst [1] : vector<16x32xf32> to vector<16xf32>
    %7 = vector.shape_cast %6 : vector<16xf32> to vector<16x1xf32>
    %cst_7 = arith.constant 3.200000e+01 : f32
    %8 = vector.broadcast %cst_7 : f32 to vector<16x1xf32>
    %9 = arith.divf %7, %8 : vector<16x1xf32>
    %10 = vector.broadcast %9 : vector<16x1xf32> to vector<16x32xf32>
    %11 = arith.subf %1, %10 : vector<16x32xf32>
    %12 = arith.mulf %11, %11 : vector<16x32xf32>
    %cst_8 = arith.constant dense<0.000000e+00> : vector<16xf32>
    %13 = vector.multi_reduction <add>, %12, %cst_8 [1] : vector<16x32xf32> to vector<16xf32>
    %14 = vector.shape_cast %13 : vector<16xf32> to vector<16x1xf32>
    %cst_9 = arith.constant 3.200000e+01 : f32
    %15 = vector.broadcast %cst_9 : f32 to vector<16x1xf32>
    %16 = arith.divf %14, %15 : vector<16x1xf32>
    %17 = vector.broadcast %9 : vector<16x1xf32> to vector<16x32xf32>
    %18 = arith.subf %1, %17 : vector<16x32xf32>
    %cst_10 = arith.constant 9.99999974E-6 : f32
    %19 = vector.broadcast %cst_10 : f32 to vector<16x1xf32>
    %20 = arith.addf %16, %19 : vector<16x1xf32>
    %21 = math.rsqrt %20 : vector<16x1xf32>
    %22 = vector.broadcast %21 : vector<16x1xf32> to vector<16x32xf32>
    %23 = arith.mulf %18, %22 : vector<16x32xf32>
    %24 = vector.broadcast %3 : vector<1x32xf32> to vector<16x32xf32>
    %25 = arith.mulf %23, %24 : vector<16x32xf32>
    %26 = vector.broadcast %5 : vector<1x32xf32> to vector<16x32xf32>
    %27 = arith.addf %25, %26 : vector<16x32xf32>
    %28 = arith.truncf %27 : vector<16x32xf32> to vector<16x32xbf16>
    %c0_11 = arith.constant 0 : index
    %c0_12 = arith.constant 0 : index
    %c0_13 = arith.constant 0 : index
    %29 = vector.load %arg2[%c0_11, %c0_12, %c0_13] : memref<4x32x1536xbf16, #tpu.memory_space<vmem>>, vector<1x32x1536xbf16>
    %30 = vector.shape_cast %29 : vector<1x32x1536xbf16> to vector<32x1536xbf16>
    %cst_14 = arith.constant dense<0.000000e+00> : vector<16x1536xf32>
    %31 = tpu.matmul %28, %30, %cst_14 {dimension_numbers = #tpu.dot_dimension_numbers<[1], [0], [0], [1], [0, 0, 1, 1], [], []>} : vector<16x32xbf16>, vector<32x1536xbf16>, vector<16x1536xf32> -> vector<16x1536xf32>
    %32 = arith.truncf %31 : vector<16x1536xf32> to vector<16x1536xbf16>
    %33 = vector.extract_strided_slice %32 {offsets = [0, 0], sizes = [16, 512], strides = [1, 1]} : vector<16x1536xbf16> to vector<16x512xbf16>
    %34 = vector.extract_strided_slice %33 {offsets = [0, 0], sizes = [16, 128], strides = [1, 1]} : vector<16x512xbf16> to vector<16x128xbf16>
    %35 = vector.extract_strided_slice %33 {offsets = [0, 128], sizes = [16, 128], strides = [1, 1]} : vector<16x512xbf16> to vector<16x128xbf16>
    %36 = vector.extract_strided_slice %33 {offsets = [0, 256], sizes = [16, 128], strides = [1, 1]} : vector<16x512xbf16> to vector<16x128xbf16>
    %37 = vector.extract_strided_slice %33 {offsets = [0, 384], sizes = [16, 128], strides = [1, 1]} : vector<16x512xbf16> to vector<16x128xbf16>
    %38 = tpu.concatenate %34, %35, %36, %37 in 0 : vector<16x128xbf16>, vector<16x128xbf16>, vector<16x128xbf16>, vector<16x128xbf16> -> vector<64x128xbf16>
    %39 = vector.shape_cast %38 : vector<64x128xbf16> to vector<8x8x128xbf16>
    %40 = vector.extract_strided_slice %32 {offsets = [0, 512], sizes = [16, 512], strides = [1, 1]} : vector<16x1536xbf16> to vector<16x512xbf16>
    %41 = vector.extract_strided_slice %40 {offsets = [0, 0], sizes = [16, 128], strides = [1, 1]} : vector<16x512xbf16> to vector<16x128xbf16>
    %42 = vector.extract_strided_slice %40 {offsets = [0, 128], sizes = [16, 128], strides = [1, 1]} : vector<16x512xbf16> to vector<16x128xbf16>
    %43 = vector.extract_strided_slice %40 {offsets = [0, 256], sizes = [16, 128], strides = [1, 1]} : vector<16x512xbf16> to vector<16x128xbf16>
    %44 = vector.extract_strided_slice %40 {offsets = [0, 384], sizes = [16, 128], strides = [1, 1]} : vector<16x512xbf16> to vector<16x128xbf16>
    %45 = tpu.concatenate %41, %42, %43, %44 in 0 : vector<16x128xbf16>, vector<16x128xbf16>, vector<16x128xbf16>, vector<16x128xbf16> -> vector<64x128xbf16>
    %46 = vector.shape_cast %45 : vector<64x128xbf16> to vector<8x8x128xbf16>
    %47 = vector.extract_strided_slice %32 {offsets = [0, 1024], sizes = [16, 512], strides = [1, 1]} : vector<16x1536xbf16> to vector<16x512xbf16>
    %48 = vector.extract_strided_slice %47 {offsets = [0, 0], sizes = [16, 128], strides = [1, 1]} : vector<16x512xbf16> to vector<16x128xbf16>
    %49 = vector.extract_strided_slice %47 {offsets = [0, 128], sizes = [16, 128], strides = [1, 1]} : vector<16x512xbf16> to vector<16x128xbf16>
    %50 = vector.extract_strided_slice %47 {offsets = [0, 256], sizes = [16, 128], strides = [1, 1]} : vector<16x512xbf16> to vector<16x128xbf16>
    %51 = vector.extract_strided_slice %47 {offsets = [0, 384], sizes = [16, 128], strides = [1, 1]} : vector<16x512xbf16> to vector<16x128xbf16>
    %52 = tpu.concatenate %48, %49, %50, %51 in 0 : vector<16x128xbf16>, vector<16x128xbf16>, vector<16x128xbf16>, vector<16x128xbf16> -> vector<64x128xbf16>
    %53 = vector.shape_cast %52 : vector<64x128xbf16> to vector<8x8x128xbf16>
    "tpu.trace_start"() <{level = 10 : i32, message = "bqd,bkd->bqk"}> : () -> ()
    %cst_15 = arith.constant dense<0.000000e+00> : vector<8x8x8xf32>
    %54 = tpu.matmul %39, %46, %cst_15 {dimension_numbers = #tpu.dot_dimension_numbers<[2], [2], [1], [1], [0, 0, 0, 1, 1, 1], [0], [0]>} : vector<8x8x128xbf16>, vector<8x8x128xbf16>, vector<8x8x8xf32> -> vector<8x8x8xf32>
    "tpu.trace_stop"() : () -> ()
    %cst_16 = arith.constant dense<0xFF800000> : vector<8x8xf32>
    %55 = vector.multi_reduction <maximumf>, %54, %cst_16 [2] : vector<8x8x8xf32> to vector<8x8xf32>
    %56 = vector.shape_cast %55 : vector<8x8xf32> to vector<8x8x1xf32>
    %57 = vector.broadcast %56 : vector<8x8x1xf32> to vector<8x8x8xf32>
    %58 = arith.subf %54, %57 : vector<8x8x8xf32>
    %59 = math.exp %58 : vector<8x8x8xf32>
    %cst_17 = arith.constant dense<0.000000e+00> : vector<8x8xf32>
    %60 = vector.multi_reduction <add>, %59, %cst_17 [2] : vector<8x8x8xf32> to vector<8x8xf32>
    %61 = vector.shape_cast %60 : vector<8x8xf32> to vector<8x8x1xf32>
    %62 = tpu.reciprocal %61 {approx = true} : vector<8x8x1xf32> -> vector<8x8x1xf32>
    %63 = vector.broadcast %62 : vector<8x8x1xf32> to vector<8x8x8xf32>
    %64 = arith.mulf %59, %63 : vector<8x8x8xf32>
    %65 = arith.truncf %64 : vector<8x8x8xf32> to vector<8x8x8xbf16>
    "tpu.trace_start"() <{level = 10 : i32, message = "bqk,bkd->bqd"}> : () -> ()
    %cst_18 = arith.constant dense<0.000000e+00> : vector<8x8x128xf32>
    %66 = tpu.matmul %65, %53, %cst_18 {dimension_numbers = #tpu.dot_dimension_numbers<[2], [1], [1], [2], [0, 0, 0, 1, 1, 2], [0], [0]>} : vector<8x8x8xbf16>, vector<8x8x128xbf16>, vector<8x8x128xf32> -> vector<8x8x128xf32>
    "tpu.trace_stop"() : () -> ()
    %67 = arith.truncf %66 : vector<8x8x128xf32> to vector<8x8x128xbf16>
    %68 = vector.shape_cast %67 : vector<8x8x128xbf16> to vector<64x128xbf16>
    %69 = vector.extract_strided_slice %68 {offsets = [0, 0], sizes = [16, 128], strides = [1, 1]} : vector<64x128xbf16> to vector<16x128xbf16>
    %70 = vector.extract_strided_slice %68 {offsets = [16, 0], sizes = [16, 128], strides = [1, 1]} : vector<64x128xbf16> to vector<16x128xbf16>
    %71 = vector.extract_strided_slice %68 {offsets = [32, 0], sizes = [16, 128], strides = [1, 1]} : vector<64x128xbf16> to vector<16x128xbf16>
    %72 = vector.extract_strided_slice %68 {offsets = [48, 0], sizes = [16, 128], strides = [1, 1]} : vector<64x128xbf16> to vector<16x128xbf16>
    %73 = tpu.concatenate %69, %70, %71, %72 in 1 : vector<16x128xbf16>, vector<16x128xbf16>, vector<16x128xbf16>, vector<16x128xbf16> -> vector<16x512xbf16>
    %c0_19 = arith.constant 0 : index
    %c0_20 = arith.constant 0 : index
    %c0_21 = arith.constant 0 : index
    %74 = vector.load %arg3[%c0_19, %c0_20, %c0_21] : memref<4x512x32xbf16, #tpu.memory_space<vmem>>, vector<1x512x32xbf16>
    %75 = vector.shape_cast %74 : vector<1x512x32xbf16> to vector<512x32xbf16>
    %cst_22 = arith.constant dense<0.000000e+00> : vector<16x32xf32>
    %76 = tpu.matmul %73, %75, %cst_22 {dimension_numbers = #tpu.dot_dimension_numbers<[1], [0], [0], [1], [0, 0, 1, 1], [], []>} : vector<16x512xbf16>, vector<512x32xbf16>, vector<16x32xf32> -> vector<16x32xf32>
    %c0_23 = arith.constant 0 : index
    %c4 = arith.constant 4 : index
    %c0_24 = arith.constant 0 : index
    %77 = vector.load %arg6[%c0_23, %c4, %c0_24] : memref<4x8x128xf32, #tpu.memory_space<vmem>>, vector<1x1x32xf32>
    %78 = vector.shape_cast %77 : vector<1x1x32xf32> to vector<1x32xf32>
    %79 = vector.broadcast %78 : vector<1x32xf32> to vector<16x32xf32>
    %80 = arith.addf %76, %79 : vector<16x32xf32>
    %81 = arith.addf %1, %80 : vector<16x32xf32>
    %c0_25 = arith.constant 0 : index
    %c2 = arith.constant 2 : index
    %c0_26 = arith.constant 0 : index
    %82 = vector.load %arg6[%c0_25, %c2, %c0_26] : memref<4x8x128xf32, #tpu.memory_space<vmem>>, vector<1x1x32xf32>
    %83 = vector.shape_cast %82 : vector<1x1x32xf32> to vector<1x32xf32>
    %c0_27 = arith.constant 0 : index
    %c3 = arith.constant 3 : index
    %c0_28 = arith.constant 0 : index
    %84 = vector.load %arg6[%c0_27, %c3, %c0_28] : memref<4x8x128xf32, #tpu.memory_space<vmem>>, vector<1x1x32xf32>
    %85 = vector.shape_cast %84 : vector<1x1x32xf32> to vector<1x32xf32>
    %cst_29 = arith.constant dense<0.000000e+00> : vector<16xf32>
    %86 = vector.multi_reduction <add>, %81, %cst_29 [1] : vector<16x32xf32> to vector<16xf32>
    %87 = vector.shape_cast %86 : vector<16xf32> to vector<16x1xf32>
    %cst_30 = arith.constant 3.200000e+01 : f32
    %88 = vector.broadcast %cst_30 : f32 to vector<16x1xf32>
    %89 = arith.divf %87, %88 : vector<16x1xf32>
    %90 = vector.broadcast %89 : vector<16x1xf32> to vector<16x32xf32>
    %91 = arith.subf %81, %90 : vector<16x32xf32>
    %92 = arith.mulf %91, %91 : vector<16x32xf32>
    %cst_31 = arith.constant dense<0.000000e+00> : vector<16xf32>
    %93 = vector.multi_reduction <add>, %92, %cst_31 [1] : vector<16x32xf32> to vector<16xf32>
    %94 = vector.shape_cast %93 : vector<16xf32> to vector<16x1xf32>
    %cst_32 = arith.constant 3.200000e+01 : f32
    %95 = vector.broadcast %cst_32 : f32 to vector<16x1xf32>
    %96 = arith.divf %94, %95 : vector<16x1xf32>
    %97 = vector.broadcast %89 : vector<16x1xf32> to vector<16x32xf32>
    %98 = arith.subf %81, %97 : vector<16x32xf32>
    %cst_33 = arith.constant 9.99999974E-6 : f32
    %99 = vector.broadcast %cst_33 : f32 to vector<16x1xf32>
    %100 = arith.addf %96, %99 : vector<16x1xf32>
    %101 = math.rsqrt %100 : vector<16x1xf32>
    %102 = vector.broadcast %101 : vector<16x1xf32> to vector<16x32xf32>
    %103 = arith.mulf %98, %102 : vector<16x32xf32>
    %104 = vector.broadcast %83 : vector<1x32xf32> to vector<16x32xf32>
    %105 = arith.mulf %103, %104 : vector<16x32xf32>
    %106 = vector.broadcast %85 : vector<1x32xf32> to vector<16x32xf32>
    %107 = arith.addf %105, %106 : vector<16x32xf32>
    %108 = arith.truncf %107 : vector<16x32xf32> to vector<16x32xbf16>
    %c0_34 = arith.constant 0 : index
    %c0_35 = arith.constant 0 : index
    %c0_36 = arith.constant 0 : index
    %109 = vector.load %arg4[%c0_34, %c0_35, %c0_36] : memref<4x32x128xbf16, #tpu.memory_space<vmem>>, vector<1x32x128xbf16>
    %110 = vector.shape_cast %109 : vector<1x32x128xbf16> to vector<32x128xbf16>
    %cst_37 = arith.constant dense<0.000000e+00> : vector<16x128xf32>
    %111 = tpu.matmul %108, %110, %cst_37 {dimension_numbers = #tpu.dot_dimension_numbers<[1], [0], [0], [1], [0, 0, 1, 1], [], []>} : vector<16x32xbf16>, vector<32x128xbf16>, vector<16x128xf32> -> vector<16x128xf32>
    %c0_38 = arith.constant 0 : index
    %c6 = arith.constant 6 : index
    %c0_39 = arith.constant 0 : index
    %112 = vector.load %arg6[%c0_38, %c6, %c0_39] : memref<4x8x128xf32, #tpu.memory_space<vmem>>, vector<1x1x128xf32>
    %113 = vector.shape_cast %112 : vector<1x1x128xf32> to vector<1x128xf32>
    %114 = vector.broadcast %113 : vector<1x128xf32> to vector<16x128xf32>
    %115 = arith.addf %111, %114 : vector<16x128xf32>
    %116 = arith.mulf %115, %115 : vector<16x128xf32>
    %117 = arith.mulf %115, %116 : vector<16x128xf32>
    %cst_40 = arith.constant 4.471500e-02 : f32
    %118 = vector.broadcast %cst_40 : f32 to vector<16x128xf32>
    %119 = arith.mulf %118, %117 : vector<16x128xf32>
    %120 = arith.addf %115, %119 : vector<16x128xf32>
    %cst_41 = arith.constant 0.797884583 : f32
    %121 = vector.broadcast %cst_41 : f32 to vector<16x128xf32>
    %122 = arith.mulf %121, %120 : vector<16x128xf32>
    %123 = math.tanh %122 : vector<16x128xf32>
    %cst_42 = arith.constant 1.000000e+00 : f32
    %124 = vector.broadcast %cst_42 : f32 to vector<16x128xf32>
    %125 = arith.addf %124, %123 : vector<16x128xf32>
    %cst_43 = arith.constant 5.000000e-01 : f32
    %126 = vector.broadcast %cst_43 : f32 to vector<16x128xf32>
    %127 = arith.mulf %126, %125 : vector<16x128xf32>
    %128 = arith.mulf %115, %127 : vector<16x128xf32>
    %129 = arith.truncf %128 : vector<16x128xf32> to vector<16x128xbf16>
    %c0_44 = arith.constant 0 : index
    %c0_45 = arith.constant 0 : index
    %c0_46 = arith.constant 0 : index
    %130 = vector.load %arg5[%c0_44, %c0_45, %c0_46] : memref<4x128x32xbf16, #tpu.memory_space<vmem>>, vector<1x128x32xbf16>
    %131 = vector.shape_cast %130 : vector<1x128x32xbf16> to vector<128x32xbf16>
    %cst_47 = arith.constant dense<0.000000e+00> : vector<16x32xf32>
    %132 = tpu.matmul %129, %131, %cst_47 {dimension_numbers = #tpu.dot_dimension_numbers<[1], [0], [0], [1], [0, 0, 1, 1], [], []>} : vector<16x128xbf16>, vector<128x32xbf16>, vector<16x32xf32> -> vector<16x32xf32>
    %c0_48 = arith.constant 0 : index
    %c5 = arith.constant 5 : index
    %c0_49 = arith.constant 0 : index
    %133 = vector.load %arg6[%c0_48, %c5, %c0_49] : memref<4x8x128xf32, #tpu.memory_space<vmem>>, vector<1x1x32xf32>
    %134 = vector.shape_cast %133 : vector<1x1x32xf32> to vector<1x32xf32>
    %135 = vector.broadcast %134 : vector<1x32xf32> to vector<16x32xf32>
    %136 = arith.addf %132, %135 : vector<16x32xf32>
    %137 = arith.addf %81, %136 : vector<16x32xf32>
    %c1_50 = arith.constant 1 : index
    %c0_51 = arith.constant 0 : index
    %c0_52 = arith.constant 0 : index
    %138 = vector.load %arg6[%c1_50, %c0_51, %c0_52] : memref<4x8x128xf32, #tpu.memory_space<vmem>>, vector<1x1x32xf32>
    %139 = vector.shape_cast %138 : vector<1x1x32xf32> to vector<1x32xf32>
    %c1_53 = arith.constant 1 : index
    %c1_54 = arith.constant 1 : index
    %c0_55 = arith.constant 0 : index
    %140 = vector.load %arg6[%c1_53, %c1_54, %c0_55] : memref<4x8x128xf32, #tpu.memory_space<vmem>>, vector<1x1x32xf32>
    %141 = vector.shape_cast %140 : vector<1x1x32xf32> to vector<1x32xf32>
    %cst_56 = arith.constant dense<0.000000e+00> : vector<16xf32>
    %142 = vector.multi_reduction <add>, %137, %cst_56 [1] : vector<16x32xf32> to vector<16xf32>
    %143 = vector.shape_cast %142 : vector<16xf32> to vector<16x1xf32>
    %cst_57 = arith.constant 3.200000e+01 : f32
    %144 = vector.broadcast %cst_57 : f32 to vector<16x1xf32>
    %145 = arith.divf %143, %144 : vector<16x1xf32>
    %146 = vector.broadcast %145 : vector<16x1xf32> to vector<16x32xf32>
    %147 = arith.subf %137, %146 : vector<16x32xf32>
    %148 = arith.mulf %147, %147 : vector<16x32xf32>
    %cst_58 = arith.constant dense<0.000000e+00> : vector<16xf32>
    %149 = vector.multi_reduction <add>, %148, %cst_58 [1] : vector<16x32xf32> to vector<16xf32>
    %150 = vector.shape_cast %149 : vector<16xf32> to vector<16x1xf32>
    %cst_59 = arith.constant 3.200000e+01 : f32
    %151 = vector.broadcast %cst_59 : f32 to vector<16x1xf32>
    %152 = arith.divf %150, %151 : vector<16x1xf32>
    %153 = vector.broadcast %145 : vector<16x1xf32> to vector<16x32xf32>
    %154 = arith.subf %137, %153 : vector<16x32xf32>
    %cst_60 = arith.constant 9.99999974E-6 : f32
    %155 = vector.broadcast %cst_60 : f32 to vector<16x1xf32>
    %156 = arith.addf %152, %155 : vector<16x1xf32>
    %157 = math.rsqrt %156 : vector<16x1xf32>
    %158 = vector.broadcast %157 : vector<16x1xf32> to vector<16x32xf32>
    %159 = arith.mulf %154, %158 : vector<16x32xf32>
    %160 = vector.broadcast %139 : vector<1x32xf32> to vector<16x32xf32>
    %161 = arith.mulf %159, %160 : vector<16x32xf32>
    %162 = vector.broadcast %141 : vector<1x32xf32> to vector<16x32xf32>
    %163 = arith.addf %161, %162 : vector<16x32xf32>
    %164 = arith.truncf %163 : vector<16x32xf32> to vector<16x32xbf16>
    %c1_61 = arith.constant 1 : index
    %c0_62 = arith.constant 0 : index
    %c0_63 = arith.constant 0 : index
    %165 = vector.load %arg2[%c1_61, %c0_62, %c0_63] : memref<4x32x1536xbf16, #tpu.memory_space<vmem>>, vector<1x32x1536xbf16>
    %166 = vector.shape_cast %165 : vector<1x32x1536xbf16> to vector<32x1536xbf16>
    %cst_64 = arith.constant dense<0.000000e+00> : vector<16x1536xf32>
    %167 = tpu.matmul %164, %166, %cst_64 {dimension_numbers = #tpu.dot_dimension_numbers<[1], [0], [0], [1], [0, 0, 1, 1], [], []>} : vector<16x32xbf16>, vector<32x1536xbf16>, vector<16x1536xf32> -> vector<16x1536xf32>
    %168 = arith.truncf %167 : vector<16x1536xf32> to vector<16x1536xbf16>
    %169 = vector.extract_strided_slice %168 {offsets = [0, 0], sizes = [16, 512], strides = [1, 1]} : vector<16x1536xbf16> to vector<16x512xbf16>
    %170 = vector.extract_strided_slice %169 {offsets = [0, 0], sizes = [16, 128], strides = [1, 1]} : vector<16x512xbf16> to vector<16x128xbf16>
    %171 = vector.extract_strided_slice %169 {offsets = [0, 128], sizes = [16, 128], strides = [1, 1]} : vector<16x512xbf16> to vector<16x128xbf16>
    %172 = vector.extract_strided_slice %169 {offsets = [0, 256], sizes = [16, 128], strides = [1, 1]} : vector<16x512xbf16> to vector<16x128xbf16>
    %173 = vector.extract_strided_slice %169 {offsets = [0, 384], sizes = [16, 128], strides = [1, 1]} : vector<16x512xbf16> to vector<16x128xbf16>
    %174 = tpu.concatenate %170, %171, %172, %173 in 0 : vector<16x128xbf16>, vector<16x128xbf16>, vector<16x128xbf16>, vector<16x128xbf16> -> vector<64x128xbf16>
    %175 = vector.shape_cast %174 : vector<64x128xbf16> to vector<8x8x128xbf16>
    %176 = vector.extract_strided_slice %168 {offsets = [0, 512], sizes = [16, 512], strides = [1, 1]} : vector<16x1536xbf16> to vector<16x512xbf16>
    %177 = vector.extract_strided_slice %176 {offsets = [0, 0], sizes = [16, 128], strides = [1, 1]} : vector<16x512xbf16> to vector<16x128xbf16>
    %178 = vector.extract_strided_slice %176 {offsets = [0, 128], sizes = [16, 128], strides = [1, 1]} : vector<16x512xbf16> to vector<16x128xbf16>
    %179 = vector.extract_strided_slice %176 {offsets = [0, 256], sizes = [16, 128], strides = [1, 1]} : vector<16x512xbf16> to vector<16x128xbf16>
    %180 = vector.extract_strided_slice %176 {offsets = [0, 384], sizes = [16, 128], strides = [1, 1]} : vector<16x512xbf16> to vector<16x128xbf16>
    %181 = tpu.concatenate %177, %178, %179, %180 in 0 : vector<16x128xbf16>, vector<16x128xbf16>, vector<16x128xbf16>, vector<16x128xbf16> -> vector<64x128xbf16>
    %182 = vector.shape_cast %181 : vector<64x128xbf16> to vector<8x8x128xbf16>
    %183 = vector.extract_strided_slice %168 {offsets = [0, 1024], sizes = [16, 512], strides = [1, 1]} : vector<16x1536xbf16> to vector<16x512xbf16>
    %184 = vector.extract_strided_slice %183 {offsets = [0, 0], sizes = [16, 128], strides = [1, 1]} : vector<16x512xbf16> to vector<16x128xbf16>
    %185 = vector.extract_strided_slice %183 {offsets = [0, 128], sizes = [16, 128], strides = [1, 1]} : vector<16x512xbf16> to vector<16x128xbf16>
    %186 = vector.extract_strided_slice %183 {offsets = [0, 256], sizes = [16, 128], strides = [1, 1]} : vector<16x512xbf16> to vector<16x128xbf16>
    %187 = vector.extract_strided_slice %183 {offsets = [0, 384], sizes = [16, 128], strides = [1, 1]} : vector<16x512xbf16> to vector<16x128xbf16>
    %188 = tpu.concatenate %184, %185, %186, %187 in 0 : vector<16x128xbf16>, vector<16x128xbf16>, vector<16x128xbf16>, vector<16x128xbf16> -> vector<64x128xbf16>
    %189 = vector.shape_cast %188 : vector<64x128xbf16> to vector<8x8x128xbf16>
    "tpu.trace_start"() <{level = 10 : i32, message = "bqd,bkd->bqk"}> : () -> ()
    %cst_65 = arith.constant dense<0.000000e+00> : vector<8x8x8xf32>
    %190 = tpu.matmul %175, %182, %cst_65 {dimension_numbers = #tpu.dot_dimension_numbers<[2], [2], [1], [1], [0, 0, 0, 1, 1, 1], [0], [0]>} : vector<8x8x128xbf16>, vector<8x8x128xbf16>, vector<8x8x8xf32> -> vector<8x8x8xf32>
    "tpu.trace_stop"() : () -> ()
    %cst_66 = arith.constant dense<0xFF800000> : vector<8x8xf32>
    %191 = vector.multi_reduction <maximumf>, %190, %cst_66 [2] : vector<8x8x8xf32> to vector<8x8xf32>
    %192 = vector.shape_cast %191 : vector<8x8xf32> to vector<8x8x1xf32>
    %193 = vector.broadcast %192 : vector<8x8x1xf32> to vector<8x8x8xf32>
    %194 = arith.subf %190, %193 : vector<8x8x8xf32>
    %195 = math.exp %194 : vector<8x8x8xf32>
    %cst_67 = arith.constant dense<0.000000e+00> : vector<8x8xf32>
    %196 = vector.multi_reduction <add>, %195, %cst_67 [2] : vector<8x8x8xf32> to vector<8x8xf32>
    %197 = vector.shape_cast %196 : vector<8x8xf32> to vector<8x8x1xf32>
    %198 = tpu.reciprocal %197 {approx = true} : vector<8x8x1xf32> -> vector<8x8x1xf32>
    %199 = vector.broadcast %198 : vector<8x8x1xf32> to vector<8x8x8xf32>
    %200 = arith.mulf %195, %199 : vector<8x8x8xf32>
    %201 = arith.truncf %200 : vector<8x8x8xf32> to vector<8x8x8xbf16>
    "tpu.trace_start"() <{level = 10 : i32, message = "bqk,bkd->bqd"}> : () -> ()
    %cst_68 = arith.constant dense<0.000000e+00> : vector<8x8x128xf32>
    %202 = tpu.matmul %201, %189, %cst_68 {dimension_numbers = #tpu.dot_dimension_numbers<[2], [1], [1], [2], [0, 0, 0, 1, 1, 2], [0], [0]>} : vector<8x8x8xbf16>, vector<8x8x128xbf16>, vector<8x8x128xf32> -> vector<8x8x128xf32>
    "tpu.trace_stop"() : () -> ()
    %203 = arith.truncf %202 : vector<8x8x128xf32> to vector<8x8x128xbf16>
    %204 = vector.shape_cast %203 : vector<8x8x128xbf16> to vector<64x128xbf16>
    %205 = vector.extract_strided_slice %204 {offsets = [0, 0], sizes = [16, 128], strides = [1, 1]} : vector<64x128xbf16> to vector<16x128xbf16>
    %206 = vector.extract_strided_slice %204 {offsets = [16, 0], sizes = [16, 128], strides = [1, 1]} : vector<64x128xbf16> to vector<16x128xbf16>
    %207 = vector.extract_strided_slice %204 {offsets = [32, 0], sizes = [16, 128], strides = [1, 1]} : vector<64x128xbf16> to vector<16x128xbf16>
    %208 = vector.extract_strided_slice %204 {offsets = [48, 0], sizes = [16, 128], strides = [1, 1]} : vector<64x128xbf16> to vector<16x128xbf16>
    %209 = tpu.concatenate %205, %206, %207, %208 in 1 : vector<16x128xbf16>, vector<16x128xbf16>, vector<16x128xbf16>, vector<16x128xbf16> -> vector<16x512xbf16>
    %c1_69 = arith.constant 1 : index
    %c0_70 = arith.constant 0 : index
    %c0_71 = arith.constant 0 : index
    %210 = vector.load %arg3[%c1_69, %c0_70, %c0_71] : memref<4x512x32xbf16, #tpu.memory_space<vmem>>, vector<1x512x32xbf16>
    %211 = vector.shape_cast %210 : vector<1x512x32xbf16> to vector<512x32xbf16>
    %cst_72 = arith.constant dense<0.000000e+00> : vector<16x32xf32>
    %212 = tpu.matmul %209, %211, %cst_72 {dimension_numbers = #tpu.dot_dimension_numbers<[1], [0], [0], [1], [0, 0, 1, 1], [], []>} : vector<16x512xbf16>, vector<512x32xbf16>, vector<16x32xf32> -> vector<16x32xf32>
    %c1_73 = arith.constant 1 : index
    %c4_74 = arith.constant 4 : index
    %c0_75 = arith.constant 0 : index
    %213 = vector.load %arg6[%c1_73, %c4_74, %c0_75] : memref<4x8x128xf32, #tpu.memory_space<vmem>>, vector<1x1x32xf32>
    %214 = vector.shape_cast %213 : vector<1x1x32xf32> to vector<1x32xf32>
    %215 = vector.broadcast %214 : vector<1x32xf32> to vector<16x32xf32>
    %216 = arith.addf %212, %215 : vector<16x32xf32>
    %217 = arith.addf %137, %216 : vector<16x32xf32>
    %c1_76 = arith.constant 1 : index
    %c2_77 = arith.constant 2 : index
    %c0_78 = arith.constant 0 : index
    %218 = vector.load %arg6[%c1_76, %c2_77, %c0_78] : memref<4x8x128xf32, #tpu.memory_space<vmem>>, vector<1x1x32xf32>
    %219 = vector.shape_cast %218 : vector<1x1x32xf32> to vector<1x32xf32>
    %c1_79 = arith.constant 1 : index
    %c3_80 = arith.constant 3 : index
    %c0_81 = arith.constant 0 : index
    %220 = vector.load %arg6[%c1_79, %c3_80, %c0_81] : memref<4x8x128xf32, #tpu.memory_space<vmem>>, vector<1x1x32xf32>
    %221 = vector.shape_cast %220 : vector<1x1x32xf32> to vector<1x32xf32>
    %cst_82 = arith.constant dense<0.000000e+00> : vector<16xf32>
    %222 = vector.multi_reduction <add>, %217, %cst_82 [1] : vector<16x32xf32> to vector<16xf32>
    %223 = vector.shape_cast %222 : vector<16xf32> to vector<16x1xf32>
    %cst_83 = arith.constant 3.200000e+01 : f32
    %224 = vector.broadcast %cst_83 : f32 to vector<16x1xf32>
    %225 = arith.divf %223, %224 : vector<16x1xf32>
    %226 = vector.broadcast %225 : vector<16x1xf32> to vector<16x32xf32>
    %227 = arith.subf %217, %226 : vector<16x32xf32>
    %228 = arith.mulf %227, %227 : vector<16x32xf32>
    %cst_84 = arith.constant dense<0.000000e+00> : vector<16xf32>
    %229 = vector.multi_reduction <add>, %228, %cst_84 [1] : vector<16x32xf32> to vector<16xf32>
    %230 = vector.shape_cast %229 : vector<16xf32> to vector<16x1xf32>
    %cst_85 = arith.constant 3.200000e+01 : f32
    %231 = vector.broadcast %cst_85 : f32 to vector<16x1xf32>
    %232 = arith.divf %230, %231 : vector<16x1xf32>
    %233 = vector.broadcast %225 : vector<16x1xf32> to vector<16x32xf32>
    %234 = arith.subf %217, %233 : vector<16x32xf32>
    %cst_86 = arith.constant 9.99999974E-6 : f32
    %235 = vector.broadcast %cst_86 : f32 to vector<16x1xf32>
    %236 = arith.addf %232, %235 : vector<16x1xf32>
    %237 = math.rsqrt %236 : vector<16x1xf32>
    %238 = vector.broadcast %237 : vector<16x1xf32> to vector<16x32xf32>
    %239 = arith.mulf %234, %238 : vector<16x32xf32>
    %240 = vector.broadcast %219 : vector<1x32xf32> to vector<16x32xf32>
    %241 = arith.mulf %239, %240 : vector<16x32xf32>
    %242 = vector.broadcast %221 : vector<1x32xf32> to vector<16x32xf32>
    %243 = arith.addf %241, %242 : vector<16x32xf32>
    %244 = arith.truncf %243 : vector<16x32xf32> to vector<16x32xbf16>
    %c1_87 = arith.constant 1 : index
    %c0_88 = arith.constant 0 : index
    %c0_89 = arith.constant 0 : index
    %245 = vector.load %arg4[%c1_87, %c0_88, %c0_89] : memref<4x32x128xbf16, #tpu.memory_space<vmem>>, vector<1x32x128xbf16>
    %246 = vector.shape_cast %245 : vector<1x32x128xbf16> to vector<32x128xbf16>
    %cst_90 = arith.constant dense<0.000000e+00> : vector<16x128xf32>
    %247 = tpu.matmul %244, %246, %cst_90 {dimension_numbers = #tpu.dot_dimension_numbers<[1], [0], [0], [1], [0, 0, 1, 1], [], []>} : vector<16x32xbf16>, vector<32x128xbf16>, vector<16x128xf32> -> vector<16x128xf32>
    %c1_91 = arith.constant 1 : index
    %c6_92 = arith.constant 6 : index
    %c0_93 = arith.constant 0 : index
    %248 = vector.load %arg6[%c1_91, %c6_92, %c0_93] : memref<4x8x128xf32, #tpu.memory_space<vmem>>, vector<1x1x128xf32>
    %249 = vector.shape_cast %248 : vector<1x1x128xf32> to vector<1x128xf32>
    %250 = vector.broadcast %249 : vector<1x128xf32> to vector<16x128xf32>
    %251 = arith.addf %247, %250 : vector<16x128xf32>
    %252 = arith.mulf %251, %251 : vector<16x128xf32>
    %253 = arith.mulf %251, %252 : vector<16x128xf32>
    %cst_94 = arith.constant 4.471500e-02 : f32
    %254 = vector.broadcast %cst_94 : f32 to vector<16x128xf32>
    %255 = arith.mulf %254, %253 : vector<16x128xf32>
    %256 = arith.addf %251, %255 : vector<16x128xf32>
    %cst_95 = arith.constant 0.797884583 : f32
    %257 = vector.broadcast %cst_95 : f32 to vector<16x128xf32>
    %258 = arith.mulf %257, %256 : vector<16x128xf32>
    %259 = math.tanh %258 : vector<16x128xf32>
    %cst_96 = arith.constant 1.000000e+00 : f32
    %260 = vector.broadcast %cst_96 : f32 to vector<16x128xf32>
    %261 = arith.addf %260, %259 : vector<16x128xf32>
    %cst_97 = arith.constant 5.000000e-01 : f32
    %262 = vector.broadcast %cst_97 : f32 to vector<16x128xf32>
    %263 = arith.mulf %262, %261 : vector<16x128xf32>
    %264 = arith.mulf %251, %263 : vector<16x128xf32>
    %265 = arith.truncf %264 : vector<16x128xf32> to vector<16x128xbf16>
    %c1_98 = arith.constant 1 : index
    %c0_99 = arith.constant 0 : index
    %c0_100 = arith.constant 0 : index
    %266 = vector.load %arg5[%c1_98, %c0_99, %c0_100] : memref<4x128x32xbf16, #tpu.memory_space<vmem>>, vector<1x128x32xbf16>
    %267 = vector.shape_cast %266 : vector<1x128x32xbf16> to vector<128x32xbf16>
    %cst_101 = arith.constant dense<0.000000e+00> : vector<16x32xf32>
    %268 = tpu.matmul %265, %267, %cst_101 {dimension_numbers = #tpu.dot_dimension_numbers<[1], [0], [0], [1], [0, 0, 1, 1], [], []>} : vector<16x128xbf16>, vector<128x32xbf16>, vector<16x32xf32> -> vector<16x32xf32>
    %c1_102 = arith.constant 1 : index
    %c5_103 = arith.constant 5 : index
    %c0_104 = arith.constant 0 : index
    %269 = vector.load %arg6[%c1_102, %c5_103, %c0_104] : memref<4x8x128xf32, #tpu.memory_space<vmem>>, vector<1x1x32xf32>
    %270 = vector.shape_cast %269 : vector<1x1x32xf32> to vector<1x32xf32>
    %271 = vector.broadcast %270 : vector<1x32xf32> to vector<16x32xf32>
    %272 = arith.addf %268, %271 : vector<16x32xf32>
    %273 = arith.addf %217, %272 : vector<16x32xf32>
    %c2_105 = arith.constant 2 : index
    %c0_106 = arith.constant 0 : index
    %c0_107 = arith.constant 0 : index
    %274 = vector.load %arg6[%c2_105, %c0_106, %c0_107] : memref<4x8x128xf32, #tpu.memory_space<vmem>>, vector<1x1x32xf32>
    %275 = vector.shape_cast %274 : vector<1x1x32xf32> to vector<1x32xf32>
    %c2_108 = arith.constant 2 : index
    %c1_109 = arith.constant 1 : index
    %c0_110 = arith.constant 0 : index
    %276 = vector.load %arg6[%c2_108, %c1_109, %c0_110] : memref<4x8x128xf32, #tpu.memory_space<vmem>>, vector<1x1x32xf32>
    %277 = vector.shape_cast %276 : vector<1x1x32xf32> to vector<1x32xf32>
    %cst_111 = arith.constant dense<0.000000e+00> : vector<16xf32>
    %278 = vector.multi_reduction <add>, %273, %cst_111 [1] : vector<16x32xf32> to vector<16xf32>
    %279 = vector.shape_cast %278 : vector<16xf32> to vector<16x1xf32>
    %cst_112 = arith.constant 3.200000e+01 : f32
    %280 = vector.broadcast %cst_112 : f32 to vector<16x1xf32>
    %281 = arith.divf %279, %280 : vector<16x1xf32>
    %282 = vector.broadcast %281 : vector<16x1xf32> to vector<16x32xf32>
    %283 = arith.subf %273, %282 : vector<16x32xf32>
    %284 = arith.mulf %283, %283 : vector<16x32xf32>
    %cst_113 = arith.constant dense<0.000000e+00> : vector<16xf32>
    %285 = vector.multi_reduction <add>, %284, %cst_113 [1] : vector<16x32xf32> to vector<16xf32>
    %286 = vector.shape_cast %285 : vector<16xf32> to vector<16x1xf32>
    %cst_114 = arith.constant 3.200000e+01 : f32
    %287 = vector.broadcast %cst_114 : f32 to vector<16x1xf32>
    %288 = arith.divf %286, %287 : vector<16x1xf32>
    %289 = vector.broadcast %281 : vector<16x1xf32> to vector<16x32xf32>
    %290 = arith.subf %273, %289 : vector<16x32xf32>
    %cst_115 = arith.constant 9.99999974E-6 : f32
    %291 = vector.broadcast %cst_115 : f32 to vector<16x1xf32>
    %292 = arith.addf %288, %291 : vector<16x1xf32>
    %293 = math.rsqrt %292 : vector<16x1xf32>
    %294 = vector.broadcast %293 : vector<16x1xf32> to vector<16x32xf32>
    %295 = arith.mulf %290, %294 : vector<16x32xf32>
    %296 = vector.broadcast %275 : vector<1x32xf32> to vector<16x32xf32>
    %297 = arith.mulf %295, %296 : vector<16x32xf32>
    %298 = vector.broadcast %277 : vector<1x32xf32> to vector<16x32xf32>
    %299 = arith.addf %297, %298 : vector<16x32xf32>
    %300 = arith.truncf %299 : vector<16x32xf32> to vector<16x32xbf16>
    %c2_116 = arith.constant 2 : index
    %c0_117 = arith.constant 0 : index
    %c0_118 = arith.constant 0 : index
    %301 = vector.load %arg2[%c2_116, %c0_117, %c0_118] : memref<4x32x1536xbf16, #tpu.memory_space<vmem>>, vector<1x32x1536xbf16>
    %302 = vector.shape_cast %301 : vector<1x32x1536xbf16> to vector<32x1536xbf16>
    %cst_119 = arith.constant dense<0.000000e+00> : vector<16x1536xf32>
    %303 = tpu.matmul %300, %302, %cst_119 {dimension_numbers = #tpu.dot_dimension_numbers<[1], [0], [0], [1], [0, 0, 1, 1], [], []>} : vector<16x32xbf16>, vector<32x1536xbf16>, vector<16x1536xf32> -> vector<16x1536xf32>
    %304 = arith.truncf %303 : vector<16x1536xf32> to vector<16x1536xbf16>
    %305 = vector.extract_strided_slice %304 {offsets = [0, 0], sizes = [16, 512], strides = [1, 1]} : vector<16x1536xbf16> to vector<16x512xbf16>
    %306 = vector.extract_strided_slice %305 {offsets = [0, 0], sizes = [16, 128], strides = [1, 1]} : vector<16x512xbf16> to vector<16x128xbf16>
    %307 = vector.extract_strided_slice %305 {offsets = [0, 128], sizes = [16, 128], strides = [1, 1]} : vector<16x512xbf16> to vector<16x128xbf16>
    %308 = vector.extract_strided_slice %305 {offsets = [0, 256], sizes = [16, 128], strides = [1, 1]} : vector<16x512xbf16> to vector<16x128xbf16>
    %309 = vector.extract_strided_slice %305 {offsets = [0, 384], sizes = [16, 128], strides = [1, 1]} : vector<16x512xbf16> to vector<16x128xbf16>
    %310 = tpu.concatenate %306, %307, %308, %309 in 0 : vector<16x128xbf16>, vector<16x128xbf16>, vector<16x128xbf16>, vector<16x128xbf16> -> vector<64x128xbf16>
    %311 = vector.shape_cast %310 : vector<64x128xbf16> to vector<8x8x128xbf16>
    %312 = vector.extract_strided_slice %304 {offsets = [0, 512], sizes = [16, 512], strides = [1, 1]} : vector<16x1536xbf16> to vector<16x512xbf16>
    %313 = vector.extract_strided_slice %312 {offsets = [0, 0], sizes = [16, 128], strides = [1, 1]} : vector<16x512xbf16> to vector<16x128xbf16>
    %314 = vector.extract_strided_slice %312 {offsets = [0, 128], sizes = [16, 128], strides = [1, 1]} : vector<16x512xbf16> to vector<16x128xbf16>
    %315 = vector.extract_strided_slice %312 {offsets = [0, 256], sizes = [16, 128], strides = [1, 1]} : vector<16x512xbf16> to vector<16x128xbf16>
    %316 = vector.extract_strided_slice %312 {offsets = [0, 384], sizes = [16, 128], strides = [1, 1]} : vector<16x512xbf16> to vector<16x128xbf16>
    %317 = tpu.concatenate %313, %314, %315, %316 in 0 : vector<16x128xbf16>, vector<16x128xbf16>, vector<16x128xbf16>, vector<16x128xbf16> -> vector<64x128xbf16>
    %318 = vector.shape_cast %317 : vector<64x128xbf16> to vector<8x8x128xbf16>
    %319 = vector.extract_strided_slice %304 {offsets = [0, 1024], sizes = [16, 512], strides = [1, 1]} : vector<16x1536xbf16> to vector<16x512xbf16>
    %320 = vector.extract_strided_slice %319 {offsets = [0, 0], sizes = [16, 128], strides = [1, 1]} : vector<16x512xbf16> to vector<16x128xbf16>
    %321 = vector.extract_strided_slice %319 {offsets = [0, 128], sizes = [16, 128], strides = [1, 1]} : vector<16x512xbf16> to vector<16x128xbf16>
    %322 = vector.extract_strided_slice %319 {offsets = [0, 256], sizes = [16, 128], strides = [1, 1]} : vector<16x512xbf16> to vector<16x128xbf16>
    %323 = vector.extract_strided_slice %319 {offsets = [0, 384], sizes = [16, 128], strides = [1, 1]} : vector<16x512xbf16> to vector<16x128xbf16>
    %324 = tpu.concatenate %320, %321, %322, %323 in 0 : vector<16x128xbf16>, vector<16x128xbf16>, vector<16x128xbf16>, vector<16x128xbf16> -> vector<64x128xbf16>
    %325 = vector.shape_cast %324 : vector<64x128xbf16> to vector<8x8x128xbf16>
    "tpu.trace_start"() <{level = 10 : i32, message = "bqd,bkd->bqk"}> : () -> ()
    %cst_120 = arith.constant dense<0.000000e+00> : vector<8x8x8xf32>
    %326 = tpu.matmul %311, %318, %cst_120 {dimension_numbers = #tpu.dot_dimension_numbers<[2], [2], [1], [1], [0, 0, 0, 1, 1, 1], [0], [0]>} : vector<8x8x128xbf16>, vector<8x8x128xbf16>, vector<8x8x8xf32> -> vector<8x8x8xf32>
    "tpu.trace_stop"() : () -> ()
    %cst_121 = arith.constant dense<0xFF800000> : vector<8x8xf32>
    %327 = vector.multi_reduction <maximumf>, %326, %cst_121 [2] : vector<8x8x8xf32> to vector<8x8xf32>
    %328 = vector.shape_cast %327 : vector<8x8xf32> to vector<8x8x1xf32>
    %329 = vector.broadcast %328 : vector<8x8x1xf32> to vector<8x8x8xf32>
    %330 = arith.subf %326, %329 : vector<8x8x8xf32>
    %331 = math.exp %330 : vector<8x8x8xf32>
    %cst_122 = arith.constant dense<0.000000e+00> : vector<8x8xf32>
    %332 = vector.multi_reduction <add>, %331, %cst_122 [2] : vector<8x8x8xf32> to vector<8x8xf32>
    %333 = vector.shape_cast %332 : vector<8x8xf32> to vector<8x8x1xf32>
    %334 = tpu.reciprocal %333 {approx = true} : vector<8x8x1xf32> -> vector<8x8x1xf32>
    %335 = vector.broadcast %334 : vector<8x8x1xf32> to vector<8x8x8xf32>
    %336 = arith.mulf %331, %335 : vector<8x8x8xf32>
    %337 = arith.truncf %336 : vector<8x8x8xf32> to vector<8x8x8xbf16>
    "tpu.trace_start"() <{level = 10 : i32, message = "bqk,bkd->bqd"}> : () -> ()
    %cst_123 = arith.constant dense<0.000000e+00> : vector<8x8x128xf32>
    %338 = tpu.matmul %337, %325, %cst_123 {dimension_numbers = #tpu.dot_dimension_numbers<[2], [1], [1], [2], [0, 0, 0, 1, 1, 2], [0], [0]>} : vector<8x8x8xbf16>, vector<8x8x128xbf16>, vector<8x8x128xf32> -> vector<8x8x128xf32>
    "tpu.trace_stop"() : () -> ()
    %339 = arith.truncf %338 : vector<8x8x128xf32> to vector<8x8x128xbf16>
    %340 = vector.shape_cast %339 : vector<8x8x128xbf16> to vector<64x128xbf16>
    %341 = vector.extract_strided_slice %340 {offsets = [0, 0], sizes = [16, 128], strides = [1, 1]} : vector<64x128xbf16> to vector<16x128xbf16>
    %342 = vector.extract_strided_slice %340 {offsets = [16, 0], sizes = [16, 128], strides = [1, 1]} : vector<64x128xbf16> to vector<16x128xbf16>
    %343 = vector.extract_strided_slice %340 {offsets = [32, 0], sizes = [16, 128], strides = [1, 1]} : vector<64x128xbf16> to vector<16x128xbf16>
    %344 = vector.extract_strided_slice %340 {offsets = [48, 0], sizes = [16, 128], strides = [1, 1]} : vector<64x128xbf16> to vector<16x128xbf16>
    %345 = tpu.concatenate %341, %342, %343, %344 in 1 : vector<16x128xbf16>, vector<16x128xbf16>, vector<16x128xbf16>, vector<16x128xbf16> -> vector<16x512xbf16>
    %c2_124 = arith.constant 2 : index
    %c0_125 = arith.constant 0 : index
    %c0_126 = arith.constant 0 : index
    %346 = vector.load %arg3[%c2_124, %c0_125, %c0_126] : memref<4x512x32xbf16, #tpu.memory_space<vmem>>, vector<1x512x32xbf16>
    %347 = vector.shape_cast %346 : vector<1x512x32xbf16> to vector<512x32xbf16>
    %cst_127 = arith.constant dense<0.000000e+00> : vector<16x32xf32>
    %348 = tpu.matmul %345, %347, %cst_127 {dimension_numbers = #tpu.dot_dimension_numbers<[1], [0], [0], [1], [0, 0, 1, 1], [], []>} : vector<16x512xbf16>, vector<512x32xbf16>, vector<16x32xf32> -> vector<16x32xf32>
    %c2_128 = arith.constant 2 : index
    %c4_129 = arith.constant 4 : index
    %c0_130 = arith.constant 0 : index
    %349 = vector.load %arg6[%c2_128, %c4_129, %c0_130] : memref<4x8x128xf32, #tpu.memory_space<vmem>>, vector<1x1x32xf32>
    %350 = vector.shape_cast %349 : vector<1x1x32xf32> to vector<1x32xf32>
    %351 = vector.broadcast %350 : vector<1x32xf32> to vector<16x32xf32>
    %352 = arith.addf %348, %351 : vector<16x32xf32>
    %353 = arith.addf %273, %352 : vector<16x32xf32>
    %c2_131 = arith.constant 2 : index
    %c2_132 = arith.constant 2 : index
    %c0_133 = arith.constant 0 : index
    %354 = vector.load %arg6[%c2_131, %c2_132, %c0_133] : memref<4x8x128xf32, #tpu.memory_space<vmem>>, vector<1x1x32xf32>
    %355 = vector.shape_cast %354 : vector<1x1x32xf32> to vector<1x32xf32>
    %c2_134 = arith.constant 2 : index
    %c3_135 = arith.constant 3 : index
    %c0_136 = arith.constant 0 : index
    %356 = vector.load %arg6[%c2_134, %c3_135, %c0_136] : memref<4x8x128xf32, #tpu.memory_space<vmem>>, vector<1x1x32xf32>
    %357 = vector.shape_cast %356 : vector<1x1x32xf32> to vector<1x32xf32>
    %cst_137 = arith.constant dense<0.000000e+00> : vector<16xf32>
    %358 = vector.multi_reduction <add>, %353, %cst_137 [1] : vector<16x32xf32> to vector<16xf32>
    %359 = vector.shape_cast %358 : vector<16xf32> to vector<16x1xf32>
    %cst_138 = arith.constant 3.200000e+01 : f32
    %360 = vector.broadcast %cst_138 : f32 to vector<16x1xf32>
    %361 = arith.divf %359, %360 : vector<16x1xf32>
    %362 = vector.broadcast %361 : vector<16x1xf32> to vector<16x32xf32>
    %363 = arith.subf %353, %362 : vector<16x32xf32>
    %364 = arith.mulf %363, %363 : vector<16x32xf32>
    %cst_139 = arith.constant dense<0.000000e+00> : vector<16xf32>
    %365 = vector.multi_reduction <add>, %364, %cst_139 [1] : vector<16x32xf32> to vector<16xf32>
    %366 = vector.shape_cast %365 : vector<16xf32> to vector<16x1xf32>
    %cst_140 = arith.constant 3.200000e+01 : f32
    %367 = vector.broadcast %cst_140 : f32 to vector<16x1xf32>
    %368 = arith.divf %366, %367 : vector<16x1xf32>
    %369 = vector.broadcast %361 : vector<16x1xf32> to vector<16x32xf32>
    %370 = arith.subf %353, %369 : vector<16x32xf32>
    %cst_141 = arith.constant 9.99999974E-6 : f32
    %371 = vector.broadcast %cst_141 : f32 to vector<16x1xf32>
    %372 = arith.addf %368, %371 : vector<16x1xf32>
    %373 = math.rsqrt %372 : vector<16x1xf32>
    %374 = vector.broadcast %373 : vector<16x1xf32> to vector<16x32xf32>
    %375 = arith.mulf %370, %374 : vector<16x32xf32>
    %376 = vector.broadcast %355 : vector<1x32xf32> to vector<16x32xf32>
    %377 = arith.mulf %375, %376 : vector<16x32xf32>
    %378 = vector.broadcast %357 : vector<1x32xf32> to vector<16x32xf32>
    %379 = arith.addf %377, %378 : vector<16x32xf32>
    %380 = arith.truncf %379 : vector<16x32xf32> to vector<16x32xbf16>
    %c2_142 = arith.constant 2 : index
    %c0_143 = arith.constant 0 : index
    %c0_144 = arith.constant 0 : index
    %381 = vector.load %arg4[%c2_142, %c0_143, %c0_144] : memref<4x32x128xbf16, #tpu.memory_space<vmem>>, vector<1x32x128xbf16>
    %382 = vector.shape_cast %381 : vector<1x32x128xbf16> to vector<32x128xbf16>
    %cst_145 = arith.constant dense<0.000000e+00> : vector<16x128xf32>
    %383 = tpu.matmul %380, %382, %cst_145 {dimension_numbers = #tpu.dot_dimension_numbers<[1], [0], [0], [1], [0, 0, 1, 1], [], []>} : vector<16x32xbf16>, vector<32x128xbf16>, vector<16x128xf32> -> vector<16x128xf32>
    %c2_146 = arith.constant 2 : index
    %c6_147 = arith.constant 6 : index
    %c0_148 = arith.constant 0 : index
    %384 = vector.load %arg6[%c2_146, %c6_147, %c0_148] : memref<4x8x128xf32, #tpu.memory_space<vmem>>, vector<1x1x128xf32>
    %385 = vector.shape_cast %384 : vector<1x1x128xf32> to vector<1x128xf32>
    %386 = vector.broadcast %385 : vector<1x128xf32> to vector<16x128xf32>
    %387 = arith.addf %383, %386 : vector<16x128xf32>
    %388 = arith.mulf %387, %387 : vector<16x128xf32>
    %389 = arith.mulf %387, %388 : vector<16x128xf32>
    %cst_149 = arith.constant 4.471500e-02 : f32
    %390 = vector.broadcast %cst_149 : f32 to vector<16x128xf32>
    %391 = arith.mulf %390, %389 : vector<16x128xf32>
    %392 = arith.addf %387, %391 : vector<16x128xf32>
    %cst_150 = arith.constant 0.797884583 : f32
    %393 = vector.broadcast %cst_150 : f32 to vector<16x128xf32>
    %394 = arith.mulf %393, %392 : vector<16x128xf32>
    %395 = math.tanh %394 : vector<16x128xf32>
    %cst_151 = arith.constant 1.000000e+00 : f32
    %396 = vector.broadcast %cst_151 : f32 to vector<16x128xf32>
    %397 = arith.addf %396, %395 : vector<16x128xf32>
    %cst_152 = arith.constant 5.000000e-01 : f32
    %398 = vector.broadcast %cst_152 : f32 to vector<16x128xf32>
    %399 = arith.mulf %398, %397 : vector<16x128xf32>
    %400 = arith.mulf %387, %399 : vector<16x128xf32>
    %401 = arith.truncf %400 : vector<16x128xf32> to vector<16x128xbf16>
    %c2_153 = arith.constant 2 : index
    %c0_154 = arith.constant 0 : index
    %c0_155 = arith.constant 0 : index
    %402 = vector.load %arg5[%c2_153, %c0_154, %c0_155] : memref<4x128x32xbf16, #tpu.memory_space<vmem>>, vector<1x128x32xbf16>
    %403 = vector.shape_cast %402 : vector<1x128x32xbf16> to vector<128x32xbf16>
    %cst_156 = arith.constant dense<0.000000e+00> : vector<16x32xf32>
    %404 = tpu.matmul %401, %403, %cst_156 {dimension_numbers = #tpu.dot_dimension_numbers<[1], [0], [0], [1], [0, 0, 1, 1], [], []>} : vector<16x128xbf16>, vector<128x32xbf16>, vector<16x32xf32> -> vector<16x32xf32>
    %c2_157 = arith.constant 2 : index
    %c5_158 = arith.constant 5 : index
    %c0_159 = arith.constant 0 : index
    %405 = vector.load %arg6[%c2_157, %c5_158, %c0_159] : memref<4x8x128xf32, #tpu.memory_space<vmem>>, vector<1x1x32xf32>
    %406 = vector.shape_cast %405 : vector<1x1x32xf32> to vector<1x32xf32>
    %407 = vector.broadcast %406 : vector<1x32xf32> to vector<16x32xf32>
    %408 = arith.addf %404, %407 : vector<16x32xf32>
    %409 = arith.addf %353, %408 : vector<16x32xf32>
    %c3_160 = arith.constant 3 : index
    %c0_161 = arith.constant 0 : index
    %c0_162 = arith.constant 0 : index
    %410 = vector.load %arg6[%c3_160, %c0_161, %c0_162] : memref<4x8x128xf32, #tpu.memory_space<vmem>>, vector<1x1x32xf32>
    %411 = vector.shape_cast %410 : vector<1x1x32xf32> to vector<1x32xf32>
    %c3_163 = arith.constant 3 : index
    %c1_164 = arith.constant 1 : index
    %c0_165 = arith.constant 0 : index
    %412 = vector.load %arg6[%c3_163, %c1_164, %c0_165] : memref<4x8x128xf32, #tpu.memory_space<vmem>>, vector<1x1x32xf32>
    %413 = vector.shape_cast %412 : vector<1x1x32xf32> to vector<1x32xf32>
    %cst_166 = arith.constant dense<0.000000e+00> : vector<16xf32>
    %414 = vector.multi_reduction <add>, %409, %cst_166 [1] : vector<16x32xf32> to vector<16xf32>
    %415 = vector.shape_cast %414 : vector<16xf32> to vector<16x1xf32>
    %cst_167 = arith.constant 3.200000e+01 : f32
    %416 = vector.broadcast %cst_167 : f32 to vector<16x1xf32>
    %417 = arith.divf %415, %416 : vector<16x1xf32>
    %418 = vector.broadcast %417 : vector<16x1xf32> to vector<16x32xf32>
    %419 = arith.subf %409, %418 : vector<16x32xf32>
    %420 = arith.mulf %419, %419 : vector<16x32xf32>
    %cst_168 = arith.constant dense<0.000000e+00> : vector<16xf32>
    %421 = vector.multi_reduction <add>, %420, %cst_168 [1] : vector<16x32xf32> to vector<16xf32>
    %422 = vector.shape_cast %421 : vector<16xf32> to vector<16x1xf32>
    %cst_169 = arith.constant 3.200000e+01 : f32
    %423 = vector.broadcast %cst_169 : f32 to vector<16x1xf32>
    %424 = arith.divf %422, %423 : vector<16x1xf32>
    %425 = vector.broadcast %417 : vector<16x1xf32> to vector<16x32xf32>
    %426 = arith.subf %409, %425 : vector<16x32xf32>
    %cst_170 = arith.constant 9.99999974E-6 : f32
    %427 = vector.broadcast %cst_170 : f32 to vector<16x1xf32>
    %428 = arith.addf %424, %427 : vector<16x1xf32>
    %429 = math.rsqrt %428 : vector<16x1xf32>
    %430 = vector.broadcast %429 : vector<16x1xf32> to vector<16x32xf32>
    %431 = arith.mulf %426, %430 : vector<16x32xf32>
    %432 = vector.broadcast %411 : vector<1x32xf32> to vector<16x32xf32>
    %433 = arith.mulf %431, %432 : vector<16x32xf32>
    %434 = vector.broadcast %413 : vector<1x32xf32> to vector<16x32xf32>
    %435 = arith.addf %433, %434 : vector<16x32xf32>
    %436 = arith.truncf %435 : vector<16x32xf32> to vector<16x32xbf16>
    %c3_171 = arith.constant 3 : index
    %c0_172 = arith.constant 0 : index
    %c0_173 = arith.constant 0 : index
    %437 = vector.load %arg2[%c3_171, %c0_172, %c0_173] : memref<4x32x1536xbf16, #tpu.memory_space<vmem>>, vector<1x32x1536xbf16>
    %438 = vector.shape_cast %437 : vector<1x32x1536xbf16> to vector<32x1536xbf16>
    %cst_174 = arith.constant dense<0.000000e+00> : vector<16x1536xf32>
    %439 = tpu.matmul %436, %438, %cst_174 {dimension_numbers = #tpu.dot_dimension_numbers<[1], [0], [0], [1], [0, 0, 1, 1], [], []>} : vector<16x32xbf16>, vector<32x1536xbf16>, vector<16x1536xf32> -> vector<16x1536xf32>
    %440 = arith.truncf %439 : vector<16x1536xf32> to vector<16x1536xbf16>
    %441 = vector.extract_strided_slice %440 {offsets = [0, 0], sizes = [16, 512], strides = [1, 1]} : vector<16x1536xbf16> to vector<16x512xbf16>
    %442 = vector.extract_strided_slice %441 {offsets = [0, 0], sizes = [16, 128], strides = [1, 1]} : vector<16x512xbf16> to vector<16x128xbf16>
    %443 = vector.extract_strided_slice %441 {offsets = [0, 128], sizes = [16, 128], strides = [1, 1]} : vector<16x512xbf16> to vector<16x128xbf16>
    %444 = vector.extract_strided_slice %441 {offsets = [0, 256], sizes = [16, 128], strides = [1, 1]} : vector<16x512xbf16> to vector<16x128xbf16>
    %445 = vector.extract_strided_slice %441 {offsets = [0, 384], sizes = [16, 128], strides = [1, 1]} : vector<16x512xbf16> to vector<16x128xbf16>
    %446 = tpu.concatenate %442, %443, %444, %445 in 0 : vector<16x128xbf16>, vector<16x128xbf16>, vector<16x128xbf16>, vector<16x128xbf16> -> vector<64x128xbf16>
    %447 = vector.shape_cast %446 : vector<64x128xbf16> to vector<8x8x128xbf16>
    %448 = vector.extract_strided_slice %440 {offsets = [0, 512], sizes = [16, 512], strides = [1, 1]} : vector<16x1536xbf16> to vector<16x512xbf16>
    %449 = vector.extract_strided_slice %448 {offsets = [0, 0], sizes = [16, 128], strides = [1, 1]} : vector<16x512xbf16> to vector<16x128xbf16>
    %450 = vector.extract_strided_slice %448 {offsets = [0, 128], sizes = [16, 128], strides = [1, 1]} : vector<16x512xbf16> to vector<16x128xbf16>
    %451 = vector.extract_strided_slice %448 {offsets = [0, 256], sizes = [16, 128], strides = [1, 1]} : vector<16x512xbf16> to vector<16x128xbf16>
    %452 = vector.extract_strided_slice %448 {offsets = [0, 384], sizes = [16, 128], strides = [1, 1]} : vector<16x512xbf16> to vector<16x128xbf16>
    %453 = tpu.concatenate %449, %450, %451, %452 in 0 : vector<16x128xbf16>, vector<16x128xbf16>, vector<16x128xbf16>, vector<16x128xbf16> -> vector<64x128xbf16>
    %454 = vector.shape_cast %453 : vector<64x128xbf16> to vector<8x8x128xbf16>
    %455 = vector.extract_strided_slice %440 {offsets = [0, 1024], sizes = [16, 512], strides = [1, 1]} : vector<16x1536xbf16> to vector<16x512xbf16>
    %456 = vector.extract_strided_slice %455 {offsets = [0, 0], sizes = [16, 128], strides = [1, 1]} : vector<16x512xbf16> to vector<16x128xbf16>
    %457 = vector.extract_strided_slice %455 {offsets = [0, 128], sizes = [16, 128], strides = [1, 1]} : vector<16x512xbf16> to vector<16x128xbf16>
    %458 = vector.extract_strided_slice %455 {offsets = [0, 256], sizes = [16, 128], strides = [1, 1]} : vector<16x512xbf16> to vector<16x128xbf16>
    %459 = vector.extract_strided_slice %455 {offsets = [0, 384], sizes = [16, 128], strides = [1, 1]} : vector<16x512xbf16> to vector<16x128xbf16>
    %460 = tpu.concatenate %456, %457, %458, %459 in 0 : vector<16x128xbf16>, vector<16x128xbf16>, vector<16x128xbf16>, vector<16x128xbf16> -> vector<64x128xbf16>
    %461 = vector.shape_cast %460 : vector<64x128xbf16> to vector<8x8x128xbf16>
    "tpu.trace_start"() <{level = 10 : i32, message = "bqd,bkd->bqk"}> : () -> ()
    %cst_175 = arith.constant dense<0.000000e+00> : vector<8x8x8xf32>
    %462 = tpu.matmul %447, %454, %cst_175 {dimension_numbers = #tpu.dot_dimension_numbers<[2], [2], [1], [1], [0, 0, 0, 1, 1, 1], [0], [0]>} : vector<8x8x128xbf16>, vector<8x8x128xbf16>, vector<8x8x8xf32> -> vector<8x8x8xf32>
    "tpu.trace_stop"() : () -> ()
    %cst_176 = arith.constant dense<0xFF800000> : vector<8x8xf32>
    %463 = vector.multi_reduction <maximumf>, %462, %cst_176 [2] : vector<8x8x8xf32> to vector<8x8xf32>
    %464 = vector.shape_cast %463 : vector<8x8xf32> to vector<8x8x1xf32>
    %465 = vector.broadcast %464 : vector<8x8x1xf32> to vector<8x8x8xf32>
    %466 = arith.subf %462, %465 : vector<8x8x8xf32>
    %467 = math.exp %466 : vector<8x8x8xf32>
    %cst_177 = arith.constant dense<0.000000e+00> : vector<8x8xf32>
    %468 = vector.multi_reduction <add>, %467, %cst_177 [2] : vector<8x8x8xf32> to vector<8x8xf32>
    %469 = vector.shape_cast %468 : vector<8x8xf32> to vector<8x8x1xf32>
    %470 = tpu.reciprocal %469 {approx = true} : vector<8x8x1xf32> -> vector<8x8x1xf32>
    %471 = vector.broadcast %470 : vector<8x8x1xf32> to vector<8x8x8xf32>
    %472 = arith.mulf %467, %471 : vector<8x8x8xf32>
    %473 = arith.truncf %472 : vector<8x8x8xf32> to vector<8x8x8xbf16>
    "tpu.trace_start"() <{level = 10 : i32, message = "bqk,bkd->bqd"}> : () -> ()
    %cst_178 = arith.constant dense<0.000000e+00> : vector<8x8x128xf32>
    %474 = tpu.matmul %473, %461, %cst_178 {dimension_numbers = #tpu.dot_dimension_numbers<[2], [1], [1], [2], [0, 0, 0, 1, 1, 2], [0], [0]>} : vector<8x8x8xbf16>, vector<8x8x128xbf16>, vector<8x8x128xf32> -> vector<8x8x128xf32>
    "tpu.trace_stop"() : () -> ()
    %475 = arith.truncf %474 : vector<8x8x128xf32> to vector<8x8x128xbf16>
    %476 = vector.shape_cast %475 : vector<8x8x128xbf16> to vector<64x128xbf16>
    %477 = vector.extract_strided_slice %476 {offsets = [0, 0], sizes = [16, 128], strides = [1, 1]} : vector<64x128xbf16> to vector<16x128xbf16>
    %478 = vector.extract_strided_slice %476 {offsets = [16, 0], sizes = [16, 128], strides = [1, 1]} : vector<64x128xbf16> to vector<16x128xbf16>
    %479 = vector.extract_strided_slice %476 {offsets = [32, 0], sizes = [16, 128], strides = [1, 1]} : vector<64x128xbf16> to vector<16x128xbf16>
    %480 = vector.extract_strided_slice %476 {offsets = [48, 0], sizes = [16, 128], strides = [1, 1]} : vector<64x128xbf16> to vector<16x128xbf16>
    %481 = tpu.concatenate %477, %478, %479, %480 in 1 : vector<16x128xbf16>, vector<16x128xbf16>, vector<16x128xbf16>, vector<16x128xbf16> -> vector<16x512xbf16>
    %c3_179 = arith.constant 3 : index
    %c0_180 = arith.constant 0 : index
    %c0_181 = arith.constant 0 : index
    %482 = vector.load %arg3[%c3_179, %c0_180, %c0_181] : memref<4x512x32xbf16, #tpu.memory_space<vmem>>, vector<1x512x32xbf16>
    %483 = vector.shape_cast %482 : vector<1x512x32xbf16> to vector<512x32xbf16>
    %cst_182 = arith.constant dense<0.000000e+00> : vector<16x32xf32>
    %484 = tpu.matmul %481, %483, %cst_182 {dimension_numbers = #tpu.dot_dimension_numbers<[1], [0], [0], [1], [0, 0, 1, 1], [], []>} : vector<16x512xbf16>, vector<512x32xbf16>, vector<16x32xf32> -> vector<16x32xf32>
    %c3_183 = arith.constant 3 : index
    %c4_184 = arith.constant 4 : index
    %c0_185 = arith.constant 0 : index
    %485 = vector.load %arg6[%c3_183, %c4_184, %c0_185] : memref<4x8x128xf32, #tpu.memory_space<vmem>>, vector<1x1x32xf32>
    %486 = vector.shape_cast %485 : vector<1x1x32xf32> to vector<1x32xf32>
    %487 = vector.broadcast %486 : vector<1x32xf32> to vector<16x32xf32>
    %488 = arith.addf %484, %487 : vector<16x32xf32>
    %489 = arith.addf %409, %488 : vector<16x32xf32>
    %c3_186 = arith.constant 3 : index
    %c2_187 = arith.constant 2 : index
    %c0_188 = arith.constant 0 : index
    %490 = vector.load %arg6[%c3_186, %c2_187, %c0_188] : memref<4x8x128xf32, #tpu.memory_space<vmem>>, vector<1x1x32xf32>
    %491 = vector.shape_cast %490 : vector<1x1x32xf32> to vector<1x32xf32>
    %c3_189 = arith.constant 3 : index
    %c3_190 = arith.constant 3 : index
    %c0_191 = arith.constant 0 : index
    %492 = vector.load %arg6[%c3_189, %c3_190, %c0_191] : memref<4x8x128xf32, #tpu.memory_space<vmem>>, vector<1x1x32xf32>
    %493 = vector.shape_cast %492 : vector<1x1x32xf32> to vector<1x32xf32>
    %cst_192 = arith.constant dense<0.000000e+00> : vector<16xf32>
    %494 = vector.multi_reduction <add>, %489, %cst_192 [1] : vector<16x32xf32> to vector<16xf32>
    %495 = vector.shape_cast %494 : vector<16xf32> to vector<16x1xf32>
    %cst_193 = arith.constant 3.200000e+01 : f32
    %496 = vector.broadcast %cst_193 : f32 to vector<16x1xf32>
    %497 = arith.divf %495, %496 : vector<16x1xf32>
    %498 = vector.broadcast %497 : vector<16x1xf32> to vector<16x32xf32>
    %499 = arith.subf %489, %498 : vector<16x32xf32>
    %500 = arith.mulf %499, %499 : vector<16x32xf32>
    %cst_194 = arith.constant dense<0.000000e+00> : vector<16xf32>
    %501 = vector.multi_reduction <add>, %500, %cst_194 [1] : vector<16x32xf32> to vector<16xf32>
    %502 = vector.shape_cast %501 : vector<16xf32> to vector<16x1xf32>
    %cst_195 = arith.constant 3.200000e+01 : f32
    %503 = vector.broadcast %cst_195 : f32 to vector<16x1xf32>
    %504 = arith.divf %502, %503 : vector<16x1xf32>
    %505 = vector.broadcast %497 : vector<16x1xf32> to vector<16x32xf32>
    %506 = arith.subf %489, %505 : vector<16x32xf32>
    %cst_196 = arith.constant 9.99999974E-6 : f32
    %507 = vector.broadcast %cst_196 : f32 to vector<16x1xf32>
    %508 = arith.addf %504, %507 : vector<16x1xf32>
    %509 = math.rsqrt %508 : vector<16x1xf32>
    %510 = vector.broadcast %509 : vector<16x1xf32> to vector<16x32xf32>
    %511 = arith.mulf %506, %510 : vector<16x32xf32>
    %512 = vector.broadcast %491 : vector<1x32xf32> to vector<16x32xf32>
    %513 = arith.mulf %511, %512 : vector<16x32xf32>
    %514 = vector.broadcast %493 : vector<1x32xf32> to vector<16x32xf32>
    %515 = arith.addf %513, %514 : vector<16x32xf32>
    %516 = arith.truncf %515 : vector<16x32xf32> to vector<16x32xbf16>
    %c3_197 = arith.constant 3 : index
    %c0_198 = arith.constant 0 : index
    %c0_199 = arith.constant 0 : index
    %517 = vector.load %arg4[%c3_197, %c0_198, %c0_199] : memref<4x32x128xbf16, #tpu.memory_space<vmem>>, vector<1x32x128xbf16>
    %518 = vector.shape_cast %517 : vector<1x32x128xbf16> to vector<32x128xbf16>
    %cst_200 = arith.constant dense<0.000000e+00> : vector<16x128xf32>
    %519 = tpu.matmul %516, %518, %cst_200 {dimension_numbers = #tpu.dot_dimension_numbers<[1], [0], [0], [1], [0, 0, 1, 1], [], []>} : vector<16x32xbf16>, vector<32x128xbf16>, vector<16x128xf32> -> vector<16x128xf32>
    %c3_201 = arith.constant 3 : index
    %c6_202 = arith.constant 6 : index
    %c0_203 = arith.constant 0 : index
    %520 = vector.load %arg6[%c3_201, %c6_202, %c0_203] : memref<4x8x128xf32, #tpu.memory_space<vmem>>, vector<1x1x128xf32>
    %521 = vector.shape_cast %520 : vector<1x1x128xf32> to vector<1x128xf32>
    %522 = vector.broadcast %521 : vector<1x128xf32> to vector<16x128xf32>
    %523 = arith.addf %519, %522 : vector<16x128xf32>
    %524 = arith.mulf %523, %523 : vector<16x128xf32>
    %525 = arith.mulf %523, %524 : vector<16x128xf32>
    %cst_204 = arith.constant 4.471500e-02 : f32
    %526 = vector.broadcast %cst_204 : f32 to vector<16x128xf32>
    %527 = arith.mulf %526, %525 : vector<16x128xf32>
    %528 = arith.addf %523, %527 : vector<16x128xf32>
    %cst_205 = arith.constant 0.797884583 : f32
    %529 = vector.broadcast %cst_205 : f32 to vector<16x128xf32>
    %530 = arith.mulf %529, %528 : vector<16x128xf32>
    %531 = math.tanh %530 : vector<16x128xf32>
    %cst_206 = arith.constant 1.000000e+00 : f32
    %532 = vector.broadcast %cst_206 : f32 to vector<16x128xf32>
    %533 = arith.addf %532, %531 : vector<16x128xf32>
    %cst_207 = arith.constant 5.000000e-01 : f32
    %534 = vector.broadcast %cst_207 : f32 to vector<16x128xf32>
    %535 = arith.mulf %534, %533 : vector<16x128xf32>
    %536 = arith.mulf %523, %535 : vector<16x128xf32>
    %537 = arith.truncf %536 : vector<16x128xf32> to vector<16x128xbf16>
    %c3_208 = arith.constant 3 : index
    %c0_209 = arith.constant 0 : index
    %c0_210 = arith.constant 0 : index
    %538 = vector.load %arg5[%c3_208, %c0_209, %c0_210] : memref<4x128x32xbf16, #tpu.memory_space<vmem>>, vector<1x128x32xbf16>
    %539 = vector.shape_cast %538 : vector<1x128x32xbf16> to vector<128x32xbf16>
    %cst_211 = arith.constant dense<0.000000e+00> : vector<16x32xf32>
    %540 = tpu.matmul %537, %539, %cst_211 {dimension_numbers = #tpu.dot_dimension_numbers<[1], [0], [0], [1], [0, 0, 1, 1], [], []>} : vector<16x128xbf16>, vector<128x32xbf16>, vector<16x32xf32> -> vector<16x32xf32>
    %c3_212 = arith.constant 3 : index
    %c5_213 = arith.constant 5 : index
    %c0_214 = arith.constant 0 : index
    %541 = vector.load %arg6[%c3_212, %c5_213, %c0_214] : memref<4x8x128xf32, #tpu.memory_space<vmem>>, vector<1x1x32xf32>
    %542 = vector.shape_cast %541 : vector<1x1x32xf32> to vector<1x32xf32>
    %543 = vector.broadcast %542 : vector<1x32xf32> to vector<16x32xf32>
    %544 = arith.addf %540, %543 : vector<16x32xf32>
    %545 = arith.addf %489, %544 : vector<16x32xf32>
    %c0_215 = arith.constant 0 : index
    %c0_216 = arith.constant 0 : index
    %546 = vector.load %arg9[%c0_215, %c0_216] : memref<8x128xf32, #tpu.memory_space<vmem>>, vector<1x32xf32>
    %c1_217 = arith.constant 1 : index
    %c0_218 = arith.constant 0 : index
    %547 = vector.load %arg9[%c1_217, %c0_218] : memref<8x128xf32, #tpu.memory_space<vmem>>, vector<1x32xf32>
    %cst_219 = arith.constant dense<0.000000e+00> : vector<16xf32>
    %548 = vector.multi_reduction <add>, %545, %cst_219 [1] : vector<16x32xf32> to vector<16xf32>
    %549 = vector.shape_cast %548 : vector<16xf32> to vector<16x1xf32>
    %cst_220 = arith.constant 3.200000e+01 : f32
    %550 = vector.broadcast %cst_220 : f32 to vector<16x1xf32>
    %551 = arith.divf %549, %550 : vector<16x1xf32>
    %552 = vector.broadcast %551 : vector<16x1xf32> to vector<16x32xf32>
    %553 = arith.subf %545, %552 : vector<16x32xf32>
    %554 = arith.mulf %553, %553 : vector<16x32xf32>
    %cst_221 = arith.constant dense<0.000000e+00> : vector<16xf32>
    %555 = vector.multi_reduction <add>, %554, %cst_221 [1] : vector<16x32xf32> to vector<16xf32>
    %556 = vector.shape_cast %555 : vector<16xf32> to vector<16x1xf32>
    %cst_222 = arith.constant 3.200000e+01 : f32
    %557 = vector.broadcast %cst_222 : f32 to vector<16x1xf32>
    %558 = arith.divf %556, %557 : vector<16x1xf32>
    %559 = vector.broadcast %551 : vector<16x1xf32> to vector<16x32xf32>
    %560 = arith.subf %545, %559 : vector<16x32xf32>
    %cst_223 = arith.constant 9.99999974E-6 : f32
    %561 = vector.broadcast %cst_223 : f32 to vector<16x1xf32>
    %562 = arith.addf %558, %561 : vector<16x1xf32>
    %563 = math.rsqrt %562 : vector<16x1xf32>
    %564 = vector.broadcast %563 : vector<16x1xf32> to vector<16x32xf32>
    %565 = arith.mulf %560, %564 : vector<16x32xf32>
    %566 = vector.broadcast %546 : vector<1x32xf32> to vector<16x32xf32>
    %567 = arith.mulf %565, %566 : vector<16x32xf32>
    %568 = vector.broadcast %547 : vector<1x32xf32> to vector<16x32xf32>
    %569 = arith.addf %567, %568 : vector<16x32xf32>
    %cst_224 = arith.constant 0.000000e+00 : f32
    %570 = vector.broadcast %cst_224 : f32 to vector<16x96xf32>
    %571 = tpu.concatenate %569, %570 in 1 : vector<16x32xf32>, vector<16x96xf32> -> vector<16x128xf32>
    %572 = vector.shape_cast %571 : vector<16x128xf32> to vector<2x8x128xf32>
    %c0_225 = arith.constant 0 : index
    %c0_226 = arith.constant 0 : index
    %c0_227 = arith.constant 0 : index
    %573 = vector.load %arg10[%c0_225, %c0_226, %c0_227] : memref<2x8x128xf32, #tpu.memory_space<vmem>>, vector<2x8x128xf32>
    tpu.vector_store %arg10[%c0_225, %c0_226, %c0_227], %572 {strides = array<i32>} : memref<2x8x128xf32, #tpu.memory_space<vmem>>, vector<2x8x128xf32>,
    %574 = arith.truncf %569 : vector<16x32xf32> to vector<16x32xbf16>
    %c0_228 = arith.constant 0 : index
    %c0_229 = arith.constant 0 : index
    %575 = vector.load %arg7[%c0_228, %c0_229] : memref<32x128xbf16, #tpu.memory_space<vmem>>, vector<32x128xbf16>
    %cst_230 = arith.constant dense<0.000000e+00> : vector<16x128xf32>
    %576 = tpu.matmul %574, %575, %cst_230 {dimension_numbers = #tpu.dot_dimension_numbers<[1], [0], [0], [1], [0, 0, 1, 1], [], []>} : vector<16x32xbf16>, vector<32x128xbf16>, vector<16x128xf32> -> vector<16x128xf32>
    %577 = vector.shape_cast %576 : vector<16x128xf32> to vector<2x8x128xf32>
    %c0_231 = arith.constant 0 : index
    %c0_232 = arith.constant 0 : index
    %c0_233 = arith.constant 0 : index
    %578 = vector.load %arg11[%c0_231, %c0_232, %c0_233] : memref<2x8x128xf32, #tpu.memory_space<vmem>>, vector<2x8x128xf32>
    tpu.vector_store %arg11[%c0_231, %c0_232, %c0_233], %577 {strides = array<i32>} : memref<2x8x128xf32, #tpu.memory_space<vmem>>, vector<2x8x128xf32>,
    %579 = vector.shape_cast %569 : vector<16x32xf32> to vector<2x8x32xf32>
    %cst_234 = arith.constant dense<0.000000e+00> : vector<2x32xf32>
    %580 = vector.multi_reduction <add>, %579, %cst_234 [1] : vector<2x8x32xf32> to vector<2x32xf32>
    %cst_235 = arith.constant 8.000000e+00 : f32
    %581 = vector.broadcast %cst_235 : f32 to vector<2x32xf32>
    %582 = arith.divf %580, %581 : vector<2x32xf32>
    %583 = arith.truncf %582 : vector<2x32xf32> to vector<2x32xbf16>
    %c0_236 = arith.constant 0 : index
    %c0_237 = arith.constant 0 : index
    %584 = vector.load %arg8[%c0_236, %c0_237] : memref<32x128xbf16, #tpu.memory_space<vmem>>, vector<32x128xbf16>
    %cst_238 = arith.constant dense<0.000000e+00> : vector<2x128xf32>
    %585 = tpu.matmul %583, %584, %cst_238 {dimension_numbers = #tpu.dot_dimension_numbers<[1], [0], [0], [1], [0, 0, 1, 1], [], []>} : vector<2x32xbf16>, vector<32x128xbf16>, vector<2x128xf32> -> vector<2x128xf32>
    %c2_239 = arith.constant 2 : index
    %c0_240 = arith.constant 0 : index
    %586 = vector.load %arg9[%c2_239, %c0_240] : memref<8x128xf32, #tpu.memory_space<vmem>>, vector<1x128xf32>
    %587 = vector.broadcast %586 : vector<1x128xf32> to vector<2x128xf32>
    %588 = arith.addf %585, %587 : vector<2x128xf32>
    %589 = vector.shape_cast %588 : vector<2x128xf32> to vector<2x1x128xf32>
    %c0_241 = arith.constant 0 : index
    %c0_242 = arith.constant 0 : index
    %c0_243 = arith.constant 0 : index
    %590 = vector.load %arg12[%c0_241, %c0_242, %c0_243] : memref<2x1x128xf32, #tpu.memory_space<vmem>>, vector<2x1x128xf32>
    tpu.vector_store %arg12[%c0_241, %c0_242, %c0_243], %589 {strides = array<i32>} : memref<2x1x128xf32, #tpu.memory_space<vmem>>, vector<2x1x128xf32>,
    return
  }
  func.func @transform_0(%arg0: i32) -> (i32, i32, i32) {
    %c0_i32 = arith.constant 0 : i32
    %c0_i32_0 = arith.constant 0 : i32
    %c0_i32_1 = arith.constant 0 : i32
    return %arg0, %c0_i32, %c0_i32_0 : i32, i32, i32
  }
  func.func @transform_1(%arg0: i32) -> (i32, i32, i32) {
    %c0_i32 = arith.constant 0 : i32
    %c0_i32_0 = arith.constant 0 : i32
    %c0_i32_1 = arith.constant 0 : i32
    %c0_i32_2 = arith.constant 0 : i32
    return %c0_i32, %c0_i32_0, %c0_i32_1 : i32, i32, i32
  }
  func.func @transform_2(%arg0: i32) -> (i32, i32, i32) {
    %c0_i32 = arith.constant 0 : i32
    %c0_i32_0 = arith.constant 0 : i32
    %c0_i32_1 = arith.constant 0 : i32
    %c0_i32_2 = arith.constant 0 : i32
    return %c0_i32, %c0_i32_0, %c0_i32_1 : i32, i32, i32
  }
  func.func @transform_3(%arg0: i32) -> (i32, i32, i32) {
    %c0_i32 = arith.constant 0 : i32
    %c0_i32_0 = arith.constant 0 : i32
    %c0_i32_1 = arith.constant 0 : i32
    %c0_i32_2 = arith.constant 0 : i32
    return %c0_i32, %c0_i32_0, %c0_i32_1 : i32, i32, i32
  }
  func.func @transform_4(%arg0: i32) -> (i32, i32, i32) {
    %c0_i32 = arith.constant 0 : i32
    %c0_i32_0 = arith.constant 0 : i32
    %c0_i32_1 = arith.constant 0 : i32
    %c0_i32_2 = arith.constant 0 : i32
    return %c0_i32, %c0_i32_0, %c0_i32_1 : i32, i32, i32
  }
  func.func @transform_5(%arg0: i32) -> (i32, i32, i32) {
    %c0_i32 = arith.constant 0 : i32
    %c0_i32_0 = arith.constant 0 : i32
    %c0_i32_1 = arith.constant 0 : i32
    %c0_i32_2 = arith.constant 0 : i32
    return %c0_i32, %c0_i32_0, %c0_i32_1 : i32, i32, i32
  }
  func.func @transform_6(%arg0: i32) -> (i32, i32) {
    %c0_i32 = arith.constant 0 : i32
    %c0_i32_0 = arith.constant 0 : i32
    %c0_i32_1 = arith.constant 0 : i32
    return %c0_i32, %c0_i32_0 : i32, i32
  }
  func.func @transform_7(%arg0: i32) -> (i32, i32) {
    %c0_i32 = arith.constant 0 : i32
    %c0_i32_0 = arith.constant 0 : i32
    %c0_i32_1 = arith.constant 0 : i32
    return %c0_i32, %c0_i32_0 : i32, i32
  }
  func.func @transform_8(%arg0: i32) -> (i32, i32) {
    %c0_i32 = arith.constant 0 : i32
    %c0_i32_0 = arith.constant 0 : i32
    %c0_i32_1 = arith.constant 0 : i32
    return %c0_i32, %c0_i32_0 : i32, i32
  }
  func.func @transform_9(%arg0: i32) -> (i32, i32, i32) {
    %c0_i32 = arith.constant 0 : i32
    %c0_i32_0 = arith.constant 0 : i32
    %c0_i32_1 = arith.constant 0 : i32
    return %arg0, %c0_i32, %c0_i32_0 : i32, i32, i32
  }
  func.func @transform_10(%arg0: i32) -> (i32, i32, i32) {
    %c0_i32 = arith.constant 0 : i32
    %c0_i32_0 = arith.constant 0 : i32
    %c0_i32_1 = arith.constant 0 : i32
    return %arg0, %c0_i32, %c0_i32_0 : i32, i32, i32
  }
  func.func @transform_11(%arg0: i32) -> (i32, i32, i32) {
    %c0_i32 = arith.constant 0 : i32
    %c0_i32_0 = arith.constant 0 : i32
    %c0_i32_1 = arith.constant 0 : i32
    return %arg0, %c0_i32, %c0_i32_0 : i32, i32, i32
  }
}

</mosaic_0001>

<bundles_post_ra>
// kernel: temporal_model_forward.1
= control target key start
LH: loop header
LB: loop body
LE: loop exit
PB: predicated region body
PF: predicated region fallthrough
CT: control target
= control target key end

     0   :  { %17 = vsyncpa [#allocation3], 0  ;;  %vm42_vm0 = vcmask 261120   ;;  %s12195_s0 = inlined_call_operand.vmem [shape: f32[2,8,32], index: 0, kind: input, shape index: {}]   ;;  %s12196_s1 = inlined_call_operand.vmem [shape: bf16[4,32,1536], index: 1, kind: input, shape index: {}]   ;;  %s12197_s2 = inlined_call_operand.vmem [shape: bf16[4,512,32], index: 2, kind: input, shape index: {}]   ;;  %s12198_s3 = inlined_call_operand.vmem [shape: bf16[4,32,128], index: 3, kind: input, shape index: {}]   ;;  %s12199_s4 = inlined_call_operand.vmem [shape: bf16[4,128,32], index: 4, kind: input, shape index: {}]   ;;  %s12200_s5 = inlined_call_operand.vmem [shape: f32[4,8,128], index: 5, kind: input, shape index: {}]   ;;  %s12201_s6 = inlined_call_operand.vmem [shape: bf16[32,128], index: 6, kind: input, shape index: {}]   ;;  %s12202_s7 = inlined_call_operand.vmem [shape: bf16[32,128], index: 7, kind: input, shape index: {}]   ;;  %s12203_s8 = inlined_call_operand.vmem [shape: f32[8,128], index: 8, kind: input, shape index: {}]   ;;  %s12204_s9 = inlined_call_operand.hbm [shape: f32[2,8,128], index: 9, kind: output, shape index: {0}]   ;;  %s12205_s10 = inlined_call_operand.hbm [shape: f32[2,8,128], index: 10, kind: output, shape index: {1}]   ;;  %s12206_s11 = inlined_call_operand.hbm [shape: f32[2,1,128], index: 11, kind: output, shape index: {2}]  }
   0x1   :  { %v38_v0 = vld [vmem:[%s12195_s0] sm:$0xff]  ;;  %v39_v1 = vld [vmem:[%s12195_s0 + $0x8] sm:$0xff] }
   0x2   :  { %v43_v2 = vsel %vm42_vm0, %v38_v0, 0.0  ;;  %v46_v3 = vsel %vm42_vm0, %v39_v1, 0.0 }
   0x3   :  { %44 = vadd.xlane.f32.xlu0 %v43_v2 }
   0x7   :  { %47 = vadd.xlane.f32.xlu0 %v46_v3 }
  0x90   :  { %v45_v4 = vpop.xlane.xlu0 %44 }
  0x91   :  { %v50_v5 = vmul.f32 0.03125, %v45_v4 }
  0x93   :  { %v52_v6 = vsub.f32 %v38_v0, %v50_v5 }
  0x94   :  { %v48_v7 = vpop.xlane.xlu0 %47 }
  0x95   :  { %18 = vsyncpa [#allocation5], 0  ;;  %v51_v8 = vmul.f32 0.03125, %v48_v7  ;;  %v54_v9 = vmul.f32 %v52_v6, %v52_v6  ;;  %v9869_v14 = vld [vmem:[%s12196_s1 + $0x4] ss:$48 sps:$4 sm:$0xff]   ;;  %v10437_v22 = vmov 0  }
  0x96   :  { %v9871_v15 = vld [vmem:[%s12196_s1 + $0x14] ss:$48 sps:$4 sm:$0xff]   ;;  %v9873_v16 = vld [vmem:[%s12196_s1] ss:$48 sps:$4 sm:$0xff]   ;;  %230 = vmatprep.subr.bf16.mxu1 %v9869_v14  ;;  %262 = vmatprep.mubr.bf16.mxu1 %v10437_v22  ;;  %v9883_v23 = vld [vmem:[%s12196_s1 + $0xc] ss:$48 sps:$4 sm:$0xff]  }
  0x97   :  { %v53_v10 = vsub.f32 %v39_v1, %v51_v8  ;;  %v56_v11 = vsel %vm42_vm0, %v54_v9, 0.0  ;;  %v9874_v17 = vld [vmem:[%s12196_s1 + $0x10] ss:$48 sps:$4 sm:$0xff]   ;;  %316 = vmatprep.subr.bf16.mxu0 %v9871_v15  ;;  %231 = vmatpush1.bf16.msra.mxu1 %v9873_v16  ;;  %v9875_v18 = vld [vmem:[%s12196_s1 + $0x64] ss:$48 sps:$4 sm:$0xff]   ;;  %v10438_v56 = vmov 0.0  }
  0x98   :  { %57 = vadd.xlane.f32.xlu1 %v56_v11  ;;  %317 = vmatpush1.bf16.msra.mxu0 %v9874_v17  ;;  %v9877_v19 = vld [vmem:[%s12196_s1 + $0x74] ss:$48 sps:$4 sm:$0xff]   ;;  %v9879_v20 = vld [vmem:[%s12196_s1 + $0x60] ss:$48 sps:$4 sm:$0xff]   ;;  %v9881_v41 = vld [vmem:[%s12196_s1 + $0x8] ss:$48 sps:$4 sm:$0xff]  }
  0x99   :  { %v55_v12 = vmul.f32 %v53_v10, %v53_v10  ;;  %v9880_v21 = vld [vmem:[%s12196_s1 + $0x70] ss:$48 sps:$4 sm:$0xff]   ;;  %232 = vmatprep.subr.bf16.mxu1 %v9875_v18  ;;  %318 = vmatprep.subr.bf16.mxu0 %v9877_v19  ;;  %v9886_v24 = vld [vmem:[%s12196_s1 + $0x24] ss:$48 sps:$4 sm:$0xff]   ;;  %v9889_v44 = vld [vmem:[%s12196_s1 + $0x6c] ss:$48 sps:$4 sm:$0xff]  }
  0x9a   :  { %348 = vmatprep.mubr.bf16.mxu0 %v10437_v22  ;;  %v8056_v33 = vld [vmem:[%s12200_s5] ss:$0 sm:$0xff]  ;;  %v8057_v37 = vld [vmem:[%s12200_s5 + $0x1] ss:$0 sm:$0xff]  ;;  %v9892_v45 = vld [vmem:[%s12196_s1 + $0x84] ss:$48 sps:$4 sm:$0xff]  }
  0x9b   :  { %v59_v13 = vsel %vm42_vm0, %v55_v12, 0.0  ;;  %233 = vmatpush1.bf16.msra.mxu1 %v9879_v20  ;;  %v9884_v42 = vld [vmem:[%s12196_s1 + $0x20] ss:$48 sps:$4 sm:$0xff]   ;;  %v9887_v46 = vld [vmem:[%s12196_s1 + $0x68] ss:$48 sps:$4 sm:$0xff]   ;;  %vm10439_vm1 = vmmov 0  }
  0x9c   :  { %60 = vadd.xlane.f32.xlu1 %v59_v13  ;;  %319 = vmatpush1.bf16.msra.mxu0 %v9880_v21  ;;  %v9890_v47 = vld [vmem:[%s12196_s1 + $0x80] ss:$48 sps:$4 sm:$0xff]   ;;  %v9895_v48 = vld [vmem:[%s12196_s1 + $0x1c] ss:$48 sps:$4 sm:$0xff]   ;;  %v9893_v49 = vld [vmem:[%s12196_s1 + $0x18] ss:$48 sps:$4 sm:$0xff]  }
  0x9d   :  { %273 = vmatprep.subr.bf16.mxu1 %v9883_v23  ;;  %402 = vmatprep.subr.bf16.mxu0 %v9886_v24  ;;  %v9898_v50 = vld [vmem:[%s12196_s1 + $0x7c] ss:$48 sps:$4 sm:$0xff]   ;;  %v9896_v51 = vld [vmem:[%s12196_s1 + $0x78] ss:$48 sps:$4 sm:$0xff]   ;;  %vm996_vm2 = vcmask 1043456   ;;  %vm896_vm3 = vcmask 64512  }
  0x9e   :  { %v9901_v52 = vld [vmem:[%s12196_s1 + $0x2c] ss:$48 sps:$4 sm:$0xff]   ;;  %v9899_v53 = vld [vmem:[%s12196_s1 + $0x28] ss:$48 sps:$4 sm:$0xff]   ;;  %vm7924_vm4 = vcmask 1041409  }
  0x9f   :  { %v9904_v54 = vld [vmem:[%s12196_s1 + $0x8c] ss:$48 sps:$4 sm:$0xff]   ;;  %v9902_v55 = vld [vmem:[%s12196_s1 + $0x88] ss:$48 sps:$4 sm:$0xff]  }
 0x125   :  { %v58_v25 = vpop.xlane.xlu1 %57 }
 0x126   :  { %v62_v26 = vmul.f32 0.03125, %v58_v25 }
 0x128   :  { %v64_v27 = vadd.f32 1e-05, %v62_v26 }
 0x129   :  { %v61_v28 = vpop.xlane.xlu1 %60 }
 0x12a   :  { %10185 = vrsqrt.f32 %v64_v27  ;;  %v63_v29 = vmul.f32 0.03125, %v61_v28 }
 0x12c   :  { %v65_v30 = vadd.f32 1e-05, %v63_v29 }
 0x12e   :  { %10187 = vrsqrt.f32 %v65_v30 }
 0x134   :  { %v10186_v31 = vpop.eup %10185 }
 0x135   :  { %v68_v32 = vmul.f32 %v10186_v31, %v52_v6 }
 0x137   :  { %v74_v35 = vmul.f32 %v8056_v33, %v68_v32 }
 0x138   :  { %v10188_v34 = vpop.eup %10187 }
 0x139   :  { %v69_v36 = vmul.f32 %v10188_v34, %v53_v10  ;;  %v80_v39 = vadd.f32 %v8057_v37, %v74_v35 }
 0x13b   :  { %v75_v38 = vmul.f32 %v8056_v33, %v69_v36 }
 0x13d   :  { %v81_v40 = vadd.f32 %v8057_v37, %v75_v38 }
 0x13f   :  { %v82_v43 = vpack.c.bf16 %v81_v40, %v80_v39 }
 0x141   :  { %8082 = vmatmul.mubr.msk.bf16.vlgmr.msra.gmra.mrb[0].mxu1 %vm42_vm0, %v82_v43  ;;  %8084 = vmatmul.mubr.msk.bf16.vlgmr.msra.gmra.mrb[0].mxu0 %vm42_vm0, %v82_v43 }
 0x142   :  { %274 = vmatpush1.bf16.msra.mxu1 %v9881_v41  ;;  %403 = vmatpush1.bf16.msra.mxu0 %v9884_v42 }
 0x143   :  { %275 = vmatprep.subr.bf16.mxu1 %v9889_v44  ;;  %404 = vmatprep.subr.bf16.mxu0 %v9892_v45 }
 0x144   :  { %305 = vmatprep.mubr.bf16.mxu1 %v10437_v22  ;;  %434 = vmatprep.mubr.bf16.mxu0 %v10437_v22 }
 0x146   :  { %276 = vmatpush1.bf16.msra.mxu1 %v9887_v46  ;;  %405 = vmatpush1.bf16.msra.mxu0 %v9890_v47 }
 0x147   :  { %359 = vmatprep.subr.bf16.mxu1 %v9895_v48  ;;  %9346 = vmatprep.subr.bf16.mxu0 %v10438_v56 }
 0x149   :  { %8083 = vmatmul.mubr.msk.bf16.vlgmr.msra.gmra.mrb[4].mxu1 %vm42_vm0, %v82_v43  ;;  %8086 = vmatmul.mubr.msk.bf16.vlgmr.msra.gmra.mrb[4].mxu0 %vm42_vm0, %v82_v43 }
 0x14a   :  { %360 = vmatpush1.bf16.msra.mxu1 %v9893_v49  ;;  %391 = vmatprep.mubr.bf16.mxu1 %v10437_v22 }
 0x14b   :  { %361 = vmatprep.subr.bf16.mxu1 %v9898_v50  ;;  %9348 = vmatprep.mubr.msk.bf16.mxu0 %vm10439_vm1, %v10438_v56 }
 0x14e   :  { %362 = vmatpush1.bf16.msra.mxu1 %v9896_v51 }
 0x14f   :  { %445 = vmatprep.subr.bf16.mxu1 %v9901_v52 }
 0x151   :  { %8085 = vmatmul.mubr.msk.bf16.vlgmr.msra.gmra.mrb[8].mxu1 %vm42_vm0, %v82_v43 }
 0x152   :  { %446 = vmatpush1.bf16.msra.mxu1 %v9899_v53  ;;  %477 = vmatprep.mubr.bf16.mxu1 %v10437_v22 }
 0x153   :  { %447 = vmatprep.subr.bf16.mxu1 %v9904_v54 }
 0x156   :  { %448 = vmatpush1.bf16.msra.mxu1 %v9902_v55 }
 0x157   :  { %9352 = vmatprep.subr.bf16.mxu1 %v10438_v56 }
 0x159   :  { %8087 = vmatmul.mubr.msk.bf16.vlgmr.msra.gmra.mrb[12].mxu1 %vm42_vm0, %v82_v43 }
 0x15a   :  { %9354 = vmatprep.mubr.msk.bf16.mxu1 %vm10439_vm1, %v10438_v56 }
 0x214   :  { %v264_v57 = vpop.f32.mrb[0].mxu1  ;;  %v350_v58 = vpop.f32.mrb[0].mxu0 }
 0x215   :  { %v8884_v59 = vpack.c.bf16 %v350_v58, %v350_v58  ;;  %v266_v60 = vpop.f32.mrb[1].mxu1  ;;  %v352_v61 = vpop.f32.mrb[1].mxu0  ;;  %v8876_v3 = vpack.c.bf16 %v264_v57, %v264_v57 }
 0x216   :  { %v268_v62 = vpop.f32.mrb[2].mxu1  ;;  %v354_v63 = vpop.f32.mrb[2].mxu0  ;;  %v8886_v6 = vpack.c.bf16 %v352_v61, %v352_v61  ;;  %v8878_v15 = vpack.c.bf16 %v266_v60, %v266_v60 }
 0x217   :  { %v8885_v0 = vpack.c.bf16 %v354_v63, %v354_v63  ;;  %v270_v1 = vpop.f32.mrb[3].mxu1  ;;  %v356_v2 = vpop.f32.mrb[3].mxu0  ;;  %9347 = vmatpush3.bf16.xpose.msra.mxu0 %v8884_v59  ;;  %v8877_v9 = vpack.c.bf16 %v268_v62, %v268_v62 }
 0x218   :  { %9358 = vmatprep.subr.bf16.mxu0 %v10438_v56  ;;  %v8887_v12 = vpack.c.bf16 %v356_v2, %v356_v2  ;;  %v8879_v19 = vpack.c.bf16 %v270_v1, %v270_v1 }
 0x219   :  { %9353 = vmatpush3.bf16.xpose.msra.mxu1 %v8885_v0 }
 0x21a   :  { %9364 = vmatprep.subr.bf16.mxu1 %v10438_v56 }
 0x21c   :  { %v307_v4 = vpop.f32.mrb[4].mxu1  ;;  %v436_v5 = vpop.f32.mrb[4].mxu0 }
 0x21d   :  { %v309_v7 = vpop.f32.mrb[5].mxu1  ;;  %v10616_v8 = vpop.f32.mrb[5].mxu0  ;;  %v8880_v24 = vpack.c.bf16 %v307_v4, %v307_v4  ;;  %v8892_v32 = vpack.c.bf16 %v436_v5, %v436_v5 }
 0x21e   :  { %v311_v10 = vpop.f32.mrb[6].mxu1  ;;  %v440_v11 = vpop.f32.mrb[6].mxu0  ;;  %9349 = vmatmul.mubr.bf16.vlgmr.msra.gmra.mrb[8].mxu0 %v8876_v3  ;;  %v8882_v33 = vpack.c.bf16 %v309_v7, %v309_v7 }
 0x21f   :  { %v313_v13 = vpop.f32.mrb[7].mxu1  ;;  %v10618_v14 = vpop.f32.mrb[7].mxu0  ;;  %9359 = vmatpush3.bf16.xpose.msra.mxu0 %v8886_v6  ;;  %9360 = vmatprep.mubr.msk.bf16.mxu0 %vm10439_vm1, %v10438_v56  ;;  %v8881_v28 = vpack.c.bf16 %v311_v10, %v311_v10  ;;  %v8893_v34 = vpack.c.bf16 %v440_v11, %v440_v11  ;;  %v998_v35 = vsel %vm996_vm2, %v8892_v32, 0 }
 0x220   :  { %9355 = vmatmul.mubr.bf16.vlgmr.msra.gmra.mrb[16].mxu1 %v8877_v9  ;;  %9370 = vmatprep.subr.bf16.mxu0 %v10438_v56  ;;  %v8883_v36 = vpack.c.bf16 %v313_v13, %v313_v13 }
 0x221   :  { %9365 = vmatpush3.bf16.xpose.msra.mxu1 %v8887_v12  ;;  %9366 = vmatprep.mubr.msk.bf16.mxu1 %vm10439_vm1, %v10438_v56  ;;  %v1044_v37 = vsel %vm996_vm2, %v8893_v34, 0 }
 0x222   :  { %9376 = vmatprep.subr.bf16.mxu1 %v10438_v56 }
 0x224   :  { %v393_v16 = vpop.f32.mrb[8].mxu1 }
 0x225   :  { %v8888_v17 = vpack.c.bf16 %v393_v16, %v393_v16  ;;  %v395_v18 = vpop.f32.mrb[9].mxu1 }
 0x226   :  { %v397_v20 = vpop.f32.mrb[10].mxu1  ;;  %9361 = vmatmul.mubr.bf16.vlgmr.msra.gmra.mrb[12].mxu0 %v8878_v15  ;;  %v8890_v26 = vpack.c.bf16 %v395_v18, %v395_v18 }
 0x227   :  { %v8889_v21 = vpack.c.bf16 %v397_v20, %v397_v20  ;;  %v399_v23 = vpop.f32.mrb[11].mxu1  ;;  %9371 = vmatpush3.bf16.xpose.msra.mxu0 %v8888_v17  ;;  %9372 = vmatprep.mubr.msk.bf16.mxu0 %vm10439_vm1, %v10438_v56 }
 0x228   :  { %9367 = vmatmul.mubr.bf16.vlgmr.msra.gmra.mrb[20].mxu1 %v8879_v19  ;;  %9382 = vmatprep.subr.bf16.mxu0 %v10438_v56  ;;  %v8891_v30 = vpack.c.bf16 %v399_v23, %v399_v23 }
 0x229   :  { %9377 = vmatpush3.bf16.xpose.msra.mxu1 %v8889_v21  ;;  %9378 = vmatprep.mubr.msk.bf16.mxu1 %vm10439_vm1, %v10438_v56 }
 0x22a   :  { %9388 = vmatprep.subr.bf16.mxu1 %v10438_v56 }
 0x22c   :  { %v10632_v25 = vpop.f32.mrb[12].mxu1 }
 0x22d   :  { %v10634_v27 = vpop.f32.mrb[13].mxu1 }
 0x22e   :  { %v10636_v29 = vpop.f32.mrb[14].mxu1  ;;  %9373 = vmatmul.mubr.bf16.vlgmr.msra.gmra.mrb[16].mxu0 %v8880_v24 }
 0x22f   :  { %v10638_v31 = vpop.f32.mrb[15].mxu1  ;;  %9383 = vmatpush3.bf16.xpose.msra.mxu0 %v8890_v26  ;;  %9384 = vmatprep.mubr.msk.bf16.mxu0 %vm10439_vm1, %v10438_v56 }
 0x230   :  { %9379 = vmatmul.mubr.bf16.vlgmr.msra.gmra.mrb[24].mxu1 %v8881_v28  ;;  %9394 = vmatprep.subr.bf16.mxu0 %v10438_v56 }
 0x231   :  { %9389 = vmatpush3.bf16.xpose.msra.mxu1 %v8891_v30  ;;  %9390 = vmatprep.mubr.msk.bf16.mxu1 %vm10439_vm1, %v10438_v56 }
 0x232   :  { %9400 = vmatprep.subr.bf16.mxu1 %v10438_v56 }
 0x236   :  { %9385 = vmatmul.mubr.bf16.vlgmr.msra.gmra.mrb[20].mxu0 %v8882_v33 }
 0x237   :  { %9395 = vmatpush3.bf16.msra.mxu0 %v998_v35  ;;  %9396 = vmatprep.mubr.msk.bf16.mxu0 %vm10439_vm1, %v10438_v56 }
 0x238   :  { %9391 = vmatmul.mubr.bf16.vlgmr.msra.gmra.mrb[28].mxu1 %v8883_v36  ;;  %9406 = vmatprep.subr.bf16.mxu0 %v10438_v56 }
 0x239   :  { %9401 = vmatpush3.bf16.msra.mxu1 %v1044_v37  ;;  %9402 = vmatprep.mubr.msk.bf16.mxu1 %vm10439_vm1, %v10438_v56 }
 0x23a   :  { %9412 = vmatprep.subr.bf16.mxu1 %v10438_v56 }
 0x2f1   :  { %v610_v38 = vpop.f32.mrb[8].mxu0 }
 0x2f2   :  { %v9350_v39 = vpop.f32.mrb[9].mxu0  ;;  %v897_v40 = vsel %vm896_vm3, %v610_v38, -inf }
 0x2f3   :  { %898 = vmax.xlane.f32.xlu0 %v897_v40  ;;  %v613_v41 = vpop.f32.mrb[10].mxu0  ;;  %v650_v42 = vpop.f32.mrb[16].mxu1 }
 0x2f4   :  { %v9351_v43 = vpop.f32.mrb[11].mxu0  ;;  %v9356_v44 = vpop.f32.mrb[17].mxu1  ;;  %v900_v45 = vsel %vm896_vm3, %v650_v42, -inf }
 0x2f5   :  { %901 = vmax.xlane.f32.xlu1 %v900_v45  ;;  %v653_v46 = vpop.f32.mrb[18].mxu1 }
 0x2f6   :  { %v9357_v47 = vpop.f32.mrb[19].mxu1 }
 0x2f9   :  { %v690_v48 = vpop.f32.mrb[12].mxu0 }
 0x2fa   :  { %v9362_v49 = vpop.f32.mrb[13].mxu0  ;;  %v903_v50 = vsel %vm896_vm3, %v690_v48, -inf }
 0x2fb   :  { %904 = vmax.xlane.f32.xlu0 %v903_v50  ;;  %v693_v51 = vpop.f32.mrb[14].mxu0  ;;  %v730_v52 = vpop.f32.mrb[20].mxu1 }
 0x2fc   :  { %v9363_v53 = vpop.f32.mrb[15].mxu0  ;;  %v9368_v54 = vpop.f32.mrb[21].mxu1  ;;  %v906_v55 = vsel %vm896_vm3, %v730_v52, -inf }
 0x2fd   :  { %907 = vmax.xlane.f32.xlu1 %v906_v55  ;;  %v733_v57 = vpop.f32.mrb[22].mxu1 }
 0x2fe   :  { %v9369_v58 = vpop.f32.mrb[23].mxu1 }
 0x301   :  { %v770_v59 = vpop.f32.mrb[16].mxu0 }
 0x302   :  { %v9374_v60 = vpop.f32.mrb[17].mxu0  ;;  %v909_v61 = vsel %vm896_vm3, %v770_v59, -inf }
 0x303   :  { %910 = vmax.xlane.f32.xlu0 %v909_v61  ;;  %v773_v62 = vpop.f32.mrb[18].mxu0  ;;  %v810_v63 = vpop.f32.mrb[24].mxu1 }
 0x304   :  { %v9375_v0 = vpop.f32.mrb[19].mxu0  ;;  %v9380_v1 = vpop.f32.mrb[25].mxu1  ;;  %v912_v2 = vsel %vm896_vm3, %v810_v63, -inf }
 0x305   :  { %913 = vmax.xlane.f32.xlu1 %v912_v2  ;;  %v813_v3 = vpop.f32.mrb[26].mxu1 }
 0x306   :  { %v9381_v4 = vpop.f32.mrb[27].mxu1 }
 0x307   :  { %v8894_v4 = vpack.c.bf16 %v10616_v8, %v10616_v8 }
 0x309   :  { %v850_v5 = vpop.f32.mrb[20].mxu0 }
 0x30a   :  { %v9386_v6 = vpop.f32.mrb[21].mxu0  ;;  %v915_v7 = vsel %vm896_vm3, %v850_v5, -inf }
 0x30b   :  { %916 = vmax.xlane.f32.xlu0 %v915_v7  ;;  %v853_v9 = vpop.f32.mrb[22].mxu0  ;;  %v890_v10 = vpop.f32.mrb[28].mxu1  ;;  %v8895_v7 = vpack.c.bf16 %v10618_v14, %v10618_v14 }
 0x30c   :  { %v9387_v11 = vpop.f32.mrb[23].mxu0  ;;  %v9392_v12 = vpop.f32.mrb[29].mxu1  ;;  %v918_v13 = vsel %vm896_vm3, %v890_v10, -inf }
 0x30d   :  { %919 = vmax.xlane.f32.xlu1 %v918_v13  ;;  %v893_v15 = vpop.f32.mrb[30].mxu1  ;;  %v1090_v11 = vsel %vm996_vm2, %v8894_v4, 0  ;;  %v1136_v8 = vsel %vm996_vm2, %v8895_v7, 0  ;;  %v9928_v4 = vld [vmem:[%s12197_s2 + $0x98] sm:$0xff]   ;;  %v9931_v7 = vld [vmem:[%s12197_s2 + $0xe8] sm:$0xff]  }
 0x30e   :  { %v9393_v16 = vpop.f32.mrb[31].mxu1 }
 0x30f   :  { %v8896_v16 = vpack.c.bf16 %v10632_v25, %v10632_v25 }
 0x380   :  { %v899_v17 = vpop.xlane.xlu0 %898 }
 0x381   :  { %v921_v18 = vsub.f32 %v610_v38, %v899_v17 }
 0x382   :  { %v902_v19 = vpop.xlane.xlu1 %901 }
 0x383   :  { %v929_v20 = vmul.f32 1.442695, %v921_v18  ;;  %v922_v21 = vsub.f32 %v650_v42, %v902_v19  ;;  %v8897_v19 = vpack.c.bf16 %v10636_v29, %v10636_v29 }
 0x385   :  { %10189 = vpow2.f32 %v929_v20  ;;  %v931_v23 = vmul.f32 1.442695, %v922_v21  ;;  %v1228_v25 = vsel %vm996_vm2, %v8897_v19, 0 }
 0x387   :  { %10191 = vpow2.f32 %v931_v23  ;;  %v1182_v23 = vsel %vm996_vm2, %v8896_v16, 0 }
 0x388   :  { %v905_v24 = vpop.xlane.xlu0 %904 }
 0x389   :  { %v923_v26 = vsub.f32 %v690_v48, %v905_v24 }
 0x38a   :  { %v908_v28 = vpop.xlane.xlu1 %907 }
 0x38b   :  { %v933_v30 = vmul.f32 1.442695, %v923_v26  ;;  %v924_v32 = vsub.f32 %v730_v52, %v908_v28 }
 0x38d   :  { %10193 = vpow2.f32 %v933_v30  ;;  %v935_v33 = vmul.f32 1.442695, %v924_v32  ;;  %v8898_v30 = vpack.c.bf16 %v10634_v27, %v10634_v27 }
 0x38f   :  { %v10190_v34 = vpop.eup %10189  ;;  %10195 = vpow2.f32 %v935_v33 }
 0x390   :  { %v911_v35 = vpop.xlane.xlu0 %910  ;;  %v945_v36 = vsel %vm896_vm3, %v10190_v34, 0.0 }
 0x391   :  { %v10192_v37 = vpop.eup %10191  ;;  %v925_v38 = vsub.f32 %v770_v59, %v911_v35  ;;  %946 = vadd.xlane.f32.xlu0 %v945_v36 }
 0x392   :  { %v914_v39 = vpop.xlane.xlu1 %913  ;;  %v948_v40 = vsel %vm896_vm3, %v10192_v37, 0.0 }
 0x393   :  { %v937_v41 = vmul.f32 1.442695, %v925_v38  ;;  %v926_v42 = vsub.f32 %v810_v63, %v914_v39  ;;  %949 = vadd.xlane.f32.xlu1 %v948_v40  ;;  %v1274_v38 = vsel %vm996_vm2, %v8898_v30, 0  ;;  %v9914_v39 = vld [vmem:[%s12197_s2 + $0xc0] sm:$0xff]  }
 0x395   :  { %10197 = vpow2.f32 %v937_v41  ;;  %v939_v43 = vmul.f32 1.442695, %v926_v42 }
 0x397   :  { %v10194_v44 = vpop.eup %10193  ;;  %10199 = vpow2.f32 %v939_v43  ;;  %v9906_v43 = vld [vmem:[%s12197_s2] sm:$0xff]  }
 0x398   :  { %v917_v45 = vpop.xlane.xlu0 %916  ;;  %v951_v46 = vsel %vm896_vm3, %v10194_v44, 0.0 }
 0x399   :  { %v10196_v47 = vpop.eup %10195  ;;  %v927_v48 = vsub.f32 %v850_v5, %v917_v45  ;;  %952 = vadd.xlane.f32.xlu0 %v951_v46  ;;  %v9907_v46 = vld [vmem:[%s12197_s2 + $0x48] sm:$0xff]  }
 0x39a   :  { %v920_v49 = vpop.xlane.xlu1 %919  ;;  %v954_v50 = vsel %vm896_vm3, %v10196_v47, 0.0 }
 0x39b   :  { %v941_v51 = vmul.f32 1.442695, %v927_v48  ;;  %v928_v52 = vsub.f32 %v890_v10, %v920_v49  ;;  %955 = vadd.xlane.f32.xlu1 %v954_v50  ;;  %v9908_v49 = vld [vmem:[%s12197_s2 + $0x8] sm:$0xff]   ;;  %v9909_v50 = vld [vmem:[%s12197_s2 + $0x50] sm:$0xff]  }
 0x39d   :  { %10201 = vpow2.f32 %v941_v51  ;;  %v943_v53 = vmul.f32 1.442695, %v928_v52  ;;  %v9910_v51 = vld [vmem:[%s12197_s2 + $0x10] sm:$0xff]   ;;  %v9911_v52 = vld [vmem:[%s12197_s2 + $0x58] sm:$0xff]  }
 0x39f   :  { %v10666_v54 = vpop.eup %10197  ;;  %10203 = vpow2.f32 %v943_v53  ;;  %v9912_v53 = vld [vmem:[%s12197_s2 + $0x18] sm:$0xff]  }
 0x3a0   :  { %v957_v55 = vsel %vm896_vm3, %v10666_v54, 0.0 }
 0x3a1   :  { %v10670_v57 = vpop.eup %10199  ;;  %958 = vadd.xlane.f32.xlu0 %v957_v55  ;;  %v9915_v55 = vld [vmem:[%s12197_s2 + $0x20] sm:$0xff]  }
 0x3a2   :  { %v960_v58 = vsel %vm896_vm3, %v10670_v57, 0.0 }
 0x3a3   :  { %961 = vadd.xlane.f32.xlu1 %v960_v58  ;;  %v9918_v58 = vld [vmem:[%s12197_s2 + $0xc8] sm:$0xff]  }
 0x3a7   :  { %v10674_v59 = vpop.eup %10201 }
 0x3a8   :  { %v963_v60 = vsel %vm896_vm3, %v10674_v59, 0.0 }
 0x3a9   :  { %v10678_v61 = vpop.eup %10203  ;;  %964 = vadd.xlane.f32.xlu0 %v963_v60  ;;  %v9920_v60 = vld [vmem:[%s12197_s2 + $0x88] sm:$0xff]  }
 0x3aa   :  { %v966_v62 = vsel %vm896_vm3, %v10678_v61, 0.0 }
 0x3ab   :  { %967 = vadd.xlane.f32.xlu1 %v966_v62  ;;  %v9922_v62 = vld [vmem:[%s12197_s2 + $0xd0] sm:$0xff]  }
 0x41e   :  { %v947_v63 = vpop.xlane.xlu0 %946 }
 0x41f   :  { %10205 = vrcp.f32 %v947_v63  ;;  %v9923_v63 = vld [vmem:[%s12197_s2 + $0x30] sm:$0xff]  }
 0x420   :  { %v950_v0 = vpop.xlane.xlu1 %949 }
 0x421   :  { %10207 = vrcp.f32 %v950_v0  ;;  %v9924_v0 = vld [vmem:[%s12197_s2 + $0x90] sm:$0xff]  }
 0x426   :  { %v953_v1 = vpop.xlane.xlu0 %952 }
 0x427   :  { %10209 = vrcp.f32 %v953_v1  ;;  %v9925_v1 = vld [vmem:[%s12197_s2 + $0x78] sm:$0xff]  }
 0x428   :  { %v956_v2 = vpop.xlane.xlu1 %955 }
 0x429   :  { %v10206_v3 = vpop.eup %10205  ;;  %10211 = vrcp.f32 %v956_v2  ;;  %v9926_v2 = vld [vmem:[%s12197_s2 + $0xd8] sm:$0xff]  }
 0x42a   :  { %v977_v5 = vmul.f32 %v10206_v3, %v10190_v34  ;;  %v8899_v34 = vpack.c.bf16 %v10638_v31, %v10638_v31  ;;  %v9927_v3 = vld [vmem:[%s12197_s2 + $0x38] sm:$0xff]  }
 0x42b   :  { %v10208_v6 = vpop.eup %10207 }
 0x42c   :  { %v978_v9 = vmul.f32 %v10208_v6, %v10192_v37  ;;  %v985_v10 = vpack.c.bf16 %v977_v5, %v977_v5  ;;  %v9905_v37 = vld [vmem:[%s12197_s2 + $0x40] sm:$0xff]   ;;  %v1320_v31 = vsel %vm996_vm2, %v8899_v34, 0 }
 0x42d   :  { %v9929_v5 = vld [vmem:[%s12197_s2 + $0xe0] sm:$0xff]  }
 0x42e   :  { %9397 = vmatmul.mubr.msk.bf16.vlgmr.msra.gmra.mrb[24].mxu0 %vm896_vm3, %v985_v10  ;;  %v959_v12 = vpop.xlane.xlu0 %958  ;;  %v986_v13 = vpack.c.bf16 %v978_v9, %v978_v9  ;;  %v9930_v6 = vld [vmem:[%s12197_s2 + $0xa0] sm:$0xff]   ;;  %v9932_v9 = vld [vmem:[%s12197_s2 + $0xa8] sm:$0xff]   ;;  %v9933_v10 = vld [vmem:[%s12197_s2 + $0xf0] sm:$0xff]  }
 0x42f   :  { %9407 = vmatpush3.bf16.msra.mxu0 %v1090_v11  ;;  %10213 = vrcp.f32 %v959_v12  ;;  %9408 = vmatprep.mubr.msk.bf16.mxu0 %vm10439_vm1, %v10438_v56  ;;  %v9934_v11 = vld [vmem:[%s12197_s2 + $0xb0] sm:$0xff]   ;;  %v9935_v12 = vld [vmem:[%s12197_s2 + $0xf8] sm:$0xff]  }
 0x430   :  { %9403 = vmatmul.mubr.msk.bf16.vlgmr.msra.gmra.mrb[32].mxu1 %vm896_vm3, %v986_v13  ;;  %v962_v15 = vpop.xlane.xlu1 %961  ;;  %9418 = vmatprep.subr.bf16.mxu0 %v10438_v56  ;;  %v9936_v13 = vld [vmem:[%s12197_s2 + $0xb8] sm:$0xff]  }
 0x431   :  { %v10210_v14 = vpop.eup %10209  ;;  %9413 = vmatpush3.bf16.msra.mxu1 %v1136_v8  ;;  %10215 = vrcp.f32 %v962_v15  ;;  %9414 = vmatprep.mubr.msk.bf16.mxu1 %vm10439_vm1, %v10438_v56 }
 0x432   :  { %v979_v17 = vmul.f32 %v10210_v14, %v10194_v44  ;;  %9424 = vmatprep.subr.bf16.mxu1 %v10438_v56 }
 0x433   :  { %v10212_v18 = vpop.eup %10211 }
 0x434   :  { %v980_v20 = vmul.f32 %v10212_v18, %v10196_v47  ;;  %v987_v21 = vpack.c.bf16 %v979_v17, %v979_v17  ;;  %v9916_v47 = vld [vmem:[%s12197_s2 + $0x80] sm:$0xff]  }
 0x436   :  { %9409 = vmatmul.mubr.msk.bf16.vlgmr.msra.gmra.mrb[28].mxu0 %vm896_vm3, %v987_v21  ;;  %v965_v24 = vpop.xlane.xlu0 %964  ;;  %v988_v26 = vpack.c.bf16 %v980_v20, %v980_v20 }
 0x437   :  { %10217 = vrcp.f32 %v965_v24  ;;  %9419 = vmatpush3.bf16.msra.mxu0 %v1182_v23  ;;  %9420 = vmatprep.mubr.msk.bf16.mxu0 %vm10439_vm1, %v10438_v56 }
 0x438   :  { %9415 = vmatmul.mubr.msk.bf16.vlgmr.msra.gmra.mrb[36].mxu1 %vm896_vm3, %v988_v26  ;;  %v968_v28 = vpop.xlane.xlu1 %967  ;;  %9430 = vmatprep.subr.bf16.mxu0 %v10438_v56 }
 0x439   :  { %v10214_v29 = vpop.eup %10213  ;;  %9425 = vmatpush3.bf16.msra.mxu1 %v1228_v25  ;;  %10219 = vrcp.f32 %v968_v28  ;;  %9426 = vmatprep.mubr.msk.bf16.mxu1 %vm10439_vm1, %v10438_v56 }
 0x43a   :  { %v981_v32 = vmul.f32 %v10214_v29, %v10666_v54  ;;  %9436 = vmatprep.subr.bf16.mxu1 %v10438_v56  ;;  %v9913_v54 = vld [vmem:[%s12197_s2 + $0x60] sm:$0xff]  }
 0x43b   :  { %v10216_v33 = vpop.eup %10215 }
 0x43c   :  { %v982_v35 = vmul.f32 %v10216_v33, %v10670_v57  ;;  %v989_v36 = vpack.c.bf16 %v981_v32, %v981_v32  ;;  %v9917_v57 = vld [vmem:[%s12197_s2 + $0x68] sm:$0xff]  }
 0x43e   :  { %9421 = vmatmul.mubr.msk.bf16.vlgmr.msra.gmra.mrb[32].mxu0 %vm896_vm3, %v989_v36  ;;  %v990_v27 = vpack.c.bf16 %v982_v35, %v982_v35 }
 0x43f   :  { %9431 = vmatpush3.bf16.msra.mxu0 %v1274_v38  ;;  %9432 = vmatprep.mubr.msk.bf16.mxu0 %vm10439_vm1, %v10438_v56 }
 0x440   :  { %9427 = vmatmul.mubr.msk.bf16.vlgmr.msra.gmra.mrb[40].mxu1 %vm896_vm3, %v990_v27  ;;  %9020 = vmatprep.subr.bf16.mxu0 %v9905_v37 }
 0x441   :  { %v10218_v40 = vpop.eup %10217  ;;  %9437 = vmatpush3.bf16.msra.mxu1 %v1320_v31  ;;  %9438 = vmatprep.mubr.msk.bf16.mxu1 %vm10439_vm1, %v10438_v56 }
 0x442   :  { %v983_v41 = vmul.f32 %v10218_v40, %v10674_v59  ;;  %9042 = vmatprep.subr.bf16.mxu1 %v9914_v39  ;;  %v9919_v59 = vld [vmem:[%s12197_s2 + $0x28] sm:$0xff]  }
 0x443   :  { %v10220_v42 = vpop.eup %10219 }
 0x444   :  { %v984_v44 = vmul.f32 %v10220_v42, %v10678_v61  ;;  %v991_v45 = vpack.c.bf16 %v983_v41, %v983_v41  ;;  %v9921_v61 = vld [vmem:[%s12197_s2 + $0x70] sm:$0xff]  }
 0x446   :  { %9433 = vmatmul.mubr.msk.bf16.vlgmr.msra.gmra.mrb[36].mxu0 %vm896_vm3, %v991_v45  ;;  %v992_v48 = vpack.c.bf16 %v984_v44, %v984_v44 }
 0x447   :  { %9021 = vmatpush3.bf16.msra.mxu0 %v9906_v43 }
 0x448   :  { %9439 = vmatmul.mubr.msk.bf16.vlgmr.msra.gmra.mrb[44].mxu1 %vm896_vm3, %v992_v48  ;;  %9022 = vmatprep.subr.bf16.mxu0 %v9907_v46 }
 0x449   :  { %9043 = vmatpush3.bf16.msra.mxu1 %v9916_v47 }
 0x44a   :  { %9044 = vmatprep.subr.bf16.mxu1 %v9918_v58 }
 0x44b   :  { %9023 = vmatpush3.bf16.msra.mxu0 %v9908_v49 }
 0x44c   :  { %9024 = vmatprep.subr.bf16.mxu0 %v9909_v50 }
 0x44d   :  { %9045 = vmatpush3.bf16.msra.mxu1 %v9920_v60 }
 0x44e   :  { %9046 = vmatprep.subr.bf16.mxu1 %v9922_v62 }
 0x44f   :  { %9025 = vmatpush3.bf16.msra.mxu0 %v9910_v51 }
 0x450   :  { %9026 = vmatprep.subr.bf16.mxu0 %v9911_v52 }
 0x451   :  { %9047 = vmatpush3.bf16.msra.mxu1 %v9924_v0 }
 0x452   :  { %9048 = vmatprep.subr.bf16.mxu1 %v9926_v2 }
 0x453   :  { %9027 = vmatpush3.bf16.msra.mxu0 %v9912_v53 }
 0x454   :  { %9028 = vmatprep.subr.bf16.mxu0 %v9913_v54 }
 0x455   :  { %9049 = vmatpush3.bf16.msra.mxu1 %v9928_v4 }
 0x456   :  { %9050 = vmatprep.subr.bf16.mxu1 %v9929_v5 }
 0x457   :  { %9029 = vmatpush3.bf16.msra.mxu0 %v9915_v55 }
 0x458   :  { %9030 = vmatprep.subr.bf16.mxu0 %v9917_v57  ;;  %v8124_v57 = vld [vmem:[%s12200_s5 + $0x4] ss:$0 sm:$0xff] }
 0x459   :  { %9051 = vmatpush3.bf16.msra.mxu1 %v9930_v6  ;;  %v10366_v6 = vld [vmem:[%s12195_s0 + $0x8] sm:$0xff] }
 0x45a   :  { %9052 = vmatprep.subr.bf16.mxu1 %v9931_v7 }
 0x45b   :  { %9031 = vmatpush3.bf16.msra.mxu0 %v9919_v59 }
 0x45c   :  { %9032 = vmatprep.subr.bf16.mxu0 %v9921_v61 }
 0x45d   :  { %9053 = vmatpush3.bf16.msra.mxu1 %v9932_v9 }
 0x45e   :  { %9054 = vmatprep.subr.bf16.mxu1 %v9933_v10 }
 0x45f   :  { %9033 = vmatpush3.bf16.msra.mxu0 %v9923_v63 }
 0x460   :  { %9034 = vmatprep.subr.bf16.mxu0 %v9925_v1 }
 0x461   :  { %9055 = vmatpush3.bf16.msra.mxu1 %v9934_v11 }
 0x462   :  { %9056 = vmatprep.subr.bf16.mxu1 %v9935_v12 }
 0x463   :  { %9035 = vmatpush3.bf16.msra.mxu0 %v9927_v3  ;;  %v10365_v3 = vld [vmem:[%s12195_s0] sm:$0xff] }
 0x464   :  { %9442 = vmatprep.subr.bf16.mxu0 %v10438_v56 }
 0x465   :  { %9057 = vmatpush3.bf16.msra.mxu1 %v9936_v13 }
 0x466   :  { %9450 = vmatprep.subr.bf16.mxu1 %v10438_v56 }
 0x501   :  { %v1034_v8 = vpop.f32.mrb[24].mxu0 }
 0x502   :  { %v9398_v15 = vpop.f32.mrb[25].mxu0 }
 0x503   :  { %v1037_v14 = vpop.f32.mrb[26].mxu0  ;;  %v1080_v16 = vpop.f32.mrb[32].mxu1 }
 0x504   :  { %v8900_v17 = vpack.c.bf16 %v1080_v16, %v1034_v8  ;;  %v9399_v18 = vpop.f32.mrb[27].mxu0  ;;  %v9404_v19 = vpop.f32.mrb[33].mxu1 }
 0x505   :  { %v1083_v20 = vpop.f32.mrb[34].mxu1 }
 0x506   :  { %v9405_v21 = vpop.f32.mrb[35].mxu1  ;;  %v9937_v20 = vld [vmem:[%s12198_s3] sm:$0xff]  }
 0x507   :  { %v9938_v21 = vld [vmem:[%s12198_s3 + $0x8] sm:$0xff]  }
 0x509   :  { %v1126_v23 = vpop.f32.mrb[28].mxu0 }
 0x50a   :  { %v9410_v24 = vpop.f32.mrb[29].mxu0 }
 0x50b   :  { %v1129_v26 = vpop.f32.mrb[30].mxu0  ;;  %v1172_v25 = vpop.f32.mrb[36].mxu1 }
 0x50c   :  { %v8901_v28 = vpack.c.bf16 %v1172_v25, %v1126_v23  ;;  %v9411_v29 = vpop.f32.mrb[31].mxu0  ;;  %v9416_v30 = vpop.f32.mrb[37].mxu1 }
 0x50d   :  { %v1175_v32 = vpop.f32.mrb[38].mxu1 }
 0x50e   :  { %v9417_v33 = vpop.f32.mrb[39].mxu1  ;;  %1687 = vmatprep.mubr.bf16.mxu0 %v8901_v28  ;;  %v8157_v32 = vld [vmem:[%s12200_s5 + $0x2] ss:$0 sm:$0xff] }
 0x50f   :  { %1688 = vmatmul.mubr.bf16.vlgmr.msra.gmra.mrb[40].mxu0 %v8900_v17 }
 0x510   :  { %9446 = vmatprep.mubr.msk.bf16.mxu0 %vm10439_vm1, %v10438_v56  ;;  %9443 = vmatpush3.bf16.msra.mxu0 %v9937_v20 }
 0x511   :  { %v1218_v34 = vpop.f32.mrb[32].mxu0  ;;  %9444 = vmatprep.subr.bf16.mxu0 %v10438_v56 }
 0x512   :  { %v9422_v35 = vpop.f32.mrb[33].mxu0 }
 0x513   :  { %v1221_v36 = vpop.f32.mrb[34].mxu0  ;;  %v1264_v37 = vpop.f32.mrb[40].mxu1 }
 0x514   :  { %v8902_v38 = vpack.c.bf16 %v1264_v37, %v1218_v34  ;;  %v9423_v27 = vpop.f32.mrb[35].mxu0  ;;  %v9428_v39 = vpop.f32.mrb[41].mxu1  ;;  %9445 = vmatpush3.bf16.msra.mxu0 %v9938_v21  ;;  %v8158_v37 = vld [vmem:[%s12200_s5 + $0x3] ss:$0 sm:$0xff] }
 0x515   :  { %v1267_v31 = vpop.f32.mrb[42].mxu1 }
 0x516   :  { %v9429_v40 = vpop.f32.mrb[43].mxu1 }
 0x517   :  { %v9939_v40 = vld [vmem:[%s12199_s4] sm:$0xff]  }
 0x519   :  { %v1310_v41 = vpop.f32.mrb[36].mxu0 }
 0x51a   :  { %v9434_v42 = vpop.f32.mrb[37].mxu0 }
 0x51b   :  { %v1313_v43 = vpop.f32.mrb[38].mxu0  ;;  %v1356_v44 = vpop.f32.mrb[44].mxu1  ;;  %v9941_v42 = vld [vmem:[%s12199_s4 + $0x10] sm:$0xff]  }
 0x51c   :  { %v8903_v45 = vpack.c.bf16 %v1356_v44, %v1310_v41  ;;  %v9435_v46 = vpop.f32.mrb[39].mxu0  ;;  %v9440_v47 = vpop.f32.mrb[45].mxu1  ;;  %v9940_v41 = vld [vmem:[%s12199_s4 + $0x8] sm:$0xff]   ;;  %v9942_v43 = vld [vmem:[%s12199_s4 + $0x18] sm:$0xff]   ;;  %v9943_v44 = vld [vmem:[%s12199_s4 + $0x20] sm:$0xff]  }
 0x51d   :  { %v1359_v48 = vpop.f32.mrb[46].mxu1  ;;  %v9945_v46 = vld [vmem:[%s12199_s4 + $0x30] sm:$0xff]   ;;  %v9946_v47 = vld [vmem:[%s12199_s4 + $0x38] sm:$0xff]  }
 0x51e   :  { %v9441_v49 = vpop.f32.mrb[47].mxu1  ;;  %1728 = vmatprep.mubr.bf16.mxu1 %v8903_v45  ;;  %v9944_v45 = vld [vmem:[%s12199_s4 + $0x28] sm:$0xff]   ;;  %v8159_v48 = vld [vmem:[%s12200_s5 + $0x6] ss:$0 sm:$0xff] }
 0x51f   :  { %1729 = vmatmul.mubr.bf16.vlgmr.msra.gmra.mrb[48].mxu1 %v8902_v38 }
 0x520   :  { %9466 = vmatprep.mubr.msk.bf16.mxu1 %vm10439_vm1, %v10438_v56  ;;  %9451 = vmatpush3.bf16.msra.mxu1 %v9939_v40  ;;  %v9956_v40 = vld [vmem:[%s12196_s1 + $0x140] ss:$48 sps:$4 sm:$0xff]  }
 0x521   :  { %9452 = vmatprep.subr.bf16.mxu1 %v10438_v56 }
 0x524   :  { %9453 = vmatpush3.bf16.msra.mxu1 %v9940_v41  ;;  %v9961_v41 = vld [vmem:[%s12196_s1 + $0xcc] ss:$48 sps:$4 sm:$0xff]  }
 0x525   :  { %9454 = vmatprep.subr.bf16.mxu1 %v10438_v56 }
 0x528   :  { %9455 = vmatpush3.bf16.msra.mxu1 %v9941_v42 }
 0x529   :  { %9456 = vmatprep.subr.bf16.mxu1 %v10438_v56 }
 0x52c   :  { %9457 = vmatpush3.bf16.msra.mxu1 %v9942_v43 }
 0x52d   :  { %9458 = vmatprep.subr.bf16.mxu1 %v10438_v56 }
 0x530   :  { %9459 = vmatpush3.bf16.msra.mxu1 %v9943_v44 }
 0x531   :  { %9460 = vmatprep.subr.bf16.mxu1 %v10438_v56 }
 0x534   :  { %9461 = vmatpush3.bf16.msra.mxu1 %v9944_v45 }
 0x535   :  { %9462 = vmatprep.subr.bf16.mxu1 %v10438_v56 }
 0x538   :  { %9463 = vmatpush3.bf16.msra.mxu1 %v9945_v46 }
 0x539   :  { %9464 = vmatprep.subr.bf16.mxu1 %v10438_v56 }
 0x53c   :  { %9465 = vmatpush3.bf16.msra.mxu1 %v9946_v47 }
 0x5e2   :  { %v9036_v50 = vpop.f32.mrb[40].mxu0 }
 0x5e3   :  { %v9037_v51 = vpop.f32.mrb[41].mxu0 }
 0x5e4   :  { %v9038_v52 = vadd.f32 %v9037_v51, %v9036_v50  ;;  %v9039_v53 = vpop.f32.mrb[42].mxu0 }
 0x5e5   :  { %v9040_v54 = vpop.f32.mrb[43].mxu0 }
 0x5e6   :  { %v9041_v55 = vadd.f32 %v9040_v54, %v9039_v53  ;;  %v1690_v60 = vadd.f32 %v9038_v52, %v8124_v57 }
 0x5e8   :  { %v1693_v0 = vadd.f32 %v9041_v55, %v8124_v57 }
 0x5f2   :  { %v9058_v58 = vpop.f32.mrb[48].mxu1 }
 0x5f3   :  { %v9059_v59 = vpop.f32.mrb[49].mxu1 }
 0x5f4   :  { %v9060_v61 = vadd.f32 %v9059_v59, %v9058_v58  ;;  %v9061_v62 = vpop.f32.mrb[50].mxu1 }
 0x5f5   :  { %v9062_v63 = vpop.f32.mrb[51].mxu1 }
 0x5f6   :  { %v1731_v1 = vadd.f32 %v9060_v61, %v1690_v60  ;;  %v9063_v2 = vadd.f32 %v9062_v63, %v9061_v62 }
 0x5f8   :  { %v10836_v4 = vadd.f32 %v10365_v3, %v1731_v1  ;;  %v1734_v5 = vadd.f32 %v9063_v2, %v1693_v0 }
 0x5fa   :  { %v10841_v7 = vadd.f32 %v10366_v6, %v1734_v5  ;;  %v1741_v9 = vsel %vm42_vm0, %v10836_v4, 0.0 }
 0x5fb   :  { %1742 = vadd.xlane.f32.xlu0 %v1741_v9 }
 0x5fc   :  { %v1744_v10 = vsel %vm42_vm0, %v10841_v7, 0.0 }
 0x5fd   :  { %1745 = vadd.xlane.f32.xlu1 %v1744_v10 }
 0x688   :  { %v1743_v11 = vpop.xlane.xlu0 %1742 }
 0x689   :  { %v1747_v12 = vmul.f32 0.03125, %v1743_v11 }
 0x68a   :  { %v1746_v13 = vpop.xlane.xlu1 %1745 }
 0x68b   :  { %v1749_v8 = vsub.f32 %v10836_v4, %v1747_v12  ;;  %v1748_v15 = vmul.f32 0.03125, %v1746_v13 }
 0x68d   :  { %v1750_v14 = vsub.f32 %v10841_v7, %v1748_v15  ;;  %v1751_v16 = vmul.f32 %v1749_v8, %v1749_v8 }
 0x68f   :  { %v1753_v17 = vsel %vm42_vm0, %v1751_v16, 0.0  ;;  %v1752_v18 = vmul.f32 %v1750_v14, %v1750_v14 }
 0x690   :  { %1754 = vadd.xlane.f32.xlu0 %v1753_v17 }
 0x691   :  { %v1756_v19 = vsel %vm42_vm0, %v1752_v18, 0.0 }
 0x692   :  { %1757 = vadd.xlane.f32.xlu1 %v1756_v19 }
 0x71d   :  { %v1755_v23 = vpop.xlane.xlu0 %1754 }
 0x71e   :  { %v1759_v24 = vmul.f32 0.03125, %v1755_v23 }
 0x71f   :  { %v1758_v26 = vpop.xlane.xlu1 %1757 }
 0x720   :  { %v1761_v25 = vadd.f32 1e-05, %v1759_v24  ;;  %v1760_v28 = vmul.f32 0.03125, %v1758_v26 }
 0x722   :  { %10221 = vrsqrt.f32 %v1761_v25  ;;  %v1762_v29 = vadd.f32 1e-05, %v1760_v28 }
 0x724   :  { %10223 = vrsqrt.f32 %v1762_v29 }
 0x72c   :  { %v10222_v30 = vpop.eup %10221 }
 0x72d   :  { %v1765_v33 = vmul.f32 %v10222_v30, %v1749_v8  ;;  %v8163_v8 = vld [vmem:[%s12200_s5 + $0x5] ss:$0 sm:$0xff] }
 0x72e   :  { %v10224_v34 = vpop.eup %10223 }
 0x72f   :  { %v1771_v35 = vmul.f32 %v8157_v32, %v1765_v33  ;;  %v1766_v36 = vmul.f32 %v10224_v34, %v1750_v14 }
 0x731   :  { %v1772_v38 = vmul.f32 %v8157_v32, %v1766_v36  ;;  %v1777_v27 = vadd.f32 %v8158_v37, %v1771_v35  ;;  %v9949_v35 = vld [vmem:[%s12196_s1 + $0xc4] ss:$48 sps:$4 sm:$0xff]  }
 0x732   :  { %v9952_v36 = vld [vmem:[%s12196_s1 + $0xe4] ss:$48 sps:$4 sm:$0xff]   ;;  %2166 = vmatprep.subr.bf16.mxu0 %v9949_v35 }
 0x733   :  { %v1778_v39 = vadd.f32 %v8158_v37, %v1772_v38  ;;  %v9947_v37 = vld [vmem:[%s12196_s1 + $0xc0] ss:$48 sps:$4 sm:$0xff]   ;;  %2338 = vmatprep.subr.bf16.mxu1 %v9952_v36 }
 0x734   :  { %v9950_v38 = vld [vmem:[%s12196_s1 + $0xe0] ss:$48 sps:$4 sm:$0xff]  }
 0x735   :  { %v1779_v31 = vpack.c.bf16 %v1778_v39, %v1777_v27  ;;  %v9955_v27 = vld [vmem:[%s12196_s1 + $0x124] ss:$48 sps:$4 sm:$0xff]  }
 0x736   :  { %v9958_v39 = vld [vmem:[%s12196_s1 + $0x144] ss:$48 sps:$4 sm:$0xff]  }
 0x737   :  { %9447 = vmatmul.mubr.msk.bf16.vlgmr.msra.gmra.mrb[44].mxu0 %vm42_vm0, %v1779_v31  ;;  %v9953_v31 = vld [vmem:[%s12196_s1 + $0x120] ss:$48 sps:$4 sm:$0xff]  }
 0x738   :  { %2198 = vmatprep.mubr.bf16.mxu0 %v10437_v22  ;;  %2167 = vmatpush1.bf16.msra.mxu0 %v9947_v37 }
 0x739   :  { %2168 = vmatprep.subr.bf16.mxu0 %v9955_v27 }
 0x73c   :  { %2169 = vmatpush1.bf16.msra.mxu0 %v9953_v31 }
 0x73d   :  { %2209 = vmatprep.subr.bf16.mxu0 %v9961_v41 }
 0x80a   :  { %v1838_v49 = vpop.f32.mrb[44].mxu0 }
 0x80b   :  { %v1839_v50 = vadd.f32 %v8159_v48, %v1838_v49  ;;  %v9448_v51 = vpop.f32.mrb[45].mxu0  ;;  %v8174_v49 = vld [vmem:[%s12200_s5 + $0x8] ss:$0 sm:$0xff] }
 0x80c   :  { %v1841_v52 = vpop.f32.mrb[46].mxu0 }
 0x80d   :  { %v1845_v53 = vmul.f32 %v1839_v50, %v1839_v50  ;;  %v1842_v54 = vadd.f32 %v8159_v48, %v1841_v52  ;;  %v9449_v55 = vpop.f32.mrb[47].mxu0 }
 0x80f   :  { %v1847_v57 = vmul.f32 %v1845_v53, %v1839_v50  ;;  %v1846_v58 = vmul.f32 %v1842_v54, %v1842_v54 }
 0x811   :  { %v1849_v59 = vmul.f32 0.044715, %v1847_v57  ;;  %v1848_v60 = vmul.f32 %v1846_v58, %v1842_v54 }
 0x813   :  { %v1851_v61 = vadd.f32 %v1849_v59, %v1839_v50  ;;  %v1850_v62 = vmul.f32 0.044715, %v1848_v60  ;;  %v9959_v59 = vld [vmem:[%s12196_s1 + $0xc8] ss:$48 sps:$4 sm:$0xff]  }
 0x815   :  { %v1853_v63 = vmul.f32 0.7978846, %v1851_v61  ;;  %v1852_v0 = vadd.f32 %v1850_v62, %v1842_v54  ;;  %v9964_v61 = vld [vmem:[%s12196_s1 + $0x12c] ss:$48 sps:$4 sm:$0xff]   ;;  %v9962_v62 = vld [vmem:[%s12196_s1 + $0x128] ss:$48 sps:$4 sm:$0xff]  }
 0x817   :  { %10225 = vtanh.f32 %v1853_v63  ;;  %v1854_v1 = vmul.f32 0.7978846, %v1852_v0  ;;  %v9967_v63 = vld [vmem:[%s12196_s1 + $0xd4] ss:$48 sps:$4 sm:$0xff]   ;;  %v9965_v0 = vld [vmem:[%s12196_s1 + $0xd0] ss:$48 sps:$4 sm:$0xff]  }
 0x819   :  { %10227 = vtanh.f32 %v1854_v1  ;;  %v9970_v1 = vld [vmem:[%s12196_s1 + $0x134] ss:$48 sps:$4 sm:$0xff]  }
 0x821   :  { %v10226_v2 = vpop.eup %10225 }
 0x822   :  { %v1857_v3 = vadd.f32 1.0, %v10226_v2  ;;  %v9968_v2 = vld [vmem:[%s12196_s1 + $0x130] ss:$48 sps:$4 sm:$0xff]  }
 0x823   :  { %v10228_v5 = vpop.eup %10227 }
 0x824   :  { %v1859_v6 = vmul.f32 0.5, %v1857_v3  ;;  %v1858_v9 = vadd.f32 1.0, %v10228_v5  ;;  %v9973_v3 = vld [vmem:[%s12196_s1 + $0xdc] ss:$48 sps:$4 sm:$0xff]   ;;  %v9971_v5 = vld [vmem:[%s12196_s1 + $0xd8] ss:$48 sps:$4 sm:$0xff]  }
 0x826   :  { %v1860_v10 = vmul.f32 0.5, %v1858_v9  ;;  %v1861_v11 = vmul.f32 %v1859_v6, %v1839_v50  ;;  %v9976_v6 = vld [vmem:[%s12196_s1 + $0x13c] ss:$48 sps:$4 sm:$0xff]   ;;  %v9974_v9 = vld [vmem:[%s12196_s1 + $0x138] ss:$48 sps:$4 sm:$0xff]  }
 0x828   :  { %v1862_v12 = vmul.f32 %v1860_v10, %v1842_v54  ;;  %v8175_v54 = vld [vmem:[%s12200_s5 + $0x9] ss:$0 sm:$0xff]  ;;  %v9979_v10 = vld [vmem:[%s12196_s1 + $0xec] ss:$48 sps:$4 sm:$0xff]  }
 0x82a   :  { %v1863_v13 = vpack.c.bf16 %v1862_v12, %v1861_v11  ;;  %v9977_v11 = vld [vmem:[%s12196_s1 + $0xe8] ss:$48 sps:$4 sm:$0xff]   ;;  %v9982_v12 = vld [vmem:[%s12196_s1 + $0x14c] ss:$48 sps:$4 sm:$0xff]  }
 0x82c   :  { %9467 = vmatmul.mubr.bf16.vlgmr.msra.gmra.mrb[52].mxu1 %v1863_v13  ;;  %v9980_v13 = vld [vmem:[%s12196_s1 + $0x148] ss:$48 sps:$4 sm:$0xff]  }
 0x82d   :  { %2370 = vmatprep.mubr.bf16.mxu1 %v10437_v22  ;;  %2339 = vmatpush1.bf16.msra.mxu1 %v9950_v38 }
 0x82e   :  { %2340 = vmatprep.subr.bf16.mxu1 %v9958_v39 }
 0x831   :  { %2341 = vmatpush1.bf16.msra.mxu1 %v9956_v40 }
 0x832   :  { %9470 = vmatprep.subr.bf16.mxu1 %v10438_v56 }
 0x8ff   :  { %v1967_v15 = vpop.f32.mrb[52].mxu1 }
 0x900   :  { %v1968_v14 = vadd.f32 %v8163_v8, %v1967_v15  ;;  %v9468_v16 = vpop.f32.mrb[53].mxu1 }
 0x901   :  { %v1970_v17 = vpop.f32.mrb[54].mxu1 }
 0x902   :  { %v10905_v18 = vadd.f32 %v1968_v14, %v10836_v4  ;;  %v1971_v19 = vadd.f32 %v8163_v8, %v1970_v17  ;;  %v9469_v20 = vpop.f32.mrb[55].mxu1 }
 0x904   :  { %v10908_v21 = vadd.f32 %v1971_v19, %v10841_v7  ;;  %v1979_v23 = vsel %vm42_vm0, %v10905_v18, 0.0 }
 0x905   :  { %1980 = vadd.xlane.f32.xlu0 %v1979_v23 }
 0x906   :  { %v1982_v24 = vsel %vm42_vm0, %v10908_v21, 0.0 }
 0x907   :  { %1983 = vadd.xlane.f32.xlu1 %v1982_v24 }
 0x992   :  { %v1981_v26 = vpop.xlane.xlu0 %1980 }
 0x993   :  { %v1985_v25 = vmul.f32 0.03125, %v1981_v26 }
 0x994   :  { %v1984_v28 = vpop.xlane.xlu1 %1983 }
 0x995   :  { %v1987_v29 = vsub.f32 %v10905_v18, %v1985_v25  ;;  %v1986_v4 = vmul.f32 0.03125, %v1984_v28 }
 0x997   :  { %v1988_v30 = vsub.f32 %v10908_v21, %v1986_v4  ;;  %v1989_v32 = vmul.f32 %v1987_v29, %v1987_v29 }
 0x999   :  { %v1991_v7 = vsel %vm42_vm0, %v1989_v32, 0.0  ;;  %v1990_v33 = vmul.f32 %v1988_v30, %v1988_v30 }
 0x99a   :  { %1992 = vadd.xlane.f32.xlu0 %v1991_v7 }
 0x99b   :  { %v1994_v34 = vsel %vm42_vm0, %v1990_v33, 0.0 }
 0x99c   :  { %1995 = vadd.xlane.f32.xlu1 %v1994_v34 }
 0xa27   :  { %v1993_v42 = vpop.xlane.xlu0 %1992 }
 0xa28   :  { %v1997_v43 = vmul.f32 0.03125, %v1993_v42 }
 0xa29   :  { %v1996_v44 = vpop.xlane.xlu1 %1995 }
 0xa2a   :  { %v1999_v45 = vadd.f32 1e-05, %v1997_v43  ;;  %v1998_v46 = vmul.f32 0.03125, %v1996_v44 }
 0xa2c   :  { %10229 = vrsqrt.f32 %v1999_v45  ;;  %v2000_v47 = vadd.f32 1e-05, %v1998_v46 }
 0xa2e   :  { %10231 = vrsqrt.f32 %v2000_v47 }
 0xa36   :  { %v10230_v48 = vpop.eup %10229 }
 0xa37   :  { %v2003_v50 = vmul.f32 %v10230_v48, %v1987_v29 }
 0xa38   :  { %v10232_v51 = vpop.eup %10231 }
 0xa39   :  { %v2009_v52 = vmul.f32 %v8174_v49, %v2003_v50  ;;  %v2004_v53 = vmul.f32 %v10232_v51, %v1988_v30 }
 0xa3b   :  { %v2010_v55 = vmul.f32 %v8174_v49, %v2004_v53  ;;  %v2015_v57 = vadd.f32 %v8175_v54, %v2009_v52 }
 0xa3d   :  { %v2016_v58 = vadd.f32 %v8175_v54, %v2010_v55 }
 0xa3f   :  { %v2017_v60 = vpack.c.bf16 %v2016_v58, %v2015_v57 }
 0xa41   :  { %8224 = vmatmul.mubr.msk.bf16.vlgmr.msra.gmra.mrb[48].mxu0 %vm42_vm0, %v2017_v60  ;;  %8228 = vmatmul.mubr.msk.bf16.vlgmr.msra.gmra.mrb[56].mxu1 %vm42_vm0, %v2017_v60 }
 0xa42   :  { %2210 = vmatpush1.bf16.msra.mxu0 %v9959_v59  ;;  %2241 = vmatprep.mubr.bf16.mxu0 %v10437_v22 }
 0xa43   :  { %2211 = vmatprep.subr.bf16.mxu0 %v9964_v61  ;;  %9472 = vmatprep.mubr.msk.bf16.mxu1 %vm10439_vm1, %v10438_v56 }
 0xa46   :  { %2212 = vmatpush1.bf16.msra.mxu0 %v9962_v62 }
 0xa47   :  { %2252 = vmatprep.subr.bf16.mxu0 %v9967_v63 }
 0xa49   :  { %8225 = vmatmul.mubr.msk.bf16.vlgmr.msra.gmra.mrb[52].mxu0 %vm42_vm0, %v2017_v60 }
 0xa4a   :  { %2253 = vmatpush1.bf16.msra.mxu0 %v9965_v0  ;;  %2284 = vmatprep.mubr.bf16.mxu0 %v10437_v22 }
 0xa4b   :  { %2254 = vmatprep.subr.bf16.mxu0 %v9970_v1 }
 0xa4e   :  { %2255 = vmatpush1.bf16.msra.mxu0 %v9968_v2 }
 0xa4f   :  { %2295 = vmatprep.subr.bf16.mxu0 %v9973_v3 }
 0xa51   :  { %8226 = vmatmul.mubr.msk.bf16.vlgmr.msra.gmra.mrb[56].mxu0 %vm42_vm0, %v2017_v60 }
 0xa52   :  { %2296 = vmatpush1.bf16.msra.mxu0 %v9971_v5  ;;  %2327 = vmatprep.mubr.bf16.mxu0 %v10437_v22 }
 0xa53   :  { %2297 = vmatprep.subr.bf16.mxu0 %v9976_v6 }
 0xa56   :  { %2298 = vmatpush1.bf16.msra.mxu0 %v9974_v9 }
 0xa57   :  { %2381 = vmatprep.subr.bf16.mxu0 %v9979_v10 }
 0xa59   :  { %8227 = vmatmul.mubr.msk.bf16.vlgmr.msra.gmra.mrb[60].mxu0 %vm42_vm0, %v2017_v60 }
 0xa5a   :  { %2382 = vmatpush1.bf16.msra.mxu0 %v9977_v11  ;;  %2413 = vmatprep.mubr.bf16.mxu0 %v10437_v22 }
 0xa5b   :  { %2383 = vmatprep.subr.bf16.mxu0 %v9982_v12 }
 0xa5e   :  { %2384 = vmatpush1.bf16.msra.mxu0 %v9980_v13 }
 0xa5f   :  { %9476 = vmatprep.subr.bf16.mxu0 %v10438_v56 }
 0xa61   :  { %8229 = vmatmul.mubr.msk.bf16.vlgmr.msra.gmra.mrb[64].mxu0 %vm42_vm0, %v2017_v60 }
 0xa62   :  { %9478 = vmatprep.mubr.msk.bf16.mxu0 %vm10439_vm1, %v10438_v56 }
 0xb14   :  { %v2200_v8 = vpop.f32.mrb[48].mxu0  ;;  %v11012_v15 = vpop.f32.mrb[56].mxu1 }
 0xb15   :  { %v2202_v14 = vpop.f32.mrb[49].mxu0  ;;  %v11014_v16 = vpop.f32.mrb[57].mxu1  ;;  %v8904_v34 = vpack.c.bf16 %v2200_v8, %v2200_v8  ;;  %v8920_v52 = vpack.c.bf16 %v11012_v15, %v11012_v15 }
 0xb16   :  { %v2204_v17 = vpop.f32.mrb[50].mxu0  ;;  %v11016_v19 = vpop.f32.mrb[58].mxu1  ;;  %v8906_v40 = vpack.c.bf16 %v2202_v14, %v2202_v14 }
 0xb17   :  { %v2206_v20 = vpop.f32.mrb[51].mxu0  ;;  %v11018_v23 = vpop.f32.mrb[59].mxu1  ;;  %v8905_v38 = vpack.c.bf16 %v2204_v17, %v2204_v17  ;;  %v8921_v53 = vpack.c.bf16 %v11016_v19, %v11016_v19  ;;  %v2932_v55 = vsel %vm996_vm2, %v8920_v52, 0 }
 0xb18   :  { %v8907_v44 = vpack.c.bf16 %v2206_v20, %v2206_v20 }
 0xb19   :  { %v2978_v58 = vsel %vm996_vm2, %v8921_v53, 0 }
 0xb1c   :  { %v2243_v24 = vpop.f32.mrb[52].mxu0 }
 0xb1d   :  { %v2245_v26 = vpop.f32.mrb[53].mxu0  ;;  %v8908_v48 = vpack.c.bf16 %v2243_v24, %v2243_v24 }
 0xb1e   :  { %v2247_v25 = vpop.f32.mrb[54].mxu0  ;;  %v8910_v54 = vpack.c.bf16 %v2245_v26, %v2245_v26 }
 0xb1f   :  { %v11020_v28 = vpop.f32.mrb[55].mxu0  ;;  %v8909_v50 = vpack.c.bf16 %v2247_v25, %v2247_v25 }
 0xb20   :  { %v8911_v57 = vpack.c.bf16 %v11020_v28, %v11020_v28 }
 0xb24   :  { %v2286_v29 = vpop.f32.mrb[56].mxu0 }
 0xb25   :  { %v8912_v4 = vpack.c.bf16 %v2286_v29, %v2286_v29  ;;  %v2288_v30 = vpop.f32.mrb[57].mxu0 }
 0xb26   :  { %v2290_v32 = vpop.f32.mrb[58].mxu0  ;;  %v8914_v36 = vpack.c.bf16 %v2288_v30, %v2288_v30 }
 0xb27   :  { %v8913_v7 = vpack.c.bf16 %v2290_v32, %v2290_v32  ;;  %v2292_v33 = vpop.f32.mrb[59].mxu0  ;;  %9471 = vmatpush3.bf16.xpose.msra.mxu1 %v8912_v4 }
 0xb28   :  { %9482 = vmatprep.subr.bf16.mxu1 %v10438_v56  ;;  %v8915_v39 = vpack.c.bf16 %v2292_v33, %v2292_v33 }
 0xb29   :  { %9477 = vmatpush3.bf16.xpose.msra.mxu0 %v8913_v7 }
 0xb2a   :  { %9488 = vmatprep.subr.bf16.mxu0 %v10438_v56 }
 0xb2c   :  { %v2329_v35 = vpop.f32.mrb[60].mxu0 }
 0xb2d   :  { %v2331_v37 = vpop.f32.mrb[61].mxu0  ;;  %v8916_v42 = vpack.c.bf16 %v2329_v35, %v2329_v35 }
 0xb2e   :  { %v2333_v27 = vpop.f32.mrb[62].mxu0  ;;  %9473 = vmatmul.mubr.bf16.vlgmr.msra.gmra.mrb[60].mxu1 %v8904_v34  ;;  %v8918_v49 = vpack.c.bf16 %v2331_v37, %v2331_v37 }
 0xb2f   :  { %v2335_v31 = vpop.f32.mrb[63].mxu0  ;;  %9483 = vmatpush3.bf16.xpose.msra.mxu1 %v8914_v36  ;;  %9484 = vmatprep.mubr.msk.bf16.mxu1 %vm10439_vm1, %v10438_v56  ;;  %v8917_v46 = vpack.c.bf16 %v2333_v27, %v2333_v27 }
 0xb30   :  { %9479 = vmatmul.mubr.bf16.vlgmr.msra.gmra.mrb[68].mxu0 %v8905_v38  ;;  %9494 = vmatprep.subr.bf16.mxu1 %v10438_v56  ;;  %v8919_v51 = vpack.c.bf16 %v2335_v31, %v2335_v31 }
 0xb31   :  { %9489 = vmatpush3.bf16.xpose.msra.mxu0 %v8915_v39  ;;  %9490 = vmatprep.mubr.msk.bf16.mxu0 %vm10439_vm1, %v10438_v56 }
 0xb32   :  { %9500 = vmatprep.subr.bf16.mxu0 %v10438_v56 }
 0xb34   :  { %v11030_v41 = vpop.f32.mrb[64].mxu0 }
 0xb35   :  { %v11032_v43 = vpop.f32.mrb[65].mxu0 }
 0xb36   :  { %v11034_v45 = vpop.f32.mrb[66].mxu0  ;;  %9485 = vmatmul.mubr.bf16.vlgmr.msra.gmra.mrb[64].mxu1 %v8906_v40 }
 0xb37   :  { %v11036_v47 = vpop.f32.mrb[67].mxu0  ;;  %9495 = vmatpush3.bf16.xpose.msra.mxu1 %v8916_v42  ;;  %9496 = vmatprep.mubr.msk.bf16.mxu1 %vm10439_vm1, %v10438_v56 }
 0xb38   :  { %9491 = vmatmul.mubr.bf16.vlgmr.msra.gmra.mrb[72].mxu0 %v8907_v44  ;;  %9506 = vmatprep.subr.bf16.mxu1 %v10438_v56 }
 0xb39   :  { %9501 = vmatpush3.bf16.xpose.msra.mxu0 %v8917_v46  ;;  %9502 = vmatprep.mubr.msk.bf16.mxu0 %vm10439_vm1, %v10438_v56 }
 0xb3a   :  { %9512 = vmatprep.subr.bf16.mxu0 %v10438_v56 }
 0xb3e   :  { %9497 = vmatmul.mubr.bf16.vlgmr.msra.gmra.mrb[68].mxu1 %v8908_v48 }
 0xb3f   :  { %9507 = vmatpush3.bf16.xpose.msra.mxu1 %v8918_v49  ;;  %9508 = vmatprep.mubr.msk.bf16.mxu1 %vm10439_vm1, %v10438_v56 }
 0xb40   :  { %9503 = vmatmul.mubr.bf16.vlgmr.msra.gmra.mrb[76].mxu0 %v8909_v50  ;;  %9518 = vmatprep.subr.bf16.mxu1 %v10438_v56 }
 0xb41   :  { %9513 = vmatpush3.bf16.xpose.msra.mxu0 %v8919_v51  ;;  %9514 = vmatprep.mubr.msk.bf16.mxu0 %vm10439_vm1, %v10438_v56 }
 0xb42   :  { %9524 = vmatprep.subr.bf16.mxu0 %v10438_v56 }
 0xb46   :  { %9509 = vmatmul.mubr.bf16.vlgmr.msra.gmra.mrb[72].mxu1 %v8910_v54 }
 0xb47   :  { %9519 = vmatpush3.bf16.msra.mxu1 %v2932_v55  ;;  %9520 = vmatprep.mubr.msk.bf16.mxu1 %vm10439_vm1, %v10438_v56 }
 0xb48   :  { %9515 = vmatmul.mubr.bf16.vlgmr.msra.gmra.mrb[80].mxu0 %v8911_v57  ;;  %9530 = vmatprep.subr.bf16.mxu1 %v10438_v56 }
 0xb49   :  { %9525 = vmatpush3.bf16.msra.mxu0 %v2978_v58  ;;  %9526 = vmatprep.mubr.msk.bf16.mxu0 %vm10439_vm1, %v10438_v56 }
 0xb4a   :  { %9536 = vmatprep.subr.bf16.mxu0 %v10438_v56 }
 0xc01   :  { %v2546_v59 = vpop.f32.mrb[60].mxu1 }
 0xc02   :  { %v9474_v60 = vpop.f32.mrb[61].mxu1  ;;  %v2832_v61 = vsel %vm896_vm3, %v2546_v59, -inf }
 0xc03   :  { %2833 = vmax.xlane.f32.xlu0 %v2832_v61  ;;  %v2549_v62 = vpop.f32.mrb[62].mxu1  ;;  %v2586_v63 = vpop.f32.mrb[68].mxu0 }
 0xc04   :  { %v9475_v0 = vpop.f32.mrb[63].mxu1  ;;  %v9480_v1 = vpop.f32.mrb[69].mxu0  ;;  %v2835_v2 = vsel %vm896_vm3, %v2586_v63, -inf }
 0xc05   :  { %2836 = vmax.xlane.f32.xlu1 %v2835_v2  ;;  %v2589_v3 = vpop.f32.mrb[70].mxu0 }
 0xc06   :  { %v9481_v5 = vpop.f32.mrb[71].mxu0 }
 0xc09   :  { %v2626_v6 = vpop.f32.mrb[64].mxu1 }
 0xc0a   :  { %v9486_v9 = vpop.f32.mrb[65].mxu1  ;;  %v2838_v10 = vsel %vm896_vm3, %v2626_v6, -inf }
 0xc0b   :  { %2839 = vmax.xlane.f32.xlu0 %v2838_v10  ;;  %v2629_v11 = vpop.f32.mrb[66].mxu1  ;;  %v2666_v12 = vpop.f32.mrb[72].mxu0 }
 0xc0c   :  { %v9487_v13 = vpop.f32.mrb[67].mxu1  ;;  %v9492_v8 = vpop.f32.mrb[73].mxu0  ;;  %v2841_v15 = vsel %vm896_vm3, %v2666_v12, -inf }
 0xc0d   :  { %2842 = vmax.xlane.f32.xlu1 %v2841_v15  ;;  %v2669_v14 = vpop.f32.mrb[74].mxu0 }
 0xc0e   :  { %v9493_v17 = vpop.f32.mrb[75].mxu0 }
 0xc11   :  { %v2706_v19 = vpop.f32.mrb[68].mxu1 }
 0xc12   :  { %v9498_v20 = vpop.f32.mrb[69].mxu1  ;;  %v2844_v24 = vsel %vm896_vm3, %v2706_v19, -inf }
 0xc13   :  { %2845 = vmax.xlane.f32.xlu0 %v2844_v24  ;;  %v2709_v26 = vpop.f32.mrb[70].mxu1  ;;  %v2746_v25 = vpop.f32.mrb[76].mxu0 }
 0xc14   :  { %v9499_v28 = vpop.f32.mrb[71].mxu1  ;;  %v9504_v29 = vpop.f32.mrb[77].mxu0  ;;  %v2847_v4 = vsel %vm896_vm3, %v2746_v25, -inf }
 0xc15   :  { %2848 = vmax.xlane.f32.xlu1 %v2847_v4  ;;  %v2749_v30 = vpop.f32.mrb[78].mxu0 }
 0xc16   :  { %v9505_v32 = vpop.f32.mrb[79].mxu0 }
 0xc19   :  { %v2786_v7 = vpop.f32.mrb[72].mxu1 }
 0xc1a   :  { %v9510_v33 = vpop.f32.mrb[73].mxu1  ;;  %v2850_v34 = vsel %vm896_vm3, %v2786_v7, -inf }
 0xc1b   :  { %2851 = vmax.xlane.f32.xlu0 %v2850_v34  ;;  %v2789_v35 = vpop.f32.mrb[74].mxu1  ;;  %v2826_v36 = vpop.f32.mrb[80].mxu0  ;;  %v8922_v33 = vpack.c.bf16 %v11014_v16, %v11014_v16 }
 0xc1c   :  { %v9511_v37 = vpop.f32.mrb[75].mxu1  ;;  %v9516_v38 = vpop.f32.mrb[81].mxu0  ;;  %v2853_v27 = vsel %vm896_vm3, %v2826_v36, -inf }
 0xc1d   :  { %2854 = vmax.xlane.f32.xlu1 %v2853_v27  ;;  %v2829_v39 = vpop.f32.mrb[82].mxu0  ;;  %v3024_v27 = vsel %vm996_vm2, %v8922_v33, 0  ;;  %v10004_v33 = vld [vmem:[%s12197_s2 + $0x1d8] sm:$0xff]  }
 0xc1e   :  { %v9517_v31 = vpop.f32.mrb[83].mxu0 }
 0xc90   :  { %v2834_v40 = vpop.xlane.xlu0 %2833 }
 0xc91   :  { %v2856_v42 = vsub.f32 %v2546_v59, %v2834_v40 }
 0xc92   :  { %v2837_v44 = vpop.xlane.xlu1 %2836 }
 0xc93   :  { %v2864_v46 = vmul.f32 1.442695, %v2856_v42  ;;  %v2857_v48 = vsub.f32 %v2586_v63, %v2837_v44  ;;  %v8924_v42 = vpack.c.bf16 %v11030_v41, %v11030_v41 }
 0xc95   :  { %10233 = vpow2.f32 %v2864_v46  ;;  %v2866_v49 = vmul.f32 1.442695, %v2857_v48  ;;  %v8925_v48 = vpack.c.bf16 %v11034_v45, %v11034_v45 }
 0xc97   :  { %10235 = vpow2.f32 %v2866_v49  ;;  %v3162_v41 = vsel %vm996_vm2, %v8925_v48, 0 }
 0xc98   :  { %v2840_v50 = vpop.xlane.xlu0 %2839 }
 0xc99   :  { %v2858_v51 = vsub.f32 %v2626_v6, %v2840_v50 }
 0xc9a   :  { %v2843_v52 = vpop.xlane.xlu1 %2842 }
 0xc9b   :  { %v2868_v53 = vmul.f32 1.442695, %v2858_v51  ;;  %v2859_v54 = vsub.f32 %v2666_v12, %v2843_v52  ;;  %v3116_v51 = vsel %vm996_vm2, %v8924_v42, 0 }
 0xc9d   :  { %10237 = vpow2.f32 %v2868_v53  ;;  %v2870_v55 = vmul.f32 1.442695, %v2859_v54 }
 0xc9f   :  { %v10234_v57 = vpop.eup %10233  ;;  %10239 = vpow2.f32 %v2870_v55  ;;  %v8926_v55 = vpack.c.bf16 %v11032_v43, %v11032_v43 }
 0xca0   :  { %v2846_v58 = vpop.xlane.xlu0 %2845  ;;  %v2880_v60 = vsel %vm896_vm3, %v10234_v57, 0.0 }
 0xca1   :  { %v10236_v61 = vpop.eup %10235  ;;  %v2860_v59 = vsub.f32 %v2706_v19, %v2846_v58  ;;  %2881 = vadd.xlane.f32.xlu0 %v2880_v60  ;;  %v8927_v60 = vpack.c.bf16 %v11036_v47, %v11036_v47 }
 0xca2   :  { %v2849_v62 = vpop.xlane.xlu1 %2848  ;;  %v2883_v63 = vsel %vm896_vm3, %v10236_v61, 0.0 }
 0xca3   :  { %v2872_v0 = vmul.f32 1.442695, %v2860_v59  ;;  %v2861_v1 = vsub.f32 %v2746_v25, %v2849_v62  ;;  %2884 = vadd.xlane.f32.xlu1 %v2883_v63  ;;  %v9983_v62 = vld [vmem:[%s12197_s2 + $0x140] sm:$0xff]   ;;  %v3208_v63 = vsel %vm996_vm2, %v8926_v55, 0  ;;  %v3254_v47 = vsel %vm996_vm2, %v8927_v60, 0 }
 0xca5   :  { %10241 = vpow2.f32 %v2872_v0  ;;  %v2874_v2 = vmul.f32 1.442695, %v2861_v1  ;;  %v9992_v0 = vld [vmem:[%s12197_s2 + $0x1c0] sm:$0xff]  }
 0xca7   :  { %v10238_v3 = vpop.eup %10237  ;;  %10243 = vpow2.f32 %v2874_v2 }
 0xca8   :  { %v2852_v5 = vpop.xlane.xlu0 %2851  ;;  %v2886_v6 = vsel %vm896_vm3, %v10238_v3, 0.0 }
 0xca9   :  { %v10240_v9 = vpop.eup %10239  ;;  %v2862_v10 = vsub.f32 %v2786_v7, %v2852_v5  ;;  %2887 = vadd.xlane.f32.xlu0 %v2886_v6  ;;  %v9984_v5 = vld [vmem:[%s12197_s2 + $0x100] sm:$0xff]  }
 0xcaa   :  { %v2855_v11 = vpop.xlane.xlu1 %2854  ;;  %v2889_v12 = vsel %vm896_vm3, %v10240_v9, 0.0 }
 0xcab   :  { %v2876_v13 = vmul.f32 1.442695, %v2862_v10  ;;  %v2863_v8 = vsub.f32 %v2826_v36, %v2855_v11  ;;  %2890 = vadd.xlane.f32.xlu1 %v2889_v12  ;;  %v8923_v36 = vpack.c.bf16 %v11018_v23, %v11018_v23  ;;  %v9985_v10 = vld [vmem:[%s12197_s2 + $0x148] sm:$0xff]   ;;  %v9994_v11 = vld [vmem:[%s12197_s2 + $0x180] sm:$0xff]  }
 0xcad   :  { %10245 = vpow2.f32 %v2876_v13  ;;  %v2878_v15 = vmul.f32 1.442695, %v2863_v8  ;;  %v3070_v16 = vsel %vm996_vm2, %v8923_v36, 0  ;;  %v9986_v13 = vld [vmem:[%s12197_s2 + $0x108] sm:$0xff]   ;;  %v9987_v8 = vld [vmem:[%s12197_s2 + $0x150] sm:$0xff]   ;;  %v10007_v36 = vld [vmem:[%s12197_s2 + $0x1e0] sm:$0xff]  }
 0xcaf   :  { %v11076_v14 = vpop.eup %10241  ;;  %10247 = vpow2.f32 %v2878_v15  ;;  %v9988_v15 = vld [vmem:[%s12197_s2 + $0x110] sm:$0xff]  }
 0xcb0   :  { %v2892_v17 = vsel %vm896_vm3, %v11076_v14, 0.0 }
 0xcb1   :  { %v11080_v19 = vpop.eup %10243  ;;  %2893 = vadd.xlane.f32.xlu0 %v2892_v17  ;;  %v9990_v17 = vld [vmem:[%s12197_s2 + $0x118] sm:$0xff]  }
 0xcb2   :  { %v2895_v20 = vsel %vm896_vm3, %v11080_v19, 0.0 }
 0xcb3   :  { %2896 = vadd.xlane.f32.xlu1 %v2895_v20  ;;  %v9993_v20 = vld [vmem:[%s12197_s2 + $0x120] sm:$0xff]  }
 0xcb7   :  { %v11084_v24 = vpop.eup %10245 }
 0xcb8   :  { %v2898_v26 = vsel %vm896_vm3, %v11084_v24, 0.0 }
 0xcb9   :  { %v11088_v25 = vpop.eup %10247  ;;  %2899 = vadd.xlane.f32.xlu0 %v2898_v26  ;;  %v9996_v26 = vld [vmem:[%s12197_s2 + $0x1c8] sm:$0xff]  }
 0xcba   :  { %v2901_v28 = vsel %vm896_vm3, %v11088_v25, 0.0 }
 0xcbb   :  { %2902 = vadd.xlane.f32.xlu1 %v2901_v28  ;;  %v9998_v28 = vld [vmem:[%s12197_s2 + $0x188] sm:$0xff]  }
 0xd2e   :  { %v2882_v29 = vpop.xlane.xlu0 %2881 }
 0xd2f   :  { %10249 = vrcp.f32 %v2882_v29  ;;  %v9999_v29 = vld [vmem:[%s12197_s2 + $0x170] sm:$0xff]  }
 0xd30   :  { %v2885_v4 = vpop.xlane.xlu1 %2884 }
 0xd31   :  { %10251 = vrcp.f32 %v2885_v4  ;;  %v10000_v4 = vld [vmem:[%s12197_s2 + $0x1d0] sm:$0xff]  }
 0xd36   :  { %v2888_v30 = vpop.xlane.xlu0 %2887 }
 0xd37   :  { %10253 = vrcp.f32 %v2888_v30  ;;  %v10001_v30 = vld [vmem:[%s12197_s2 + $0x130] sm:$0xff]  }
 0xd38   :  { %v2891_v32 = vpop.xlane.xlu1 %2890 }
 0xd39   :  { %v10250_v7 = vpop.eup %10249  ;;  %10255 = vrcp.f32 %v2891_v32  ;;  %v10002_v32 = vld [vmem:[%s12197_s2 + $0x190] sm:$0xff]  }
 0xd3a   :  { %v2912_v34 = vmul.f32 %v10250_v7, %v10234_v57  ;;  %v10003_v7 = vld [vmem:[%s12197_s2 + $0x178] sm:$0xff]  }
 0xd3b   :  { %v10252_v35 = vpop.eup %10251 }
 0xd3c   :  { %v2913_v37 = vmul.f32 %v10252_v35, %v10236_v61  ;;  %v2920_v38 = vpack.c.bf16 %v2912_v34, %v2912_v34  ;;  %v10005_v34 = vld [vmem:[%s12197_s2 + $0x138] sm:$0xff]  }
 0xd3d   :  { %v10006_v35 = vld [vmem:[%s12197_s2 + $0x198] sm:$0xff]  }
 0xd3e   :  { %9521 = vmatmul.mubr.msk.bf16.vlgmr.msra.gmra.mrb[76].mxu1 %vm896_vm3, %v2920_v38  ;;  %v2894_v39 = vpop.xlane.xlu0 %2893  ;;  %v2921_v31 = vpack.c.bf16 %v2913_v37, %v2913_v37  ;;  %v10008_v37 = vld [vmem:[%s12197_s2 + $0x1a0] sm:$0xff]   ;;  %v10009_v38 = vld [vmem:[%s12197_s2 + $0x1e8] sm:$0xff]  }
 0xd3f   :  { %9531 = vmatpush3.bf16.msra.mxu1 %v3024_v27  ;;  %10257 = vrcp.f32 %v2894_v39  ;;  %9532 = vmatprep.mubr.msk.bf16.mxu1 %vm10439_vm1, %v10438_v56  ;;  %v10010_v27 = vld [vmem:[%s12197_s2 + $0x1a8] sm:$0xff]   ;;  %v10011_v39 = vld [vmem:[%s12197_s2 + $0x1f0] sm:$0xff]  }
 0xd40   :  { %9527 = vmatmul.mubr.msk.bf16.vlgmr.msra.gmra.mrb[84].mxu0 %vm896_vm3, %v2921_v31  ;;  %v2897_v40 = vpop.xlane.xlu1 %2896  ;;  %9542 = vmatprep.subr.bf16.mxu1 %v10438_v56  ;;  %v10012_v31 = vld [vmem:[%s12197_s2 + $0x1b0] sm:$0xff]  }
 0xd41   :  { %v10254_v23 = vpop.eup %10253  ;;  %9537 = vmatpush3.bf16.msra.mxu0 %v3070_v16  ;;  %10259 = vrcp.f32 %v2897_v40  ;;  %9538 = vmatprep.mubr.msk.bf16.mxu0 %vm10439_vm1, %v10438_v56  ;;  %v10013_v16 = vld [vmem:[%s12197_s2 + $0x1f8] sm:$0xff]  }
 0xd42   :  { %v2914_v44 = vmul.f32 %v10254_v23, %v10238_v3  ;;  %9548 = vmatprep.subr.bf16.mxu0 %v10438_v56  ;;  %v10014_v40 = vld [vmem:[%s12197_s2 + $0x1b8] sm:$0xff]  }
 0xd43   :  { %v10256_v46 = vpop.eup %10255 }
 0xd44   :  { %v2915_v49 = vmul.f32 %v10256_v46, %v10240_v9  ;;  %v2922_v50 = vpack.c.bf16 %v2914_v44, %v2914_v44 }
 0xd46   :  { %9533 = vmatmul.mubr.msk.bf16.vlgmr.msra.gmra.mrb[80].mxu1 %vm896_vm3, %v2922_v50  ;;  %v2900_v52 = vpop.xlane.xlu0 %2899  ;;  %v2923_v53 = vpack.c.bf16 %v2915_v49, %v2915_v49 }
 0xd47   :  { %10261 = vrcp.f32 %v2900_v52  ;;  %9543 = vmatpush3.bf16.msra.mxu1 %v3116_v51  ;;  %9544 = vmatprep.mubr.msk.bf16.mxu1 %vm10439_vm1, %v10438_v56 }
 0xd48   :  { %9539 = vmatmul.mubr.msk.bf16.vlgmr.msra.gmra.mrb[88].mxu0 %vm896_vm3, %v2923_v53  ;;  %v2903_v54 = vpop.xlane.xlu1 %2902  ;;  %9554 = vmatprep.subr.bf16.mxu1 %v10438_v56 }
 0xd49   :  { %v10258_v45 = vpop.eup %10257  ;;  %9549 = vmatpush3.bf16.msra.mxu0 %v3162_v41  ;;  %10263 = vrcp.f32 %v2903_v54  ;;  %9550 = vmatprep.mubr.msk.bf16.mxu0 %vm10439_vm1, %v10438_v56 }
 0xd4a   :  { %v2916_v57 = vmul.f32 %v10258_v45, %v11076_v14  ;;  %9560 = vmatprep.subr.bf16.mxu0 %v10438_v56  ;;  %v9989_v14 = vld [vmem:[%s12197_s2 + $0x158] sm:$0xff]  }
 0xd4b   :  { %v10260_v58 = vpop.eup %10259 }
 0xd4c   :  { %v2917_v61 = vmul.f32 %v10260_v58, %v11080_v19  ;;  %v2924_v59 = vpack.c.bf16 %v2916_v57, %v2916_v57  ;;  %v9991_v19 = vld [vmem:[%s12197_s2 + $0x160] sm:$0xff]  }
 0xd4e   :  { %9545 = vmatmul.mubr.msk.bf16.vlgmr.msra.gmra.mrb[84].mxu1 %vm896_vm3, %v2924_v59  ;;  %v2925_v43 = vpack.c.bf16 %v2917_v61, %v2917_v61 }
 0xd4f   :  { %9555 = vmatpush3.bf16.msra.mxu1 %v3208_v63  ;;  %9556 = vmatprep.mubr.msk.bf16.mxu1 %vm10439_vm1, %v10438_v56 }
 0xd50   :  { %9551 = vmatmul.mubr.msk.bf16.vlgmr.msra.gmra.mrb[92].mxu0 %vm896_vm3, %v2925_v43  ;;  %9108 = vmatprep.subr.bf16.mxu1 %v9983_v62 }
 0xd51   :  { %v10262_v1 = vpop.eup %10261  ;;  %9561 = vmatpush3.bf16.msra.mxu0 %v3254_v47  ;;  %9562 = vmatprep.mubr.msk.bf16.mxu0 %vm10439_vm1, %v10438_v56 }
 0xd52   :  { %v2918_v2 = vmul.f32 %v10262_v1, %v11084_v24  ;;  %9130 = vmatprep.subr.bf16.mxu0 %v9992_v0  ;;  %v9995_v24 = vld [vmem:[%s12197_s2 + $0x168] sm:$0xff]  }
 0xd53   :  { %v10264_v3 = vpop.eup %10263 }
 0xd54   :  { %v2919_v6 = vmul.f32 %v10264_v3, %v11088_v25  ;;  %v2926_v9 = vpack.c.bf16 %v2918_v2, %v2918_v2  ;;  %v9997_v25 = vld [vmem:[%s12197_s2 + $0x128] sm:$0xff]  }
 0xd56   :  { %9557 = vmatmul.mubr.msk.bf16.vlgmr.msra.gmra.mrb[88].mxu1 %vm896_vm3, %v2926_v9  ;;  %v2927_v12 = vpack.c.bf16 %v2919_v6, %v2919_v6 }
 0xd57   :  { %9109 = vmatpush3.bf16.msra.mxu1 %v9984_v5 }
 0xd58   :  { %9563 = vmatmul.mubr.msk.bf16.vlgmr.msra.gmra.mrb[96].mxu0 %vm896_vm3, %v2927_v12  ;;  %9110 = vmatprep.subr.bf16.mxu1 %v9985_v10 }
 0xd59   :  { %9131 = vmatpush3.bf16.msra.mxu0 %v9994_v11 }
 0xd5a   :  { %9132 = vmatprep.subr.bf16.mxu0 %v9996_v26 }
 0xd5b   :  { %9111 = vmatpush3.bf16.msra.mxu1 %v9986_v13 }
 0xd5c   :  { %9112 = vmatprep.subr.bf16.mxu1 %v9987_v8 }
 0xd5d   :  { %9133 = vmatpush3.bf16.msra.mxu0 %v9998_v28 }
 0xd5e   :  { %9134 = vmatprep.subr.bf16.mxu0 %v10000_v4 }
 0xd5f   :  { %9113 = vmatpush3.bf16.msra.mxu1 %v9988_v15 }
 0xd60   :  { %9114 = vmatprep.subr.bf16.mxu1 %v9989_v14 }
 0xd61   :  { %9135 = vmatpush3.bf16.msra.mxu0 %v10002_v32 }
 0xd62   :  { %9136 = vmatprep.subr.bf16.mxu0 %v10004_v33 }
 0xd63   :  { %9115 = vmatpush3.bf16.msra.mxu1 %v9990_v17 }
 0xd64   :  { %9116 = vmatprep.subr.bf16.mxu1 %v9991_v19 }
 0xd65   :  { %9137 = vmatpush3.bf16.msra.mxu0 %v10006_v35 }
 0xd66   :  { %9138 = vmatprep.subr.bf16.mxu0 %v10007_v36 }
 0xd67   :  { %9117 = vmatpush3.bf16.msra.mxu1 %v9993_v20 }
 0xd68   :  { %9118 = vmatprep.subr.bf16.mxu1 %v9995_v24 }
 0xd69   :  { %9139 = vmatpush3.bf16.msra.mxu0 %v10008_v37 }
 0xd6a   :  { %9140 = vmatprep.subr.bf16.mxu0 %v10009_v38 }
 0xd6b   :  { %9119 = vmatpush3.bf16.msra.mxu1 %v9997_v25  ;;  %v8331_v25 = vld [vmem:[%s12200_s5 + $0xc] ss:$0 sm:$0xff] }
 0xd6c   :  { %9120 = vmatprep.subr.bf16.mxu1 %v9999_v29 }
 0xd6d   :  { %9141 = vmatpush3.bf16.msra.mxu0 %v10010_v27 }
 0xd6e   :  { %9142 = vmatprep.subr.bf16.mxu0 %v10011_v39 }
 0xd6f   :  { %9121 = vmatpush3.bf16.msra.mxu1 %v10001_v30 }
 0xd70   :  { %9122 = vmatprep.subr.bf16.mxu1 %v10003_v7 }
 0xd71   :  { %9143 = vmatpush3.bf16.msra.mxu0 %v10012_v31 }
 0xd72   :  { %9144 = vmatprep.subr.bf16.mxu0 %v10013_v16 }
 0xd73   :  { %9123 = vmatpush3.bf16.msra.mxu1 %v10005_v34 }
 0xd74   :  { %9566 = vmatprep.subr.bf16.mxu1 %v10438_v56 }
 0xd75   :  { %9145 = vmatpush3.bf16.msra.mxu0 %v10014_v40 }
 0xd76   :  { %9574 = vmatprep.subr.bf16.mxu0 %v10438_v56 }
 0xe11   :  { %v2968_v23 = vpop.f32.mrb[76].mxu1 }
 0xe12   :  { %v9522_v42 = vpop.f32.mrb[77].mxu1 }
 0xe13   :  { %v2971_v44 = vpop.f32.mrb[78].mxu1  ;;  %v3014_v46 = vpop.f32.mrb[84].mxu0 }
 0xe14   :  { %v8928_v48 = vpack.c.bf16 %v3014_v46, %v2968_v23  ;;  %v9523_v49 = vpop.f32.mrb[79].mxu1  ;;  %v9528_v50 = vpop.f32.mrb[85].mxu0 }
 0xe15   :  { %v3017_v51 = vpop.f32.mrb[86].mxu0  ;;  %v10015_v49 = vld [vmem:[%s12198_s3 + $0x10] sm:$0xff]   ;;  %v10016_v50 = vld [vmem:[%s12198_s3 + $0x18] sm:$0xff]  }
 0xe16   :  { %v9529_v52 = vpop.f32.mrb[87].mxu0 }
 0xe19   :  { %v3060_v53 = vpop.f32.mrb[80].mxu1 }
 0xe1a   :  { %v9534_v41 = vpop.f32.mrb[81].mxu1 }
 0xe1b   :  { %v3063_v54 = vpop.f32.mrb[82].mxu1  ;;  %v3106_v45 = vpop.f32.mrb[88].mxu0 }
 0xe1c   :  { %v8929_v55 = vpack.c.bf16 %v3106_v45, %v3060_v53  ;;  %v9535_v57 = vpop.f32.mrb[83].mxu1  ;;  %v9540_v58 = vpop.f32.mrb[89].mxu0 }
 0xe1d   :  { %v3109_v60 = vpop.f32.mrb[90].mxu0  ;;  %v8366_v57 = vld [vmem:[%s12200_s5 + $0xa] ss:$0 sm:$0xff] }
 0xe1e   :  { %v9541_v61 = vpop.f32.mrb[91].mxu0  ;;  %3622 = vmatprep.mubr.bf16.mxu1 %v8929_v55 }
 0xe1f   :  { %3623 = vmatmul.mubr.bf16.vlgmr.msra.gmra.mrb[92].mxu1 %v8928_v48 }
 0xe20   :  { %9570 = vmatprep.mubr.msk.bf16.mxu1 %vm10439_vm1, %v10438_v56  ;;  %9567 = vmatpush3.bf16.msra.mxu1 %v10015_v49 }
 0xe21   :  { %v3152_v59 = vpop.f32.mrb[84].mxu1  ;;  %9568 = vmatprep.subr.bf16.mxu1 %v10438_v56 }
 0xe22   :  { %v9546_v62 = vpop.f32.mrb[85].mxu1 }
 0xe23   :  { %v3155_v63 = vpop.f32.mrb[86].mxu1  ;;  %v3198_v43 = vpop.f32.mrb[92].mxu0  ;;  %v8367_v62 = vld [vmem:[%s12200_s5 + $0xb] ss:$0 sm:$0xff] }
 0xe24   :  { %v8930_v0 = vpack.c.bf16 %v3198_v43, %v3152_v59  ;;  %v9547_v47 = vpop.f32.mrb[87].mxu1  ;;  %v9552_v1 = vpop.f32.mrb[93].mxu0  ;;  %9569 = vmatpush3.bf16.msra.mxu1 %v10016_v50 }
 0xe25   :  { %v3201_v2 = vpop.f32.mrb[94].mxu0  ;;  %v10017_v1 = vld [vmem:[%s12199_s4 + $0x40] sm:$0xff]  }
 0xe26   :  { %v9553_v3 = vpop.f32.mrb[95].mxu0  ;;  %v10018_v2 = vld [vmem:[%s12199_s4 + $0x48] sm:$0xff]  }
 0xe27   :  { %v10019_v3 = vld [vmem:[%s12199_s4 + $0x50] sm:$0xff]  }
 0xe29   :  { %v3244_v5 = vpop.f32.mrb[88].mxu1 }
 0xe2a   :  { %v9558_v6 = vpop.f32.mrb[89].mxu1 }
 0xe2b   :  { %v3247_v9 = vpop.f32.mrb[90].mxu1  ;;  %v3290_v10 = vpop.f32.mrb[96].mxu0  ;;  %v10021_v6 = vld [vmem:[%s12199_s4 + $0x60] sm:$0xff]  }
 0xe2c   :  { %v8931_v11 = vpack.c.bf16 %v3290_v10, %v3244_v5  ;;  %v9559_v12 = vpop.f32.mrb[91].mxu1  ;;  %v9564_v13 = vpop.f32.mrb[97].mxu0  ;;  %v10020_v5 = vld [vmem:[%s12199_s4 + $0x58] sm:$0xff]   ;;  %v10022_v9 = vld [vmem:[%s12199_s4 + $0x68] sm:$0xff]   ;;  %v10023_v10 = vld [vmem:[%s12199_s4 + $0x70] sm:$0xff]  }
 0xe2d   :  { %v3293_v8 = vpop.f32.mrb[98].mxu0  ;;  %v8373_v12 = vld [vmem:[%s12200_s5 + $0xe] ss:$0 sm:$0xff] }
 0xe2e   :  { %v9565_v15 = vpop.f32.mrb[99].mxu0  ;;  %3663 = vmatprep.mubr.bf16.mxu0 %v8931_v11  ;;  %v10024_v11 = vld [vmem:[%s12199_s4 + $0x78] sm:$0xff]  }
 0xe2f   :  { %3664 = vmatmul.mubr.bf16.vlgmr.msra.gmra.mrb[100].mxu0 %v8930_v0 }
 0xe30   :  { %9590 = vmatprep.mubr.msk.bf16.mxu0 %vm10439_vm1, %v10438_v56  ;;  %9575 = vmatpush3.bf16.msra.mxu0 %v10017_v1  ;;  %v10034_v1 = vld [vmem:[%s12196_s1 + $0x200] ss:$48 sps:$4 sm:$0xff]  }
 0xe31   :  { %9576 = vmatprep.subr.bf16.mxu0 %v10438_v56 }
 0xe34   :  { %9577 = vmatpush3.bf16.msra.mxu0 %v10018_v2  ;;  %v10039_v2 = vld [vmem:[%s12196_s1 + $0x18c] ss:$48 sps:$4 sm:$0xff]  }
 0xe35   :  { %9578 = vmatprep.subr.bf16.mxu0 %v10438_v56 }
 0xe38   :  { %9579 = vmatpush3.bf16.msra.mxu0 %v10019_v3 }
 0xe39   :  { %9580 = vmatprep.subr.bf16.mxu0 %v10438_v56 }
 0xe3c   :  { %9581 = vmatpush3.bf16.msra.mxu0 %v10020_v5 }
 0xe3d   :  { %9582 = vmatprep.subr.bf16.mxu0 %v10438_v56 }
 0xe40   :  { %9583 = vmatpush3.bf16.msra.mxu0 %v10021_v6 }
 0xe41   :  { %9584 = vmatprep.subr.bf16.mxu0 %v10438_v56 }
 0xe44   :  { %9585 = vmatpush3.bf16.msra.mxu0 %v10022_v9 }
 0xe45   :  { %9586 = vmatprep.subr.bf16.mxu0 %v10438_v56 }
 0xe48   :  { %9587 = vmatpush3.bf16.msra.mxu0 %v10023_v10 }
 0xe49   :  { %9588 = vmatprep.subr.bf16.mxu0 %v10438_v56 }
 0xe4c   :  { %9589 = vmatpush3.bf16.msra.mxu0 %v10024_v11 }
 0xef2   :  { %v9124_v14 = vpop.f32.mrb[92].mxu1 }
 0xef3   :  { %v9125_v17 = vpop.f32.mrb[93].mxu1 }
 0xef4   :  { %v9126_v19 = vadd.f32 %v9125_v17, %v9124_v14  ;;  %v9127_v20 = vpop.f32.mrb[94].mxu1 }
 0xef5   :  { %v9128_v24 = vpop.f32.mrb[95].mxu1 }
 0xef6   :  { %v9129_v26 = vadd.f32 %v9128_v24, %v9127_v20  ;;  %v3625_v4 = vadd.f32 %v9126_v19, %v8331_v25 }
 0xef8   :  { %v3628_v33 = vadd.f32 %v9129_v26, %v8331_v25 }
 0xf02   :  { %v9146_v28 = vpop.f32.mrb[100].mxu0 }
 0xf03   :  { %v9147_v29 = vpop.f32.mrb[101].mxu0 }
 0xf04   :  { %v9148_v30 = vadd.f32 %v9147_v29, %v9146_v28  ;;  %v9149_v32 = vpop.f32.mrb[102].mxu0 }
 0xf05   :  { %v9150_v7 = vpop.f32.mrb[103].mxu0 }
 0xf06   :  { %v3666_v34 = vadd.f32 %v9148_v30, %v3625_v4  ;;  %v9151_v35 = vadd.f32 %v9150_v7, %v9149_v32 }
 0xf08   :  { %v11244_v36 = vadd.f32 %v3666_v34, %v10905_v18  ;;  %v3669_v37 = vadd.f32 %v9151_v35, %v3628_v33 }
 0xf0a   :  { %v11247_v38 = vadd.f32 %v3669_v37, %v10908_v21  ;;  %v3676_v27 = vsel %vm42_vm0, %v11244_v36, 0.0 }
 0xf0b   :  { %3677 = vadd.xlane.f32.xlu0 %v3676_v27 }
 0xf0c   :  { %v3679_v39 = vsel %vm42_vm0, %v11247_v38, 0.0 }
 0xf0d   :  { %3680 = vadd.xlane.f32.xlu1 %v3679_v39 }
 0xf98   :  { %v3678_v31 = vpop.xlane.xlu0 %3677 }
 0xf99   :  { %v3682_v16 = vmul.f32 0.03125, %v3678_v31 }
 0xf9a   :  { %v3681_v40 = vpop.xlane.xlu1 %3680 }
 0xf9b   :  { %v3684_v23 = vsub.f32 %v11244_v36, %v3682_v16  ;;  %v3683_v42 = vmul.f32 0.03125, %v3681_v40 }
 0xf9d   :  { %v3685_v18 = vsub.f32 %v11247_v38, %v3683_v42  ;;  %v3686_v44 = vmul.f32 %v3684_v23, %v3684_v23 }
 0xf9f   :  { %v3688_v21 = vsel %vm42_vm0, %v3686_v44, 0.0  ;;  %v3687_v46 = vmul.f32 %v3685_v18, %v3685_v18 }
 0xfa0   :  { %3689 = vadd.xlane.f32.xlu0 %v3688_v21 }
 0xfa1   :  { %v3691_v48 = vsel %vm42_vm0, %v3687_v46, 0.0 }
 0xfa2   :  { %3692 = vadd.xlane.f32.xlu1 %v3691_v48 }
0x102d   :  { %v3690_v51 = vpop.xlane.xlu0 %3689 }
0x102e   :  { %v3694_v52 = vmul.f32 0.03125, %v3690_v51 }
0x102f   :  { %v3693_v53 = vpop.xlane.xlu1 %3692 }
0x1030   :  { %v3696_v41 = vadd.f32 1e-05, %v3694_v52  ;;  %v3695_v54 = vmul.f32 0.03125, %v3693_v53 }
0x1032   :  { %10265 = vrsqrt.f32 %v3696_v41  ;;  %v3697_v45 = vadd.f32 1e-05, %v3695_v54 }
0x1034   :  { %10267 = vrsqrt.f32 %v3697_v45 }
0x103c   :  { %v10266_v55 = vpop.eup %10265 }
0x103d   :  { %v3700_v58 = vmul.f32 %v10266_v55, %v3684_v23  ;;  %v8394_v23 = vld [vmem:[%s12200_s5 + $0xd] ss:$0 sm:$0xff] }
0x103e   :  { %v10268_v60 = vpop.eup %10267 }
0x103f   :  { %v3706_v61 = vmul.f32 %v8366_v57, %v3700_v58  ;;  %v3701_v59 = vmul.f32 %v10268_v60, %v3685_v18 }
0x1041   :  { %v3707_v63 = vmul.f32 %v8366_v57, %v3701_v59  ;;  %v3712_v43 = vadd.f32 %v8367_v62, %v3706_v61  ;;  %v10027_v61 = vld [vmem:[%s12196_s1 + $0x184] ss:$48 sps:$4 sm:$0xff]  }
0x1042   :  { %v10030_v59 = vld [vmem:[%s12196_s1 + $0x1a4] ss:$48 sps:$4 sm:$0xff]   ;;  %4103 = vmatprep.subr.bf16.mxu1 %v10027_v61 }
0x1043   :  { %v3713_v0 = vadd.f32 %v8367_v62, %v3707_v63  ;;  %v10025_v62 = vld [vmem:[%s12196_s1 + $0x180] ss:$48 sps:$4 sm:$0xff]   ;;  %4275 = vmatprep.subr.bf16.mxu0 %v10030_v59 }
0x1044   :  { %v10028_v63 = vld [vmem:[%s12196_s1 + $0x1a0] ss:$48 sps:$4 sm:$0xff]  }
0x1045   :  { %v3714_v47 = vpack.c.bf16 %v3713_v0, %v3712_v43  ;;  %v10033_v43 = vld [vmem:[%s12196_s1 + $0x1e4] ss:$48 sps:$4 sm:$0xff]  }
0x1046   :  { %v10036_v0 = vld [vmem:[%s12196_s1 + $0x204] ss:$48 sps:$4 sm:$0xff]  }
0x1047   :  { %9571 = vmatmul.mubr.msk.bf16.vlgmr.msra.gmra.mrb[96].mxu1 %vm42_vm0, %v3714_v47  ;;  %v10031_v47 = vld [vmem:[%s12196_s1 + $0x1e0] ss:$48 sps:$4 sm:$0xff]  }
0x1048   :  { %4135 = vmatprep.mubr.bf16.mxu1 %v10437_v22  ;;  %4104 = vmatpush1.bf16.msra.mxu1 %v10025_v62 }
0x1049   :  { %4105 = vmatprep.subr.bf16.mxu1 %v10033_v43 }
0x104c   :  { %4106 = vmatpush1.bf16.msra.mxu1 %v10031_v47 }
0x104d   :  { %4146 = vmatprep.subr.bf16.mxu1 %v10039_v2 }
0x111a   :  { %v3774_v13 = vpop.f32.mrb[96].mxu1 }
0x111b   :  { %v3775_v8 = vadd.f32 %v8373_v12, %v3774_v13  ;;  %v9572_v15 = vpop.f32.mrb[97].mxu1  ;;  %v8405_v13 = vld [vmem:[%s12200_s5 + $0x10] ss:$0 sm:$0xff] }
0x111c   :  { %v3777_v14 = vpop.f32.mrb[98].mxu1 }
0x111d   :  { %v3781_v17 = vmul.f32 %v3775_v8, %v3775_v8  ;;  %v3778_v19 = vadd.f32 %v8373_v12, %v3777_v14  ;;  %v9573_v20 = vpop.f32.mrb[99].mxu1 }
0x111f   :  { %v3783_v24 = vmul.f32 %v3781_v17, %v3775_v8  ;;  %v3782_v26 = vmul.f32 %v3778_v19, %v3778_v19 }
0x1121   :  { %v3785_v25 = vmul.f32 0.044715, %v3783_v24  ;;  %v3784_v28 = vmul.f32 %v3782_v26, %v3778_v19 }
0x1123   :  { %v3787_v29 = vadd.f32 %v3785_v25, %v3775_v8  ;;  %v3786_v4 = vmul.f32 0.044715, %v3784_v28  ;;  %v10037_v25 = vld [vmem:[%s12196_s1 + $0x188] ss:$48 sps:$4 sm:$0xff]  }
0x1125   :  { %v3789_v30 = vmul.f32 0.7978846, %v3787_v29  ;;  %v3788_v32 = vadd.f32 %v3786_v4, %v3778_v19  ;;  %v10042_v29 = vld [vmem:[%s12196_s1 + $0x1ec] ss:$48 sps:$4 sm:$0xff]   ;;  %v10040_v4 = vld [vmem:[%s12196_s1 + $0x1e8] ss:$48 sps:$4 sm:$0xff]  }
0x1127   :  { %10269 = vtanh.f32 %v3789_v30  ;;  %v3790_v7 = vmul.f32 0.7978846, %v3788_v32  ;;  %v10045_v30 = vld [vmem:[%s12196_s1 + $0x194] ss:$48 sps:$4 sm:$0xff]   ;;  %v10043_v32 = vld [vmem:[%s12196_s1 + $0x190] ss:$48 sps:$4 sm:$0xff]  }
0x1129   :  { %10271 = vtanh.f32 %v3790_v7  ;;  %v10048_v7 = vld [vmem:[%s12196_s1 + $0x1f4] ss:$48 sps:$4 sm:$0xff]  }
0x1131   :  { %v10270_v33 = vpop.eup %10269 }
0x1132   :  { %v3793_v34 = vadd.f32 1.0, %v10270_v33  ;;  %v10046_v33 = vld [vmem:[%s12196_s1 + $0x1f0] ss:$48 sps:$4 sm:$0xff]  }
0x1133   :  { %v10272_v35 = vpop.eup %10271 }
0x1134   :  { %v3795_v37 = vmul.f32 0.5, %v3793_v34  ;;  %v3794_v27 = vadd.f32 1.0, %v10272_v35  ;;  %v10051_v34 = vld [vmem:[%s12196_s1 + $0x19c] ss:$48 sps:$4 sm:$0xff]   ;;  %v10049_v35 = vld [vmem:[%s12196_s1 + $0x198] ss:$48 sps:$4 sm:$0xff]  }
0x1136   :  { %v3796_v39 = vmul.f32 0.5, %v3794_v27  ;;  %v3797_v31 = vmul.f32 %v3795_v37, %v3775_v8  ;;  %v10054_v37 = vld [vmem:[%s12196_s1 + $0x1fc] ss:$48 sps:$4 sm:$0xff]   ;;  %v10052_v27 = vld [vmem:[%s12196_s1 + $0x1f8] ss:$48 sps:$4 sm:$0xff]  }
0x1138   :  { %v3798_v16 = vmul.f32 %v3796_v39, %v3778_v19  ;;  %v8406_v19 = vld [vmem:[%s12200_s5 + $0x11] ss:$0 sm:$0xff]  ;;  %v10057_v39 = vld [vmem:[%s12196_s1 + $0x1ac] ss:$48 sps:$4 sm:$0xff]  }
0x113a   :  { %v3799_v40 = vpack.c.bf16 %v3798_v16, %v3797_v31  ;;  %v10055_v31 = vld [vmem:[%s12196_s1 + $0x1a8] ss:$48 sps:$4 sm:$0xff]   ;;  %v10060_v16 = vld [vmem:[%s12196_s1 + $0x20c] ss:$48 sps:$4 sm:$0xff]  }
0x113c   :  { %9591 = vmatmul.mubr.bf16.vlgmr.msra.gmra.mrb[104].mxu0 %v3799_v40  ;;  %v10058_v40 = vld [vmem:[%s12196_s1 + $0x208] ss:$48 sps:$4 sm:$0xff]  }
0x113d   :  { %4307 = vmatprep.mubr.bf16.mxu0 %v10437_v22  ;;  %4276 = vmatpush1.bf16.msra.mxu0 %v10028_v63 }
0x113e   :  { %4277 = vmatprep.subr.bf16.mxu0 %v10036_v0 }
0x1141   :  { %4278 = vmatpush1.bf16.msra.mxu0 %v10034_v1 }
0x1142   :  { %9594 = vmatprep.subr.bf16.mxu0 %v10438_v56 }
0x120f   :  { %v3904_v42 = vpop.f32.mrb[104].mxu0 }
0x1210   :  { %v3905_v18 = vadd.f32 %v8394_v23, %v3904_v42  ;;  %v9592_v44 = vpop.f32.mrb[105].mxu0 }
0x1211   :  { %v3907_v21 = vpop.f32.mrb[106].mxu0 }
0x1212   :  { %v11311_v46 = vadd.f32 %v3905_v18, %v11244_v36  ;;  %v3908_v48 = vadd.f32 %v8394_v23, %v3907_v21  ;;  %v9593_v49 = vpop.f32.mrb[107].mxu0 }
0x1214   :  { %v11314_v50 = vadd.f32 %v3908_v48, %v11247_v38  ;;  %v3916_v51 = vsel %vm42_vm0, %v11311_v46, 0.0 }
0x1215   :  { %3917 = vadd.xlane.f32.xlu0 %v3916_v51 }
0x1216   :  { %v3919_v52 = vsel %vm42_vm0, %v11314_v50, 0.0 }
0x1217   :  { %3920 = vadd.xlane.f32.xlu1 %v3919_v52 }
0x12a2   :  { %v3918_v53 = vpop.xlane.xlu0 %3917 }
0x12a3   :  { %v3922_v41 = vmul.f32 0.03125, %v3918_v53 }
0x12a4   :  { %v3921_v54 = vpop.xlane.xlu1 %3920 }
0x12a5   :  { %v3924_v45 = vsub.f32 %v11311_v46, %v3922_v41  ;;  %v3923_v36 = vmul.f32 0.03125, %v3921_v54 }
0x12a7   :  { %v3925_v55 = vsub.f32 %v11314_v50, %v3923_v36  ;;  %v3926_v57 = vmul.f32 %v3924_v45, %v3924_v45 }
0x12a9   :  { %v3928_v38 = vsel %vm42_vm0, %v3926_v57, 0.0  ;;  %v3927_v58 = vmul.f32 %v3925_v55, %v3925_v55 }
0x12aa   :  { %3929 = vadd.xlane.f32.xlu0 %v3928_v38 }
0x12ab   :  { %v3931_v60 = vsel %vm42_vm0, %v3927_v58, 0.0 }
0x12ac   :  { %3932 = vadd.xlane.f32.xlu1 %v3931_v60 }
0x1337   :  { %v3930_v3 = vpop.xlane.xlu0 %3929 }
0x1338   :  { %v3934_v5 = vmul.f32 0.03125, %v3930_v3 }
0x1339   :  { %v3933_v6 = vpop.xlane.xlu1 %3932 }
0x133a   :  { %v3936_v9 = vadd.f32 1e-05, %v3934_v5  ;;  %v3935_v10 = vmul.f32 0.03125, %v3933_v6 }
0x133c   :  { %10273 = vrsqrt.f32 %v3936_v9  ;;  %v3937_v11 = vadd.f32 1e-05, %v3935_v10 }
0x133e   :  { %10275 = vrsqrt.f32 %v3937_v11 }
0x1346   :  { %v10274_v12 = vpop.eup %10273 }
0x1347   :  { %v3940_v8 = vmul.f32 %v10274_v12, %v3924_v45 }
0x1348   :  { %v10276_v15 = vpop.eup %10275 }
0x1349   :  { %v3946_v14 = vmul.f32 %v8405_v13, %v3940_v8  ;;  %v3941_v17 = vmul.f32 %v10276_v15, %v3925_v55 }
0x134b   :  { %v3947_v20 = vmul.f32 %v8405_v13, %v3941_v17  ;;  %v3952_v24 = vadd.f32 %v8406_v19, %v3946_v14 }
0x134d   :  { %v3953_v26 = vadd.f32 %v8406_v19, %v3947_v20 }
0x134f   :  { %v3954_v28 = vpack.c.bf16 %v3953_v26, %v3952_v24 }
0x1351   :  { %8455 = vmatmul.mubr.msk.bf16.vlgmr.msra.gmra.mrb[100].mxu1 %vm42_vm0, %v3954_v28  ;;  %8459 = vmatmul.mubr.msk.bf16.vlgmr.msra.gmra.mrb[108].mxu0 %vm42_vm0, %v3954_v28 }
0x1352   :  { %4147 = vmatpush1.bf16.msra.mxu1 %v10037_v25  ;;  %4178 = vmatprep.mubr.bf16.mxu1 %v10437_v22 }
0x1353   :  { %4148 = vmatprep.subr.bf16.mxu1 %v10042_v29  ;;  %9596 = vmatprep.mubr.msk.bf16.mxu0 %vm10439_vm1, %v10438_v56 }
0x1356   :  { %4149 = vmatpush1.bf16.msra.mxu1 %v10040_v4 }
0x1357   :  { %4189 = vmatprep.subr.bf16.mxu1 %v10045_v30 }
0x1359   :  { %8456 = vmatmul.mubr.msk.bf16.vlgmr.msra.gmra.mrb[104].mxu1 %vm42_vm0, %v3954_v28 }
0x135a   :  { %4190 = vmatpush1.bf16.msra.mxu1 %v10043_v32  ;;  %4221 = vmatprep.mubr.bf16.mxu1 %v10437_v22 }
0x135b   :  { %4191 = vmatprep.subr.bf16.mxu1 %v10048_v7 }
0x135e   :  { %4192 = vmatpush1.bf16.msra.mxu1 %v10046_v33 }
0x135f   :  { %4232 = vmatprep.subr.bf16.mxu1 %v10051_v34 }
0x1361   :  { %8457 = vmatmul.mubr.msk.bf16.vlgmr.msra.gmra.mrb[108].mxu1 %vm42_vm0, %v3954_v28 }
0x1362   :  { %4233 = vmatpush1.bf16.msra.mxu1 %v10049_v35  ;;  %4264 = vmatprep.mubr.bf16.mxu1 %v10437_v22 }
0x1363   :  { %4234 = vmatprep.subr.bf16.mxu1 %v10054_v37 }
0x1366   :  { %4235 = vmatpush1.bf16.msra.mxu1 %v10052_v27 }
0x1367   :  { %4318 = vmatprep.subr.bf16.mxu1 %v10057_v39 }
0x1369   :  { %8458 = vmatmul.mubr.msk.bf16.vlgmr.msra.gmra.mrb[112].mxu1 %vm42_vm0, %v3954_v28 }
0x136a   :  { %4319 = vmatpush1.bf16.msra.mxu1 %v10055_v31  ;;  %4350 = vmatprep.mubr.bf16.mxu1 %v10437_v22 }
0x136b   :  { %4320 = vmatprep.subr.bf16.mxu1 %v10060_v16 }
0x136e   :  { %4321 = vmatpush1.bf16.msra.mxu1 %v10058_v40 }
0x136f   :  { %9600 = vmatprep.subr.bf16.mxu1 %v10438_v56 }
0x1371   :  { %8460 = vmatmul.mubr.msk.bf16.vlgmr.msra.gmra.mrb[116].mxu1 %vm42_vm0, %v3954_v28 }
0x1372   :  { %9602 = vmatprep.mubr.msk.bf16.mxu1 %vm10439_vm1, %v10438_v56 }
0x1424   :  { %v4137_v23 = vpop.f32.mrb[100].mxu1  ;;  %v11418_v42 = vpop.f32.mrb[108].mxu0 }
0x1425   :  { %v4139_v18 = vpop.f32.mrb[101].mxu1  ;;  %v11420_v44 = vpop.f32.mrb[109].mxu0  ;;  %v8932_v60 = vpack.c.bf16 %v4137_v23, %v4137_v23  ;;  %v8948_v14 = vpack.c.bf16 %v11418_v42, %v11418_v42 }
0x1426   :  { %v4141_v21 = vpop.f32.mrb[102].mxu1  ;;  %v11422_v48 = vpop.f32.mrb[110].mxu0  ;;  %v8934_v1 = vpack.c.bf16 %v4139_v18, %v4139_v18 }
0x1427   :  { %v4143_v49 = vpop.f32.mrb[103].mxu1  ;;  %v11424_v51 = vpop.f32.mrb[111].mxu0  ;;  %v8933_v63 = vpack.c.bf16 %v4141_v21, %v4141_v21  ;;  %v8949_v17 = vpack.c.bf16 %v11422_v48, %v11422_v48  ;;  %v4869_v20 = vsel %vm996_vm2, %v8948_v14, 0 }
0x1428   :  { %v8935_v6 = vpack.c.bf16 %v4143_v49, %v4143_v49 }
0x1429   :  { %v4915_v26 = vsel %vm996_vm2, %v8949_v17, 0 }
0x142c   :  { %v4180_v52 = vpop.f32.mrb[104].mxu1 }
0x142d   :  { %v4182_v53 = vpop.f32.mrb[105].mxu1  ;;  %v8936_v12 = vpack.c.bf16 %v4180_v52, %v4180_v52 }
0x142e   :  { %v4184_v41 = vpop.f32.mrb[106].mxu1  ;;  %v8938_v19 = vpack.c.bf16 %v4182_v53, %v4182_v53 }
0x142f   :  { %v11426_v54 = vpop.f32.mrb[107].mxu1  ;;  %v8937_v8 = vpack.c.bf16 %v4184_v41, %v4184_v41 }
0x1430   :  { %v8939_v24 = vpack.c.bf16 %v11426_v54, %v11426_v54 }
0x1434   :  { %v4223_v45 = vpop.f32.mrb[108].mxu1 }
0x1435   :  { %v8940_v36 = vpack.c.bf16 %v4223_v45, %v4223_v45  ;;  %v4225_v55 = vpop.f32.mrb[109].mxu1 }
0x1436   :  { %v4227_v57 = vpop.f32.mrb[110].mxu1  ;;  %v8942_v59 = vpack.c.bf16 %v4225_v55, %v4225_v55 }
0x1437   :  { %v8941_v38 = vpack.c.bf16 %v4227_v57, %v4227_v57  ;;  %v4229_v58 = vpop.f32.mrb[111].mxu1  ;;  %9595 = vmatpush3.bf16.xpose.msra.mxu0 %v8940_v36 }
0x1438   :  { %9606 = vmatprep.subr.bf16.mxu0 %v10438_v56  ;;  %v8943_v0 = vpack.c.bf16 %v4229_v58, %v4229_v58 }
0x1439   :  { %9601 = vmatpush3.bf16.xpose.msra.mxu1 %v8941_v38 }
0x143a   :  { %9612 = vmatprep.subr.bf16.mxu1 %v10438_v56 }
0x143c   :  { %v4266_v61 = vpop.f32.mrb[112].mxu1 }
0x143d   :  { %v4268_v62 = vpop.f32.mrb[113].mxu1  ;;  %v8944_v3 = vpack.c.bf16 %v4266_v61, %v4266_v61 }
0x143e   :  { %v4270_v43 = vpop.f32.mrb[114].mxu1  ;;  %9597 = vmatmul.mubr.bf16.vlgmr.msra.gmra.mrb[112].mxu0 %v8932_v60  ;;  %v8946_v13 = vpack.c.bf16 %v4268_v62, %v4268_v62 }
0x143f   :  { %v4272_v47 = vpop.f32.mrb[115].mxu1  ;;  %9607 = vmatpush3.bf16.xpose.msra.mxu0 %v8942_v59  ;;  %9608 = vmatprep.mubr.msk.bf16.mxu0 %vm10439_vm1, %v10438_v56  ;;  %v8945_v10 = vpack.c.bf16 %v4270_v43, %v4270_v43 }
0x1440   :  { %9603 = vmatmul.mubr.bf16.vlgmr.msra.gmra.mrb[120].mxu1 %v8933_v63  ;;  %9618 = vmatprep.subr.bf16.mxu0 %v10438_v56  ;;  %v8947_v15 = vpack.c.bf16 %v4272_v47, %v4272_v47 }
0x1441   :  { %9613 = vmatpush3.bf16.xpose.msra.mxu1 %v8943_v0  ;;  %9614 = vmatprep.mubr.msk.bf16.mxu1 %vm10439_vm1, %v10438_v56 }
0x1442   :  { %9624 = vmatprep.subr.bf16.mxu1 %v10438_v56 }
0x1444   :  { %v11436_v2 = vpop.f32.mrb[116].mxu1 }
0x1445   :  { %v11438_v5 = vpop.f32.mrb[117].mxu1 }
0x1446   :  { %v11440_v9 = vpop.f32.mrb[118].mxu1  ;;  %9609 = vmatmul.mubr.bf16.vlgmr.msra.gmra.mrb[116].mxu0 %v8934_v1 }
0x1447   :  { %v11442_v11 = vpop.f32.mrb[119].mxu1  ;;  %9619 = vmatpush3.bf16.xpose.msra.mxu0 %v8944_v3  ;;  %9620 = vmatprep.mubr.msk.bf16.mxu0 %vm10439_vm1, %v10438_v56 }
0x1448   :  { %9615 = vmatmul.mubr.bf16.vlgmr.msra.gmra.mrb[124].mxu1 %v8935_v6  ;;  %9630 = vmatprep.subr.bf16.mxu0 %v10438_v56 }
0x1449   :  { %9625 = vmatpush3.bf16.xpose.msra.mxu1 %v8945_v10  ;;  %9626 = vmatprep.mubr.msk.bf16.mxu1 %vm10439_vm1, %v10438_v56 }
0x144a   :  { %9636 = vmatprep.subr.bf16.mxu1 %v10438_v56 }
0x144e   :  { %9621 = vmatmul.mubr.bf16.vlgmr.msra.gmra.mrb[120].mxu0 %v8936_v12 }
0x144f   :  { %9631 = vmatpush3.bf16.xpose.msra.mxu0 %v8946_v13  ;;  %9632 = vmatprep.mubr.msk.bf16.mxu0 %vm10439_vm1, %v10438_v56 }
0x1450   :  { %9627 = vmatmul.mubr.bf16.vlgmr.msra.gmra.mrb[128].mxu1 %v8937_v8  ;;  %9642 = vmatprep.subr.bf16.mxu0 %v10438_v56 }
0x1451   :  { %9637 = vmatpush3.bf16.xpose.msra.mxu1 %v8947_v15  ;;  %9638 = vmatprep.mubr.msk.bf16.mxu1 %vm10439_vm1, %v10438_v56 }
0x1452   :  { %9648 = vmatprep.subr.bf16.mxu1 %v10438_v56 }
0x1456   :  { %9633 = vmatmul.mubr.bf16.vlgmr.msra.gmra.mrb[124].mxu0 %v8938_v19 }
0x1457   :  { %9643 = vmatpush3.bf16.msra.mxu0 %v4869_v20  ;;  %9644 = vmatprep.mubr.msk.bf16.mxu0 %vm10439_vm1, %v10438_v56 }
0x1458   :  { %9639 = vmatmul.mubr.bf16.vlgmr.msra.gmra.mrb[132].mxu1 %v8939_v24  ;;  %9654 = vmatprep.subr.bf16.mxu0 %v10438_v56 }
0x1459   :  { %9649 = vmatpush3.bf16.msra.mxu1 %v4915_v26  ;;  %9650 = vmatprep.mubr.msk.bf16.mxu1 %vm10439_vm1, %v10438_v56 }
0x145a   :  { %9660 = vmatprep.subr.bf16.mxu1 %v10438_v56 }
0x1511   :  { %v4483_v25 = vpop.f32.mrb[112].mxu0 }
0x1512   :  { %v9598_v28 = vpop.f32.mrb[113].mxu0  ;;  %v4769_v29 = vsel %vm896_vm3, %v4483_v25, -inf }
0x1513   :  { %4770 = vmax.xlane.f32.xlu0 %v4769_v29  ;;  %v4486_v4 = vpop.f32.mrb[114].mxu0  ;;  %v4523_v30 = vpop.f32.mrb[120].mxu1 }
0x1514   :  { %v9599_v32 = vpop.f32.mrb[115].mxu0  ;;  %v9604_v7 = vpop.f32.mrb[121].mxu1  ;;  %v4772_v33 = vsel %vm896_vm3, %v4523_v30, -inf }
0x1515   :  { %4773 = vmax.xlane.f32.xlu1 %v4772_v33  ;;  %v4526_v34 = vpop.f32.mrb[122].mxu1 }
0x1516   :  { %v9605_v35 = vpop.f32.mrb[123].mxu1 }
0x1519   :  { %v4563_v37 = vpop.f32.mrb[116].mxu0 }
0x151a   :  { %v9610_v27 = vpop.f32.mrb[117].mxu0  ;;  %v4775_v39 = vsel %vm896_vm3, %v4563_v37, -inf }
0x151b   :  { %4776 = vmax.xlane.f32.xlu0 %v4775_v39  ;;  %v4566_v31 = vpop.f32.mrb[118].mxu0  ;;  %v4603_v16 = vpop.f32.mrb[124].mxu1 }
0x151c   :  { %v9611_v40 = vpop.f32.mrb[119].mxu0  ;;  %v9616_v23 = vpop.f32.mrb[125].mxu1  ;;  %v4778_v42 = vsel %vm896_vm3, %v4603_v16, -inf }
0x151d   :  { %4779 = vmax.xlane.f32.xlu1 %v4778_v42  ;;  %v4606_v18 = vpop.f32.mrb[126].mxu1 }
0x151e   :  { %v9617_v21 = vpop.f32.mrb[127].mxu1 }
0x1521   :  { %v4643_v48 = vpop.f32.mrb[120].mxu0 }
0x1522   :  { %v9622_v49 = vpop.f32.mrb[121].mxu0  ;;  %v4781_v52 = vsel %vm896_vm3, %v4643_v48, -inf }
0x1523   :  { %4782 = vmax.xlane.f32.xlu0 %v4781_v52  ;;  %v4646_v53 = vpop.f32.mrb[122].mxu0  ;;  %v4683_v41 = vpop.f32.mrb[128].mxu1 }
0x1524   :  { %v9623_v54 = vpop.f32.mrb[123].mxu0  ;;  %v9628_v45 = vpop.f32.mrb[129].mxu1  ;;  %v4784_v36 = vsel %vm896_vm3, %v4683_v41, -inf }
0x1525   :  { %4785 = vmax.xlane.f32.xlu1 %v4784_v36  ;;  %v4686_v55 = vpop.f32.mrb[130].mxu1 }
0x1526   :  { %v9629_v57 = vpop.f32.mrb[131].mxu1 }
0x1529   :  { %v4723_v38 = vpop.f32.mrb[124].mxu0 }
0x152a   :  { %v9634_v58 = vpop.f32.mrb[125].mxu0  ;;  %v4787_v60 = vsel %vm896_vm3, %v4723_v38, -inf }
0x152b   :  { %4788 = vmax.xlane.f32.xlu0 %v4787_v60  ;;  %v4726_v61 = vpop.f32.mrb[126].mxu0  ;;  %v4763_v59 = vpop.f32.mrb[132].mxu1  ;;  %v8950_v58 = vpack.c.bf16 %v11420_v44, %v11420_v44 }
0x152c   :  { %v9635_v62 = vpop.f32.mrb[127].mxu0  ;;  %v9640_v63 = vpop.f32.mrb[133].mxu1  ;;  %v4790_v43 = vsel %vm896_vm3, %v4763_v59, -inf }
0x152d   :  { %4791 = vmax.xlane.f32.xlu1 %v4790_v43  ;;  %v4766_v0 = vpop.f32.mrb[134].mxu1  ;;  %v4961_v43 = vsel %vm996_vm2, %v8950_v58, 0  ;;  %v10082_v58 = vld [vmem:[%s12197_s2 + $0x2d8] sm:$0xff]  }
0x152e   :  { %v9641_v47 = vpop.f32.mrb[135].mxu1 }
0x15a0   :  { %v4771_v1 = vpop.xlane.xlu0 %4770 }
0x15a1   :  { %v4793_v3 = vsub.f32 %v4483_v25, %v4771_v1 }
0x15a2   :  { %v4774_v6 = vpop.xlane.xlu1 %4773 }
0x15a3   :  { %v4801_v10 = vmul.f32 1.442695, %v4793_v3  ;;  %v4794_v12 = vsub.f32 %v4523_v30, %v4774_v6  ;;  %v8952_v3 = vpack.c.bf16 %v11436_v2, %v11436_v2 }
0x15a5   :  { %10277 = vpow2.f32 %v4801_v10  ;;  %v4803_v13 = vmul.f32 1.442695, %v4794_v12  ;;  %v8953_v12 = vpack.c.bf16 %v11440_v9, %v11440_v9 }
0x15a7   :  { %10279 = vpow2.f32 %v4803_v13  ;;  %v5099_v2 = vsel %vm996_vm2, %v8953_v12, 0 }
0x15a8   :  { %v4777_v8 = vpop.xlane.xlu0 %4776 }
0x15a9   :  { %v4795_v15 = vsub.f32 %v4563_v37, %v4777_v8 }
0x15aa   :  { %v4780_v14 = vpop.xlane.xlu1 %4779 }
0x15ab   :  { %v4805_v17 = vmul.f32 1.442695, %v4795_v15  ;;  %v4796_v19 = vsub.f32 %v4603_v16, %v4780_v14  ;;  %v5053_v15 = vsel %vm996_vm2, %v8952_v3, 0 }
0x15ad   :  { %10281 = vpow2.f32 %v4805_v17  ;;  %v4807_v20 = vmul.f32 1.442695, %v4796_v19 }
0x15af   :  { %v10278_v24 = vpop.eup %10277  ;;  %10283 = vpow2.f32 %v4807_v20  ;;  %v8954_v20 = vpack.c.bf16 %v11438_v5, %v11438_v5 }
0x15b0   :  { %v4783_v26 = vpop.xlane.xlu0 %4782  ;;  %v4817_v28 = vsel %vm896_vm3, %v10278_v24, 0.0 }
0x15b1   :  { %v10280_v29 = vpop.eup %10279  ;;  %v4797_v25 = vsub.f32 %v4643_v48, %v4783_v26  ;;  %4818 = vadd.xlane.f32.xlu0 %v4817_v28  ;;  %v8955_v28 = vpack.c.bf16 %v11442_v11, %v11442_v11 }
0x15b2   :  { %v4786_v4 = vpop.xlane.xlu1 %4785  ;;  %v4820_v30 = vsel %vm896_vm3, %v10280_v29, 0.0 }
0x15b3   :  { %v4809_v32 = vmul.f32 1.442695, %v4797_v25  ;;  %v4798_v7 = vsub.f32 %v4683_v41, %v4786_v4  ;;  %4821 = vadd.xlane.f32.xlu1 %v4820_v30  ;;  %v10061_v4 = vld [vmem:[%s12197_s2 + $0x240] sm:$0xff]   ;;  %v5145_v30 = vsel %vm996_vm2, %v8954_v20, 0  ;;  %v5191_v11 = vsel %vm996_vm2, %v8955_v28, 0 }
0x15b5   :  { %10285 = vpow2.f32 %v4809_v32  ;;  %v4811_v33 = vmul.f32 1.442695, %v4798_v7  ;;  %v10070_v32 = vld [vmem:[%s12197_s2 + $0x2c0] sm:$0xff]  }
0x15b7   :  { %v10282_v34 = vpop.eup %10281  ;;  %10287 = vpow2.f32 %v4811_v33 }
0x15b8   :  { %v4789_v35 = vpop.xlane.xlu0 %4788  ;;  %v4823_v37 = vsel %vm896_vm3, %v10282_v34, 0.0 }
0x15b9   :  { %v10284_v27 = vpop.eup %10283  ;;  %v4799_v39 = vsub.f32 %v4723_v38, %v4789_v35  ;;  %4824 = vadd.xlane.f32.xlu0 %v4823_v37  ;;  %v10062_v35 = vld [vmem:[%s12197_s2 + $0x200] sm:$0xff]  }
0x15ba   :  { %v4792_v31 = vpop.xlane.xlu1 %4791  ;;  %v4826_v16 = vsel %vm896_vm3, %v10284_v27, 0.0 }
0x15bb   :  { %v4813_v40 = vmul.f32 1.442695, %v4799_v39  ;;  %v4800_v23 = vsub.f32 %v4763_v59, %v4792_v31  ;;  %4827 = vadd.xlane.f32.xlu1 %v4826_v16  ;;  %v8951_v59 = vpack.c.bf16 %v11424_v51, %v11424_v51  ;;  %v10063_v39 = vld [vmem:[%s12197_s2 + $0x248] sm:$0xff]   ;;  %v10072_v31 = vld [vmem:[%s12197_s2 + $0x280] sm:$0xff]  }
0x15bd   :  { %10289 = vpow2.f32 %v4813_v40  ;;  %v4815_v42 = vmul.f32 1.442695, %v4800_v23  ;;  %v5007_v44 = vsel %vm996_vm2, %v8951_v59, 0  ;;  %v10064_v40 = vld [vmem:[%s12197_s2 + $0x208] sm:$0xff]   ;;  %v10065_v23 = vld [vmem:[%s12197_s2 + $0x250] sm:$0xff]   ;;  %v10085_v59 = vld [vmem:[%s12197_s2 + $0x2e0] sm:$0xff]  }
0x15bf   :  { %v11482_v18 = vpop.eup %10285  ;;  %10291 = vpow2.f32 %v4815_v42  ;;  %v10066_v42 = vld [vmem:[%s12197_s2 + $0x210] sm:$0xff]  }
0x15c0   :  { %v4829_v21 = vsel %vm896_vm3, %v11482_v18, 0.0 }
0x15c1   :  { %v11486_v48 = vpop.eup %10287  ;;  %4830 = vadd.xlane.f32.xlu0 %v4829_v21  ;;  %v10068_v21 = vld [vmem:[%s12197_s2 + $0x218] sm:$0xff]  }
0x15c2   :  { %v4832_v49 = vsel %vm896_vm3, %v11486_v48, 0.0 }
0x15c3   :  { %4833 = vadd.xlane.f32.xlu1 %v4832_v49  ;;  %v10071_v49 = vld [vmem:[%s12197_s2 + $0x220] sm:$0xff]  }
0x15c7   :  { %v11490_v52 = vpop.eup %10289 }
0x15c8   :  { %v4835_v53 = vsel %vm896_vm3, %v11490_v52, 0.0 }
0x15c9   :  { %v11494_v41 = vpop.eup %10291  ;;  %4836 = vadd.xlane.f32.xlu0 %v4835_v53  ;;  %v10074_v53 = vld [vmem:[%s12197_s2 + $0x2c8] sm:$0xff]  }
0x15ca   :  { %v4838_v54 = vsel %vm896_vm3, %v11494_v41, 0.0 }
0x15cb   :  { %4839 = vadd.xlane.f32.xlu1 %v4838_v54  ;;  %v10076_v54 = vld [vmem:[%s12197_s2 + $0x288] sm:$0xff]  }
0x163e   :  { %v4819_v45 = vpop.xlane.xlu0 %4818 }
0x163f   :  { %10293 = vrcp.f32 %v4819_v45  ;;  %v10077_v45 = vld [vmem:[%s12197_s2 + $0x270] sm:$0xff]  }
0x1640   :  { %v4822_v36 = vpop.xlane.xlu1 %4821 }
0x1641   :  { %10295 = vrcp.f32 %v4822_v36  ;;  %v10078_v36 = vld [vmem:[%s12197_s2 + $0x2d0] sm:$0xff]  }
0x1646   :  { %v4825_v55 = vpop.xlane.xlu0 %4824 }
0x1647   :  { %10297 = vrcp.f32 %v4825_v55  ;;  %v10079_v55 = vld [vmem:[%s12197_s2 + $0x230] sm:$0xff]  }
0x1648   :  { %v4828_v57 = vpop.xlane.xlu1 %4827 }
0x1649   :  { %v10294_v38 = vpop.eup %10293  ;;  %10299 = vrcp.f32 %v4828_v57  ;;  %v10080_v57 = vld [vmem:[%s12197_s2 + $0x290] sm:$0xff]  }
0x164a   :  { %v4849_v60 = vmul.f32 %v10294_v38, %v10278_v24  ;;  %v10081_v38 = vld [vmem:[%s12197_s2 + $0x278] sm:$0xff]  }
0x164b   :  { %v10296_v61 = vpop.eup %10295 }
0x164c   :  { %v4850_v62 = vmul.f32 %v10296_v61, %v10280_v29  ;;  %v4857_v63 = vpack.c.bf16 %v4849_v60, %v4849_v60  ;;  %v10083_v60 = vld [vmem:[%s12197_s2 + $0x238] sm:$0xff]  }
0x164d   :  { %v10084_v61 = vld [vmem:[%s12197_s2 + $0x298] sm:$0xff]  }
0x164e   :  { %9645 = vmatmul.mubr.msk.bf16.vlgmr.msra.gmra.mrb[128].mxu0 %vm896_vm3, %v4857_v63  ;;  %v4831_v0 = vpop.xlane.xlu0 %4830  ;;  %v4858_v47 = vpack.c.bf16 %v4850_v62, %v4850_v62  ;;  %v10086_v62 = vld [vmem:[%s12197_s2 + $0x2a0] sm:$0xff]   ;;  %v10087_v63 = vld [vmem:[%s12197_s2 + $0x2e8] sm:$0xff]  }
0x164f   :  { %9655 = vmatpush3.bf16.msra.mxu0 %v4961_v43  ;;  %10301 = vrcp.f32 %v4831_v0  ;;  %9656 = vmatprep.mubr.msk.bf16.mxu0 %vm10439_vm1, %v10438_v56  ;;  %v10088_v43 = vld [vmem:[%s12197_s2 + $0x2a8] sm:$0xff]   ;;  %v10089_v0 = vld [vmem:[%s12197_s2 + $0x2f0] sm:$0xff]  }
0x1650   :  { %9651 = vmatmul.mubr.msk.bf16.vlgmr.msra.gmra.mrb[136].mxu1 %vm896_vm3, %v4858_v47  ;;  %v4834_v1 = vpop.xlane.xlu1 %4833  ;;  %9666 = vmatprep.subr.bf16.mxu0 %v10438_v56  ;;  %v10090_v47 = vld [vmem:[%s12197_s2 + $0x2b0] sm:$0xff]  }
0x1651   :  { %v10298_v51 = vpop.eup %10297  ;;  %9661 = vmatpush3.bf16.msra.mxu1 %v5007_v44  ;;  %10303 = vrcp.f32 %v4834_v1  ;;  %9662 = vmatprep.mubr.msk.bf16.mxu1 %vm10439_vm1, %v10438_v56  ;;  %v10091_v44 = vld [vmem:[%s12197_s2 + $0x2f8] sm:$0xff]  }
0x1652   :  { %v4851_v6 = vmul.f32 %v10298_v51, %v10282_v34  ;;  %9672 = vmatprep.subr.bf16.mxu1 %v10438_v56  ;;  %v10092_v1 = vld [vmem:[%s12197_s2 + $0x2b8] sm:$0xff]  }
0x1653   :  { %v10300_v10 = vpop.eup %10299 }
0x1654   :  { %v4852_v13 = vmul.f32 %v10300_v10, %v10284_v27  ;;  %v4859_v8 = vpack.c.bf16 %v4851_v6, %v4851_v6 }
0x1656   :  { %9657 = vmatmul.mubr.msk.bf16.vlgmr.msra.gmra.mrb[132].mxu0 %vm896_vm3, %v4859_v8  ;;  %v4837_v14 = vpop.xlane.xlu0 %4836  ;;  %v4860_v17 = vpack.c.bf16 %v4852_v13, %v4852_v13 }
0x1657   :  { %10305 = vrcp.f32 %v4837_v14  ;;  %9667 = vmatpush3.bf16.msra.mxu0 %v5053_v15  ;;  %9668 = vmatprep.mubr.msk.bf16.mxu0 %vm10439_vm1, %v10438_v56 }
0x1658   :  { %9663 = vmatmul.mubr.msk.bf16.vlgmr.msra.gmra.mrb[140].mxu1 %vm896_vm3, %v4860_v17  ;;  %v4840_v19 = vpop.xlane.xlu1 %4839  ;;  %9678 = vmatprep.subr.bf16.mxu0 %v10438_v56 }
0x1659   :  { %v10302_v9 = vpop.eup %10301  ;;  %9673 = vmatpush3.bf16.msra.mxu1 %v5099_v2  ;;  %10307 = vrcp.f32 %v4840_v19  ;;  %9674 = vmatprep.mubr.msk.bf16.mxu1 %vm10439_vm1, %v10438_v56 }
0x165a   :  { %v4853_v24 = vmul.f32 %v10302_v9, %v11482_v18  ;;  %9684 = vmatprep.subr.bf16.mxu1 %v10438_v56  ;;  %v10067_v18 = vld [vmem:[%s12197_s2 + $0x258] sm:$0xff]  }
0x165b   :  { %v10304_v26 = vpop.eup %10303 }
0x165c   :  { %v4854_v29 = vmul.f32 %v10304_v26, %v11486_v48  ;;  %v4861_v25 = vpack.c.bf16 %v4853_v24, %v4853_v24  ;;  %v10069_v48 = vld [vmem:[%s12197_s2 + $0x260] sm:$0xff]  }
0x165e   :  { %9669 = vmatmul.mubr.msk.bf16.vlgmr.msra.gmra.mrb[136].mxu0 %vm896_vm3, %v4861_v25  ;;  %v4862_v5 = vpack.c.bf16 %v4854_v29, %v4854_v29 }
0x165f   :  { %9679 = vmatpush3.bf16.msra.mxu0 %v5145_v30  ;;  %9680 = vmatprep.mubr.msk.bf16.mxu0 %vm10439_vm1, %v10438_v56 }
0x1660   :  { %9675 = vmatmul.mubr.msk.bf16.vlgmr.msra.gmra.mrb[144].mxu1 %vm896_vm3, %v4862_v5  ;;  %9196 = vmatprep.subr.bf16.mxu0 %v10061_v4 }
0x1661   :  { %v10306_v7 = vpop.eup %10305  ;;  %9685 = vmatpush3.bf16.msra.mxu1 %v5191_v11  ;;  %9686 = vmatprep.mubr.msk.bf16.mxu1 %vm10439_vm1, %v10438_v56 }
0x1662   :  { %v4855_v33 = vmul.f32 %v10306_v7, %v11490_v52  ;;  %9218 = vmatprep.subr.bf16.mxu1 %v10070_v32  ;;  %v10073_v52 = vld [vmem:[%s12197_s2 + $0x268] sm:$0xff]  }
0x1663   :  { %v10308_v34 = vpop.eup %10307 }
0x1664   :  { %v4856_v37 = vmul.f32 %v10308_v34, %v11494_v41  ;;  %v4863_v27 = vpack.c.bf16 %v4855_v33, %v4855_v33  ;;  %v10075_v41 = vld [vmem:[%s12197_s2 + $0x228] sm:$0xff]  }
0x1666   :  { %9681 = vmatmul.mubr.msk.bf16.vlgmr.msra.gmra.mrb[140].mxu0 %vm896_vm3, %v4863_v27  ;;  %v4864_v16 = vpack.c.bf16 %v4856_v37, %v4856_v37 }
0x1667   :  { %9197 = vmatpush3.bf16.msra.mxu0 %v10062_v35 }
0x1668   :  { %9687 = vmatmul.mubr.msk.bf16.vlgmr.msra.gmra.mrb[148].mxu1 %vm896_vm3, %v4864_v16  ;;  %9198 = vmatprep.subr.bf16.mxu0 %v10063_v39 }
0x1669   :  { %9219 = vmatpush3.bf16.msra.mxu1 %v10072_v31 }
0x166a   :  { %9220 = vmatprep.subr.bf16.mxu1 %v10074_v53 }
0x166b   :  { %9199 = vmatpush3.bf16.msra.mxu0 %v10064_v40 }
0x166c   :  { %9200 = vmatprep.subr.bf16.mxu0 %v10065_v23 }
0x166d   :  { %9221 = vmatpush3.bf16.msra.mxu1 %v10076_v54 }
0x166e   :  { %9222 = vmatprep.subr.bf16.mxu1 %v10078_v36 }
0x166f   :  { %9201 = vmatpush3.bf16.msra.mxu0 %v10066_v42 }
0x1670   :  { %9202 = vmatprep.subr.bf16.mxu0 %v10067_v18 }
0x1671   :  { %9223 = vmatpush3.bf16.msra.mxu1 %v10080_v57 }
0x1672   :  { %9224 = vmatprep.subr.bf16.mxu1 %v10082_v58 }
0x1673   :  { %9203 = vmatpush3.bf16.msra.mxu0 %v10068_v21 }
0x1674   :  { %9204 = vmatprep.subr.bf16.mxu0 %v10069_v48 }
0x1675   :  { %9225 = vmatpush3.bf16.msra.mxu1 %v10084_v61 }
0x1676   :  { %9226 = vmatprep.subr.bf16.mxu1 %v10085_v59 }
0x1677   :  { %9205 = vmatpush3.bf16.msra.mxu0 %v10071_v49 }
0x1678   :  { %9206 = vmatprep.subr.bf16.mxu0 %v10073_v52 }
0x1679   :  { %9227 = vmatpush3.bf16.msra.mxu1 %v10086_v62 }
0x167a   :  { %9228 = vmatprep.subr.bf16.mxu1 %v10087_v63 }
0x167b   :  { %9207 = vmatpush3.bf16.msra.mxu0 %v10075_v41  ;;  %v8562_v41 = vld [vmem:[%s12200_s5 + $0x14] ss:$0 sm:$0xff] }
0x167c   :  { %9208 = vmatprep.subr.bf16.mxu0 %v10077_v45 }
0x167d   :  { %9229 = vmatpush3.bf16.msra.mxu1 %v10088_v43 }
0x167e   :  { %9230 = vmatprep.subr.bf16.mxu1 %v10089_v0 }
0x167f   :  { %9209 = vmatpush3.bf16.msra.mxu0 %v10079_v55 }
0x1680   :  { %9210 = vmatprep.subr.bf16.mxu0 %v10081_v38 }
0x1681   :  { %9231 = vmatpush3.bf16.msra.mxu1 %v10090_v47 }
0x1682   :  { %9232 = vmatprep.subr.bf16.mxu1 %v10091_v44 }
0x1683   :  { %9211 = vmatpush3.bf16.msra.mxu0 %v10083_v60 }
0x1684   :  { %9690 = vmatprep.subr.bf16.mxu0 %v10438_v56 }
0x1685   :  { %9233 = vmatpush3.bf16.msra.mxu1 %v10092_v1 }
0x1686   :  { %9698 = vmatprep.subr.bf16.mxu1 %v10438_v56 }
0x1721   :  { %v4905_v51 = vpop.f32.mrb[128].mxu0 }
0x1722   :  { %v9646_v3 = vpop.f32.mrb[129].mxu0 }
0x1723   :  { %v4908_v6 = vpop.f32.mrb[130].mxu0  ;;  %v4951_v10 = vpop.f32.mrb[136].mxu1 }
0x1724   :  { %v8956_v12 = vpack.c.bf16 %v4951_v10, %v4905_v51  ;;  %v9647_v13 = vpop.f32.mrb[131].mxu0  ;;  %v9652_v8 = vpop.f32.mrb[137].mxu1 }
0x1725   :  { %v4954_v15 = vpop.f32.mrb[138].mxu1  ;;  %v10093_v13 = vld [vmem:[%s12198_s3 + $0x20] sm:$0xff]   ;;  %v10094_v8 = vld [vmem:[%s12198_s3 + $0x28] sm:$0xff]  }
0x1726   :  { %v9653_v14 = vpop.f32.mrb[139].mxu1 }
0x1729   :  { %v4997_v17 = vpop.f32.mrb[132].mxu0 }
0x172a   :  { %v9658_v2 = vpop.f32.mrb[133].mxu0 }
0x172b   :  { %v5000_v19 = vpop.f32.mrb[134].mxu0  ;;  %v5043_v9 = vpop.f32.mrb[140].mxu1 }
0x172c   :  { %v8957_v20 = vpack.c.bf16 %v5043_v9, %v4997_v17  ;;  %v9659_v24 = vpop.f32.mrb[135].mxu0  ;;  %v9664_v26 = vpop.f32.mrb[141].mxu1 }
0x172d   :  { %v5046_v28 = vpop.f32.mrb[142].mxu1  ;;  %v8597_v24 = vld [vmem:[%s12200_s5 + $0x12] ss:$0 sm:$0xff] }
0x172e   :  { %v9665_v29 = vpop.f32.mrb[143].mxu1  ;;  %5559 = vmatprep.mubr.bf16.mxu0 %v8957_v20 }
0x172f   :  { %5560 = vmatmul.mubr.bf16.vlgmr.msra.gmra.mrb[144].mxu0 %v8956_v12 }
0x1730   :  { %9694 = vmatprep.mubr.msk.bf16.mxu0 %vm10439_vm1, %v10438_v56  ;;  %9691 = vmatpush3.bf16.msra.mxu0 %v10093_v13 }
0x1731   :  { %v5089_v25 = vpop.f32.mrb[136].mxu0  ;;  %9692 = vmatprep.subr.bf16.mxu0 %v10438_v56 }
0x1732   :  { %v9670_v4 = vpop.f32.mrb[137].mxu0 }
0x1733   :  { %v5092_v30 = vpop.f32.mrb[138].mxu0  ;;  %v5135_v5 = vpop.f32.mrb[144].mxu1  ;;  %v8598_v4 = vld [vmem:[%s12200_s5 + $0x13] ss:$0 sm:$0xff] }
0x1734   :  { %v8958_v32 = vpack.c.bf16 %v5135_v5, %v5089_v25  ;;  %v9671_v11 = vpop.f32.mrb[139].mxu0  ;;  %v9676_v7 = vpop.f32.mrb[145].mxu1  ;;  %9693 = vmatpush3.bf16.msra.mxu0 %v10094_v8 }
0x1735   :  { %v5138_v33 = vpop.f32.mrb[146].mxu1  ;;  %v10095_v7 = vld [vmem:[%s12199_s4 + $0x80] sm:$0xff]  }
0x1736   :  { %v9677_v34 = vpop.f32.mrb[147].mxu1  ;;  %v10096_v33 = vld [vmem:[%s12199_s4 + $0x88] sm:$0xff]  }
0x1737   :  { %v10097_v34 = vld [vmem:[%s12199_s4 + $0x90] sm:$0xff]  }
0x1739   :  { %v5181_v35 = vpop.f32.mrb[140].mxu0 }
0x173a   :  { %v9682_v37 = vpop.f32.mrb[141].mxu0 }
0x173b   :  { %v5184_v27 = vpop.f32.mrb[142].mxu0  ;;  %v5227_v39 = vpop.f32.mrb[148].mxu1  ;;  %v10099_v37 = vld [vmem:[%s12199_s4 + $0xa0] sm:$0xff]  }
0x173c   :  { %v8959_v31 = vpack.c.bf16 %v5227_v39, %v5181_v35  ;;  %v9683_v16 = vpop.f32.mrb[143].mxu0  ;;  %v9688_v40 = vpop.f32.mrb[149].mxu1  ;;  %v10098_v35 = vld [vmem:[%s12199_s4 + $0x98] sm:$0xff]   ;;  %v10100_v27 = vld [vmem:[%s12199_s4 + $0xa8] sm:$0xff]   ;;  %v10101_v39 = vld [vmem:[%s12199_s4 + $0xb0] sm:$0xff]  }
0x173d   :  { %v5230_v23 = vpop.f32.mrb[150].mxu1  ;;  %v8604_v16 = vld [vmem:[%s12200_s5 + $0x16] ss:$0 sm:$0xff] }
0x173e   :  { %v9689_v42 = vpop.f32.mrb[151].mxu1  ;;  %5600 = vmatprep.mubr.bf16.mxu1 %v8959_v31  ;;  %v10102_v31 = vld [vmem:[%s12199_s4 + $0xb8] sm:$0xff]  }
0x173f   :  { %5601 = vmatmul.mubr.bf16.vlgmr.msra.gmra.mrb[152].mxu1 %v8958_v32 }
0x1740   :  { %9714 = vmatprep.mubr.msk.bf16.mxu1 %vm10439_vm1, %v10438_v56  ;;  %9699 = vmatpush3.bf16.msra.mxu1 %v10095_v7  ;;  %v10112_v7 = vld [vmem:[%s12196_s1 + $0x2c0] ss:$48 sps:$4 sm:$0xff]  }
0x1741   :  { %9700 = vmatprep.subr.bf16.mxu1 %v10438_v56 }
0x1744   :  { %9701 = vmatpush3.bf16.msra.mxu1 %v10096_v33  ;;  %v10117_v33 = vld [vmem:[%s12196_s1 + $0x24c] ss:$48 sps:$4 sm:$0xff]  }
0x1745   :  { %9702 = vmatprep.subr.bf16.mxu1 %v10438_v56 }
0x1748   :  { %9703 = vmatpush3.bf16.msra.mxu1 %v10097_v34 }
0x1749   :  { %9704 = vmatprep.subr.bf16.mxu1 %v10438_v56 }
0x174c   :  { %9705 = vmatpush3.bf16.msra.mxu1 %v10098_v35 }
0x174d   :  { %9706 = vmatprep.subr.bf16.mxu1 %v10438_v56 }
0x1750   :  { %9707 = vmatpush3.bf16.msra.mxu1 %v10099_v37 }
0x1751   :  { %9708 = vmatprep.subr.bf16.mxu1 %v10438_v56 }
0x1754   :  { %9709 = vmatpush3.bf16.msra.mxu1 %v10100_v27 }
0x1755   :  { %9710 = vmatprep.subr.bf16.mxu1 %v10438_v56 }
0x1758   :  { %9711 = vmatpush3.bf16.msra.mxu1 %v10101_v39 }
0x1759   :  { %9712 = vmatprep.subr.bf16.mxu1 %v10438_v56 }
0x175c   :  { %9713 = vmatpush3.bf16.msra.mxu1 %v10102_v31 }
0x1802   :  { %v9212_v18 = vpop.f32.mrb[144].mxu0 }
0x1803   :  { %v9213_v21 = vpop.f32.mrb[145].mxu0 }
0x1804   :  { %v9214_v48 = vadd.f32 %v9213_v21, %v9212_v18  ;;  %v9215_v49 = vpop.f32.mrb[146].mxu0 }
0x1805   :  { %v9216_v52 = vpop.f32.mrb[147].mxu0 }
0x1806   :  { %v9217_v53 = vadd.f32 %v9216_v52, %v9215_v49  ;;  %v5562_v36 = vadd.f32 %v9214_v48, %v8562_v41 }
0x1808   :  { %v5565_v58 = vadd.f32 %v9217_v53, %v8562_v41 }
0x1812   :  { %v9234_v54 = vpop.f32.mrb[152].mxu1 }
0x1813   :  { %v9235_v45 = vpop.f32.mrb[153].mxu1 }
0x1814   :  { %v9236_v55 = vadd.f32 %v9235_v45, %v9234_v54  ;;  %v9237_v57 = vpop.f32.mrb[154].mxu1 }
0x1815   :  { %v9238_v38 = vpop.f32.mrb[155].mxu1 }
0x1816   :  { %v5603_v60 = vadd.f32 %v9236_v55, %v5562_v36  ;;  %v9239_v61 = vadd.f32 %v9238_v38, %v9237_v57 }
0x1818   :  { %v11650_v59 = vadd.f32 %v5603_v60, %v11311_v46  ;;  %v5606_v62 = vadd.f32 %v9239_v61, %v5565_v58 }
0x181a   :  { %v11653_v63 = vadd.f32 %v5606_v62, %v11314_v50  ;;  %v5613_v43 = vsel %vm42_vm0, %v11650_v59, 0.0 }
0x181b   :  { %5614 = vadd.xlane.f32.xlu0 %v5613_v43 }
0x181c   :  { %v5616_v0 = vsel %vm42_vm0, %v11653_v63, 0.0 }
0x181d   :  { %5617 = vadd.xlane.f32.xlu1 %v5616_v0 }
0x18a8   :  { %v5615_v47 = vpop.xlane.xlu0 %5614 }
0x18a9   :  { %v5619_v44 = vmul.f32 0.03125, %v5615_v47 }
0x18aa   :  { %v5618_v1 = vpop.xlane.xlu1 %5617 }
0x18ab   :  { %v5621_v51 = vsub.f32 %v11650_v59, %v5619_v44  ;;  %v5620_v3 = vmul.f32 0.03125, %v5618_v1 }
0x18ad   :  { %v5622_v46 = vsub.f32 %v11653_v63, %v5620_v3  ;;  %v5623_v6 = vmul.f32 %v5621_v51, %v5621_v51 }
0x18af   :  { %v5625_v50 = vsel %vm42_vm0, %v5623_v6, 0.0  ;;  %v5624_v10 = vmul.f32 %v5622_v46, %v5622_v46 }
0x18b0   :  { %5626 = vadd.xlane.f32.xlu0 %v5625_v50 }
0x18b1   :  { %v5628_v12 = vsel %vm42_vm0, %v5624_v10, 0.0 }
0x18b2   :  { %5629 = vadd.xlane.f32.xlu1 %v5628_v12 }
0x193d   :  { %v5627_v15 = vpop.xlane.xlu0 %5626 }
0x193e   :  { %v5631_v14 = vmul.f32 0.03125, %v5627_v15 }
0x193f   :  { %v5630_v17 = vpop.xlane.xlu1 %5629 }
0x1940   :  { %v5633_v2 = vadd.f32 1e-05, %v5631_v14  ;;  %v5632_v19 = vmul.f32 0.03125, %v5630_v17 }
0x1942   :  { %10309 = vrsqrt.f32 %v5633_v2  ;;  %v5634_v9 = vadd.f32 1e-05, %v5632_v19 }
0x1944   :  { %10311 = vrsqrt.f32 %v5634_v9 }
0x194c   :  { %v10310_v20 = vpop.eup %10309 }
0x194d   :  { %v5637_v26 = vmul.f32 %v10310_v20, %v5621_v51  ;;  %v8625_v51 = vld [vmem:[%s12200_s5 + $0x15] ss:$0 sm:$0xff] }
0x194e   :  { %v10312_v28 = vpop.eup %10311 }
0x194f   :  { %v5643_v29 = vmul.f32 %v8597_v24, %v5637_v26  ;;  %v5638_v25 = vmul.f32 %v10312_v28, %v5622_v46 }
0x1951   :  { %v5644_v30 = vmul.f32 %v8597_v24, %v5638_v25  ;;  %v5649_v5 = vadd.f32 %v8598_v4, %v5643_v29  ;;  %v10105_v29 = vld [vmem:[%s12196_s1 + $0x244] ss:$48 sps:$4 sm:$0xff]  }
0x1952   :  { %v10108_v25 = vld [vmem:[%s12196_s1 + $0x264] ss:$48 sps:$4 sm:$0xff]   ;;  %6040 = vmatprep.subr.bf16.mxu0 %v10105_v29 }
0x1953   :  { %v5650_v32 = vadd.f32 %v8598_v4, %v5644_v30  ;;  %v10103_v4 = vld [vmem:[%s12196_s1 + $0x240] ss:$48 sps:$4 sm:$0xff]   ;;  %6212 = vmatprep.subr.bf16.mxu1 %v10108_v25 }
0x1954   :  { %v10106_v30 = vld [vmem:[%s12196_s1 + $0x260] ss:$48 sps:$4 sm:$0xff]  }
0x1955   :  { %v5651_v11 = vpack.c.bf16 %v5650_v32, %v5649_v5  ;;  %v10111_v5 = vld [vmem:[%s12196_s1 + $0x2a4] ss:$48 sps:$4 sm:$0xff]  }
0x1956   :  { %v10114_v32 = vld [vmem:[%s12196_s1 + $0x2c4] ss:$48 sps:$4 sm:$0xff]  }
0x1957   :  { %9695 = vmatmul.mubr.msk.bf16.vlgmr.msra.gmra.mrb[148].mxu0 %vm42_vm0, %v5651_v11  ;;  %v10109_v11 = vld [vmem:[%s12196_s1 + $0x2a0] ss:$48 sps:$4 sm:$0xff]  }
0x1958   :  { %6072 = vmatprep.mubr.bf16.mxu0 %v10437_v22  ;;  %6041 = vmatpush1.bf16.msra.mxu0 %v10103_v4 }
0x1959   :  { %6042 = vmatprep.subr.bf16.mxu0 %v10111_v5 }
0x195c   :  { %6043 = vmatpush1.bf16.msra.mxu0 %v10109_v11 }
0x195d   :  { %6083 = vmatprep.subr.bf16.mxu0 %v10117_v33 }
0x1a2a   :  { %v5711_v40 = vpop.f32.mrb[148].mxu0 }
0x1a2b   :  { %v5712_v23 = vadd.f32 %v8604_v16, %v5711_v40  ;;  %v9696_v42 = vpop.f32.mrb[149].mxu0  ;;  %v8636_v40 = vld [vmem:[%s12200_s5 + $0x18] ss:$0 sm:$0xff] }
0x1a2c   :  { %v5714_v18 = vpop.f32.mrb[150].mxu0 }
0x1a2d   :  { %v5718_v21 = vmul.f32 %v5712_v23, %v5712_v23  ;;  %v5715_v48 = vadd.f32 %v8604_v16, %v5714_v18  ;;  %v9697_v49 = vpop.f32.mrb[151].mxu0 }
0x1a2f   :  { %v5720_v52 = vmul.f32 %v5718_v21, %v5712_v23  ;;  %v5719_v53 = vmul.f32 %v5715_v48, %v5715_v48 }
0x1a31   :  { %v5722_v41 = vmul.f32 0.044715, %v5720_v52  ;;  %v5721_v54 = vmul.f32 %v5719_v53, %v5715_v48 }
0x1a33   :  { %v5724_v45 = vadd.f32 %v5722_v41, %v5712_v23  ;;  %v5723_v36 = vmul.f32 0.044715, %v5721_v54  ;;  %v10115_v41 = vld [vmem:[%s12196_s1 + $0x248] ss:$48 sps:$4 sm:$0xff]  }
0x1a35   :  { %v5726_v55 = vmul.f32 0.7978846, %v5724_v45  ;;  %v5725_v57 = vadd.f32 %v5723_v36, %v5715_v48  ;;  %v10120_v45 = vld [vmem:[%s12196_s1 + $0x2ac] ss:$48 sps:$4 sm:$0xff]   ;;  %v10118_v36 = vld [vmem:[%s12196_s1 + $0x2a8] ss:$48 sps:$4 sm:$0xff]  }
0x1a37   :  { %10313 = vtanh.f32 %v5726_v55  ;;  %v5727_v38 = vmul.f32 0.7978846, %v5725_v57  ;;  %v10123_v55 = vld [vmem:[%s12196_s1 + $0x254] ss:$48 sps:$4 sm:$0xff]   ;;  %v10121_v57 = vld [vmem:[%s12196_s1 + $0x250] ss:$48 sps:$4 sm:$0xff]  }
0x1a39   :  { %10315 = vtanh.f32 %v5727_v38  ;;  %v10126_v38 = vld [vmem:[%s12196_s1 + $0x2b4] ss:$48 sps:$4 sm:$0xff]  }
0x1a41   :  { %v10314_v58 = vpop.eup %10313 }
0x1a42   :  { %v5730_v60 = vadd.f32 1.0, %v10314_v58  ;;  %v10124_v58 = vld [vmem:[%s12196_s1 + $0x2b0] ss:$48 sps:$4 sm:$0xff]  }
0x1a43   :  { %v10316_v61 = vpop.eup %10315 }
0x1a44   :  { %v5732_v62 = vmul.f32 0.5, %v5730_v60  ;;  %v5731_v43 = vadd.f32 1.0, %v10316_v61  ;;  %v10129_v60 = vld [vmem:[%s12196_s1 + $0x25c] ss:$48 sps:$4 sm:$0xff]   ;;  %v10127_v61 = vld [vmem:[%s12196_s1 + $0x258] ss:$48 sps:$4 sm:$0xff]  }
0x1a46   :  { %v5733_v0 = vmul.f32 0.5, %v5731_v43  ;;  %v5734_v47 = vmul.f32 %v5732_v62, %v5712_v23  ;;  %v10132_v62 = vld [vmem:[%s12196_s1 + $0x2bc] ss:$48 sps:$4 sm:$0xff]   ;;  %v10130_v43 = vld [vmem:[%s12196_s1 + $0x2b8] ss:$48 sps:$4 sm:$0xff]  }
0x1a48   :  { %v5735_v44 = vmul.f32 %v5733_v0, %v5715_v48  ;;  %v8637_v48 = vld [vmem:[%s12200_s5 + $0x19] ss:$0 sm:$0xff]  ;;  %v10135_v0 = vld [vmem:[%s12196_s1 + $0x26c] ss:$48 sps:$4 sm:$0xff]  }
0x1a4a   :  { %v5736_v1 = vpack.c.bf16 %v5735_v44, %v5734_v47  ;;  %v10133_v47 = vld [vmem:[%s12196_s1 + $0x268] ss:$48 sps:$4 sm:$0xff]   ;;  %v10138_v44 = vld [vmem:[%s12196_s1 + $0x2cc] ss:$48 sps:$4 sm:$0xff]  }
0x1a4c   :  { %9715 = vmatmul.mubr.bf16.vlgmr.msra.gmra.mrb[156].mxu1 %v5736_v1  ;;  %v10136_v1 = vld [vmem:[%s12196_s1 + $0x2c8] ss:$48 sps:$4 sm:$0xff]  }
0x1a4d   :  { %6244 = vmatprep.mubr.bf16.mxu1 %v10437_v22  ;;  %6213 = vmatpush1.bf16.msra.mxu1 %v10106_v30 }
0x1a4e   :  { %6214 = vmatprep.subr.bf16.mxu1 %v10114_v32 }
0x1a51   :  { %6215 = vmatpush1.bf16.msra.mxu1 %v10112_v7 }
0x1a52   :  { %9718 = vmatprep.subr.bf16.mxu1 %v10438_v56 }
0x1b1f   :  { %v5841_v3 = vpop.f32.mrb[156].mxu1 }
0x1b20   :  { %v5842_v46 = vadd.f32 %v8625_v51, %v5841_v3  ;;  %v9716_v6 = vpop.f32.mrb[157].mxu1 }
0x1b21   :  { %v5844_v50 = vpop.f32.mrb[158].mxu1 }
0x1b22   :  { %v11717_v10 = vadd.f32 %v5842_v46, %v11650_v59  ;;  %v5845_v12 = vadd.f32 %v8625_v51, %v5844_v50  ;;  %v9717_v13 = vpop.f32.mrb[159].mxu1 }
0x1b24   :  { %v11720_v8 = vadd.f32 %v5845_v12, %v11653_v63  ;;  %v5853_v15 = vsel %vm42_vm0, %v11717_v10, 0.0 }
0x1b25   :  { %5854 = vadd.xlane.f32.xlu0 %v5853_v15 }
0x1b26   :  { %v5856_v14 = vsel %vm42_vm0, %v11720_v8, 0.0 }
0x1b27   :  { %5857 = vadd.xlane.f32.xlu1 %v5856_v14 }
0x1bb2   :  { %v5855_v17 = vpop.xlane.xlu0 %5854 }
0x1bb3   :  { %v5859_v2 = vmul.f32 0.03125, %v5855_v17 }
0x1bb4   :  { %v5858_v19 = vpop.xlane.xlu1 %5857 }
0x1bb5   :  { %v5861_v9 = vsub.f32 %v11717_v10, %v5859_v2  ;;  %v5860_v59 = vmul.f32 0.03125, %v5858_v19 }
0x1bb7   :  { %v5862_v20 = vsub.f32 %v11720_v8, %v5860_v59  ;;  %v5863_v24 = vmul.f32 %v5861_v9, %v5861_v9 }
0x1bb9   :  { %v5865_v63 = vsel %vm42_vm0, %v5863_v24, 0.0  ;;  %v5864_v26 = vmul.f32 %v5862_v20, %v5862_v20 }
0x1bba   :  { %5866 = vadd.xlane.f32.xlu0 %v5865_v63 }
0x1bbb   :  { %v5868_v28 = vsel %vm42_vm0, %v5864_v26, 0.0 }
0x1bbc   :  { %5869 = vadd.xlane.f32.xlu1 %v5868_v28 }
0x1c47   :  { %v5867_v34 = vpop.xlane.xlu0 %5866 }
0x1c48   :  { %v5871_v35 = vmul.f32 0.03125, %v5867_v34 }
0x1c49   :  { %v5870_v37 = vpop.xlane.xlu1 %5869 }
0x1c4a   :  { %v5873_v27 = vadd.f32 1e-05, %v5871_v35  ;;  %v5872_v39 = vmul.f32 0.03125, %v5870_v37 }
0x1c4c   :  { %10317 = vrsqrt.f32 %v5873_v27  ;;  %v5874_v31 = vadd.f32 1e-05, %v5872_v39 }
0x1c4e   :  { %10319 = vrsqrt.f32 %v5874_v31 }
0x1c56   :  { %v10318_v16 = vpop.eup %10317 }
0x1c57   :  { %v5877_v23 = vmul.f32 %v10318_v16, %v5861_v9 }
0x1c58   :  { %v10320_v42 = vpop.eup %10319 }
0x1c59   :  { %v5883_v18 = vmul.f32 %v8636_v40, %v5877_v23  ;;  %v5878_v21 = vmul.f32 %v10320_v42, %v5862_v20 }
0x1c5b   :  { %v5884_v49 = vmul.f32 %v8636_v40, %v5878_v21  ;;  %v5889_v52 = vadd.f32 %v8637_v48, %v5883_v18 }
0x1c5d   :  { %v5890_v53 = vadd.f32 %v8637_v48, %v5884_v49 }
0x1c5f   :  { %v5891_v54 = vpack.c.bf16 %v5890_v53, %v5889_v52 }
0x1c61   :  { %8686 = vmatmul.mubr.msk.bf16.vlgmr.msra.gmra.mrb[152].mxu0 %vm42_vm0, %v5891_v54  ;;  %8690 = vmatmul.mubr.msk.bf16.vlgmr.msra.gmra.mrb[160].mxu1 %vm42_vm0, %v5891_v54 }
0x1c62   :  { %6084 = vmatpush1.bf16.msra.mxu0 %v10115_v41  ;;  %6115 = vmatprep.mubr.bf16.mxu0 %v10437_v22 }
0x1c63   :  { %6085 = vmatprep.subr.bf16.mxu0 %v10120_v45  ;;  %9720 = vmatprep.mubr.msk.bf16.mxu1 %vm10439_vm1, %v10438_v56 }
0x1c66   :  { %6086 = vmatpush1.bf16.msra.mxu0 %v10118_v36 }
0x1c67   :  { %6126 = vmatprep.subr.bf16.mxu0 %v10123_v55 }
0x1c69   :  { %8687 = vmatmul.mubr.msk.bf16.vlgmr.msra.gmra.mrb[156].mxu0 %vm42_vm0, %v5891_v54 }
0x1c6a   :  { %6127 = vmatpush1.bf16.msra.mxu0 %v10121_v57  ;;  %6158 = vmatprep.mubr.bf16.mxu0 %v10437_v22 }
0x1c6b   :  { %6128 = vmatprep.subr.bf16.mxu0 %v10126_v38 }
0x1c6e   :  { %6129 = vmatpush1.bf16.msra.mxu0 %v10124_v58 }
0x1c6f   :  { %6169 = vmatprep.subr.bf16.mxu0 %v10129_v60 }
0x1c71   :  { %8688 = vmatmul.mubr.msk.bf16.vlgmr.msra.gmra.mrb[160].mxu0 %vm42_vm0, %v5891_v54 }
0x1c72   :  { %6170 = vmatpush1.bf16.msra.mxu0 %v10127_v61  ;;  %6201 = vmatprep.mubr.bf16.mxu0 %v10437_v22 }
0x1c73   :  { %6171 = vmatprep.subr.bf16.mxu0 %v10132_v62 }
0x1c76   :  { %6172 = vmatpush1.bf16.msra.mxu0 %v10130_v43 }
0x1c77   :  { %6255 = vmatprep.subr.bf16.mxu0 %v10135_v0 }
0x1c79   :  { %8689 = vmatmul.mubr.msk.bf16.vlgmr.msra.gmra.mrb[164].mxu0 %vm42_vm0, %v5891_v54 }
0x1c7a   :  { %6256 = vmatpush1.bf16.msra.mxu0 %v10133_v47  ;;  %6287 = vmatprep.mubr.bf16.mxu0 %v10437_v22 }
0x1c7b   :  { %6257 = vmatprep.subr.bf16.mxu0 %v10138_v44 }
0x1c7e   :  { %6258 = vmatpush1.bf16.msra.mxu0 %v10136_v1 }
0x1c7f   :  { %9724 = vmatprep.subr.bf16.mxu0 %v10438_v56 }
0x1c81   :  { %8691 = vmatmul.mubr.msk.bf16.vlgmr.msra.gmra.mrb[168].mxu0 %vm42_vm0, %v5891_v54 }
0x1c82   :  { %9726 = vmatprep.mubr.msk.bf16.mxu0 %vm10439_vm1, %v10438_v56 }
0x1d34   :  { %v6074_v51 = vpop.f32.mrb[152].mxu0  ;;  %v11824_v3 = vpop.f32.mrb[160].mxu1 }
0x1d35   :  { %v6076_v46 = vpop.f32.mrb[153].mxu0  ;;  %v11826_v6 = vpop.f32.mrb[161].mxu1  ;;  %v8960_v26 = vpack.c.bf16 %v6074_v51, %v6074_v51  ;;  %v8976_v42 = vpack.c.bf16 %v11824_v3, %v11824_v3 }
0x1d36   :  { %v6078_v50 = vpop.f32.mrb[154].mxu0  ;;  %v11828_v12 = vpop.f32.mrb[162].mxu1  ;;  %v8962_v11 = vpack.c.bf16 %v6076_v46, %v6076_v46 }
0x1d37   :  { %v6080_v13 = vpop.f32.mrb[155].mxu0  ;;  %v11830_v22 = vpop.f32.mrb[163].mxu1  ;;  %v8961_v4 = vpack.c.bf16 %v6078_v50, %v6078_v50  ;;  %v8977_v18 = vpack.c.bf16 %v11828_v12, %v11828_v12  ;;  %v6806_v48 = vsel %vm996_vm2, %v8976_v42, 0 }
0x1d38   :  { %v8963_v35 = vpack.c.bf16 %v6080_v13, %v6080_v13 }
0x1d39   :  { %v6852_v52 = vsel %vm996_vm2, %v8977_v18, 0 }
0x1d3c   :  { %v6117_v15 = vpop.f32.mrb[156].mxu0 }
0x1d3d   :  { %v6119_v14 = vpop.f32.mrb[157].mxu0  ;;  %v8964_v31 = vpack.c.bf16 %v6117_v15, %v6117_v15 }
0x1d3e   :  { %v6121_v17 = vpop.f32.mrb[158].mxu0  ;;  %v8966_v21 = vpack.c.bf16 %v6119_v14, %v6119_v14 }
0x1d3f   :  { %v11832_v2 = vpop.f32.mrb[159].mxu0  ;;  %v8965_v40 = vpack.c.bf16 %v6121_v17, %v6121_v17 }
0x1d40   :  { %v8967_v49 = vpack.c.bf16 %v11832_v2, %v11832_v2 }
0x1d44   :  { %v6160_v19 = vpop.f32.mrb[160].mxu0 }
0x1d45   :  { %v8968_v9 = vpack.c.bf16 %v6160_v19, %v6160_v19  ;;  %v6162_v59 = vpop.f32.mrb[161].mxu0 }
0x1d46   :  { %v6164_v20 = vpop.f32.mrb[162].mxu0  ;;  %v8970_v29 = vpack.c.bf16 %v6162_v59, %v6162_v59 }
0x1d47   :  { %v8969_v24 = vpack.c.bf16 %v6164_v20, %v6164_v20  ;;  %v6166_v63 = vpop.f32.mrb[163].mxu0  ;;  %9719 = vmatpush3.bf16.xpose.msra.mxu1 %v8968_v9 }
0x1d48   :  { %9730 = vmatprep.subr.bf16.mxu1 %v10438_v56  ;;  %v8971_v5 = vpack.c.bf16 %v6166_v63, %v6166_v63 }
0x1d49   :  { %9725 = vmatpush3.bf16.xpose.msra.mxu0 %v8969_v24 }
0x1d4a   :  { %9736 = vmatprep.subr.bf16.mxu0 %v10438_v56 }
0x1d4c   :  { %v6203_v28 = vpop.f32.mrb[164].mxu0 }
0x1d4d   :  { %v6205_v25 = vpop.f32.mrb[165].mxu0  ;;  %v8972_v33 = vpack.c.bf16 %v6203_v28, %v6203_v28 }
0x1d4e   :  { %v6207_v30 = vpop.f32.mrb[166].mxu0  ;;  %9721 = vmatmul.mubr.bf16.vlgmr.msra.gmra.mrb[164].mxu1 %v8960_v26  ;;  %v8974_v16 = vpack.c.bf16 %v6205_v25, %v6205_v25 }
0x1d4f   :  { %v6209_v32 = vpop.f32.mrb[167].mxu0  ;;  %9731 = vmatpush3.bf16.xpose.msra.mxu1 %v8970_v29  ;;  %9732 = vmatprep.mubr.msk.bf16.mxu1 %vm10439_vm1, %v10438_v56  ;;  %v8973_v27 = vpack.c.bf16 %v6207_v30, %v6207_v30 }
0x1d50   :  { %9727 = vmatmul.mubr.bf16.vlgmr.msra.gmra.mrb[172].mxu0 %v8961_v4  ;;  %9742 = vmatprep.subr.bf16.mxu1 %v10438_v56  ;;  %v8975_v23 = vpack.c.bf16 %v6209_v32, %v6209_v32 }
0x1d51   :  { %9737 = vmatpush3.bf16.xpose.msra.mxu0 %v8971_v5  ;;  %9738 = vmatprep.mubr.msk.bf16.mxu0 %vm10439_vm1, %v10438_v56 }
0x1d52   :  { %9748 = vmatprep.subr.bf16.mxu0 %v10438_v56 }
0x1d54   :  { %v11842_v7 = vpop.f32.mrb[168].mxu0 }
0x1d55   :  { %v11844_v34 = vpop.f32.mrb[169].mxu0 }
0x1d56   :  { %v11846_v37 = vpop.f32.mrb[170].mxu0  ;;  %9733 = vmatmul.mubr.bf16.vlgmr.msra.gmra.mrb[168].mxu1 %v8962_v11 }
0x1d57   :  { %v11848_v39 = vpop.f32.mrb[171].mxu0  ;;  %9743 = vmatpush3.bf16.xpose.msra.mxu1 %v8972_v33  ;;  %9744 = vmatprep.mubr.msk.bf16.mxu1 %vm10439_vm1, %v10438_v56 }
0x1d58   :  { %9739 = vmatmul.mubr.bf16.vlgmr.msra.gmra.mrb[176].mxu0 %v8963_v35  ;;  %9754 = vmatprep.subr.bf16.mxu1 %v10438_v56 }
0x1d59   :  { %9749 = vmatpush3.bf16.xpose.msra.mxu0 %v8973_v27  ;;  %9750 = vmatprep.mubr.msk.bf16.mxu0 %vm10439_vm1, %v10438_v56 }
0x1d5a   :  { %9760 = vmatprep.subr.bf16.mxu0 %v10438_v56 }
0x1d5e   :  { %9745 = vmatmul.mubr.bf16.vlgmr.msra.gmra.mrb[172].mxu1 %v8964_v31 }
0x1d5f   :  { %9755 = vmatpush3.bf16.xpose.msra.mxu1 %v8974_v16  ;;  %9756 = vmatprep.mubr.msk.bf16.mxu1 %vm10439_vm1, %v10438_v56 }
0x1d60   :  { %9751 = vmatmul.mubr.bf16.vlgmr.msra.gmra.mrb[180].mxu0 %v8965_v40  ;;  %9766 = vmatprep.subr.bf16.mxu1 %v10438_v56 }
0x1d61   :  { %9761 = vmatpush3.bf16.xpose.msra.mxu0 %v8975_v23  ;;  %9762 = vmatprep.mubr.msk.bf16.mxu0 %vm10439_vm1, %v10438_v56 }
0x1d62   :  { %9772 = vmatprep.subr.bf16.mxu0 %v10438_v56 }
0x1d66   :  { %9757 = vmatmul.mubr.bf16.vlgmr.msra.gmra.mrb[176].mxu1 %v8966_v21 }
0x1d67   :  { %9767 = vmatpush3.bf16.msra.mxu1 %v6806_v48  ;;  %9768 = vmatprep.mubr.msk.bf16.mxu1 %vm10439_vm1, %v10438_v56 }
0x1d68   :  { %9763 = vmatmul.mubr.bf16.vlgmr.msra.gmra.mrb[184].mxu0 %v8967_v49  ;;  %9778 = vmatprep.subr.bf16.mxu1 %v10438_v56 }
0x1d69   :  { %9773 = vmatpush3.bf16.msra.mxu0 %v6852_v52  ;;  %9774 = vmatprep.mubr.msk.bf16.mxu0 %vm10439_vm1, %v10438_v56 }
0x1d6a   :  { %9784 = vmatprep.subr.bf16.mxu0 %v10438_v56 }
0x1e21   :  { %v6420_v53 = vpop.f32.mrb[164].mxu1 }
0x1e22   :  { %v9722_v41 = vpop.f32.mrb[165].mxu1  ;;  %v6706_v54 = vsel %vm896_vm3, %v6420_v53, -inf }
0x1e23   :  { %6707 = vmax.xlane.f32.xlu0 %v6706_v54  ;;  %v6423_v45 = vpop.f32.mrb[166].mxu1  ;;  %v6460_v36 = vpop.f32.mrb[172].mxu0 }
0x1e24   :  { %v9723_v55 = vpop.f32.mrb[167].mxu1  ;;  %v9728_v57 = vpop.f32.mrb[173].mxu0  ;;  %v6709_v38 = vsel %vm896_vm3, %v6460_v36, -inf }
0x1e25   :  { %6710 = vmax.xlane.f32.xlu1 %v6709_v38  ;;  %v6463_v58 = vpop.f32.mrb[174].mxu0 }
0x1e26   :  { %v9729_v60 = vpop.f32.mrb[175].mxu0 }
0x1e29   :  { %v6500_v61 = vpop.f32.mrb[168].mxu1 }
0x1e2a   :  { %v9734_v62 = vpop.f32.mrb[169].mxu1  ;;  %v6712_v43 = vsel %vm896_vm3, %v6500_v61, -inf }
0x1e2b   :  { %6713 = vmax.xlane.f32.xlu0 %v6712_v43  ;;  %v6503_v0 = vpop.f32.mrb[170].mxu1  ;;  %v6540_v47 = vpop.f32.mrb[176].mxu0 }
0x1e2c   :  { %v9735_v44 = vpop.f32.mrb[171].mxu1  ;;  %v9740_v1 = vpop.f32.mrb[177].mxu0  ;;  %v6715_v51 = vsel %vm896_vm3, %v6540_v47, -inf }
0x1e2d   :  { %6716 = vmax.xlane.f32.xlu1 %v6715_v51  ;;  %v6543_v3 = vpop.f32.mrb[178].mxu0 }
0x1e2e   :  { %v9741_v46 = vpop.f32.mrb[179].mxu0 }
0x1e31   :  { %v6580_v50 = vpop.f32.mrb[172].mxu1 }
0x1e32   :  { %v9746_v12 = vpop.f32.mrb[173].mxu1  ;;  %v6718_v13 = vsel %vm896_vm3, %v6580_v50, -inf }
0x1e33   :  { %6719 = vmax.xlane.f32.xlu0 %v6718_v13  ;;  %v6583_v15 = vpop.f32.mrb[174].mxu1  ;;  %v6620_v14 = vpop.f32.mrb[180].mxu0 }
0x1e34   :  { %v9747_v17 = vpop.f32.mrb[175].mxu1  ;;  %v9752_v2 = vpop.f32.mrb[181].mxu0  ;;  %v6721_v19 = vsel %vm896_vm3, %v6620_v14, -inf }
0x1e35   :  { %6722 = vmax.xlane.f32.xlu1 %v6721_v19  ;;  %v6623_v9 = vpop.f32.mrb[182].mxu0 }
0x1e36   :  { %v9753_v59 = vpop.f32.mrb[183].mxu0 }
0x1e39   :  { %v6660_v20 = vpop.f32.mrb[176].mxu1 }
0x1e3a   :  { %v9758_v24 = vpop.f32.mrb[177].mxu1  ;;  %v6724_v63 = vsel %vm896_vm3, %v6660_v20, -inf }
0x1e3b   :  { %6725 = vmax.xlane.f32.xlu0 %v6724_v63  ;;  %v6663_v26 = vpop.f32.mrb[178].mxu1  ;;  %v6700_v28 = vpop.f32.mrb[184].mxu0 }
0x1e3c   :  { %v9759_v29 = vpop.f32.mrb[179].mxu1  ;;  %v9764_v25 = vpop.f32.mrb[185].mxu0  ;;  %v6727_v4 = vsel %vm896_vm3, %v6700_v28, -inf  ;;  %v8979_v26 = vpack.c.bf16 %v11830_v22, %v11830_v22 }
0x1e3d   :  { %6728 = vmax.xlane.f32.xlu1 %v6727_v4  ;;  %v6703_v30 = vpop.f32.mrb[186].mxu0 }
0x1e3e   :  { %v9765_v5 = vpop.f32.mrb[187].mxu0 }
0x1eb0   :  { %v6708_v32 = vpop.xlane.xlu0 %6707 }
0x1eb1   :  { %v6730_v11 = vsub.f32 %v6420_v53, %v6708_v32  ;;  %v8980_v32 = vpack.c.bf16 %v11842_v7, %v11842_v7 }
0x1eb2   :  { %v6711_v33 = vpop.xlane.xlu1 %6710 }
0x1eb3   :  { %v6738_v35 = vmul.f32 1.442695, %v6730_v11  ;;  %v6731_v27 = vsub.f32 %v6460_v36, %v6711_v33 }
0x1eb5   :  { %10321 = vpow2.f32 %v6738_v35  ;;  %v6740_v31 = vmul.f32 1.442695, %v6731_v27  ;;  %v8981_v35 = vpack.c.bf16 %v11846_v37, %v11846_v37 }
0x1eb7   :  { %10323 = vpow2.f32 %v6740_v31  ;;  %v7036_v7 = vsel %vm996_vm2, %v8981_v35, 0 }
0x1eb8   :  { %v6714_v16 = vpop.xlane.xlu0 %6713 }
0x1eb9   :  { %v6732_v40 = vsub.f32 %v6500_v61, %v6714_v16  ;;  %v6990_v16 = vsel %vm996_vm2, %v8980_v32, 0 }
0x1eba   :  { %v6717_v23 = vpop.xlane.xlu1 %6716 }
0x1ebb   :  { %v6742_v42 = vmul.f32 1.442695, %v6732_v40  ;;  %v6733_v18 = vsub.f32 %v6540_v47, %v6717_v23 }
0x1ebd   :  { %10325 = vpow2.f32 %v6742_v42  ;;  %v6744_v21 = vmul.f32 1.442695, %v6733_v18  ;;  %v8982_v18 = vpack.c.bf16 %v11844_v34, %v11844_v34 }
0x1ebf   :  { %v10322_v48 = vpop.eup %10321  ;;  %10327 = vpow2.f32 %v6744_v21 }
0x1ec0   :  { %v6720_v49 = vpop.xlane.xlu0 %6719  ;;  %v6754_v52 = vsel %vm896_vm3, %v10322_v48, 0.0 }
0x1ec1   :  { %v10324_v41 = vpop.eup %10323  ;;  %v6734_v53 = vsub.f32 %v6580_v50, %v6720_v49  ;;  %6755 = vadd.xlane.f32.xlu0 %v6754_v52  ;;  %v8983_v49 = vpack.c.bf16 %v11848_v39, %v11848_v39 }
0x1ec2   :  { %v6723_v54 = vpop.xlane.xlu1 %6722  ;;  %v6757_v45 = vsel %vm896_vm3, %v10324_v41, 0.0 }
0x1ec3   :  { %v6746_v36 = vmul.f32 1.442695, %v6734_v53  ;;  %v6735_v55 = vsub.f32 %v6620_v14, %v6723_v54  ;;  %6758 = vadd.xlane.f32.xlu1 %v6757_v45  ;;  %v10139_v53 = vld [vmem:[%s12197_s2 + $0x340] sm:$0xff]   ;;  %v7082_v54 = vsel %vm996_vm2, %v8982_v18, 0  ;;  %v7128_v39 = vsel %vm996_vm2, %v8983_v49, 0 }
0x1ec4   :  { %v10148_v45 = vld [vmem:[%s12197_s2 + $0x3c0] sm:$0xff]  }
0x1ec5   :  { %10329 = vpow2.f32 %v6746_v36  ;;  %v6748_v57 = vmul.f32 1.442695, %v6735_v55 }
0x1ec7   :  { %v10326_v38 = vpop.eup %10325  ;;  %10331 = vpow2.f32 %v6748_v57 }
0x1ec8   :  { %v6726_v58 = vpop.xlane.xlu0 %6725  ;;  %v6760_v60 = vsel %vm896_vm3, %v10326_v38, 0.0 }
0x1ec9   :  { %v10328_v61 = vpop.eup %10327  ;;  %v6736_v62 = vsub.f32 %v6660_v20, %v6726_v58  ;;  %6761 = vadd.xlane.f32.xlu0 %v6760_v60  ;;  %v8978_v20 = vpack.c.bf16 %v11826_v6, %v11826_v6  ;;  %v6944_v6 = vsel %vm996_vm2, %v8979_v26, 0  ;;  %v10164_v26 = vld [vmem:[%s12197_s2 + $0x3a0] sm:$0xff]  }
0x1eca   :  { %v6729_v43 = vpop.xlane.xlu1 %6728  ;;  %v6763_v0 = vsel %vm896_vm3, %v10328_v61, 0.0 }
0x1ecb   :  { %v6750_v47 = vmul.f32 1.442695, %v6736_v62  ;;  %v6737_v44 = vsub.f32 %v6700_v28, %v6729_v43  ;;  %6764 = vadd.xlane.f32.xlu1 %v6763_v0  ;;  %v6898_v25 = vsel %vm996_vm2, %v8978_v20, 0  ;;  %v10150_v62 = vld [vmem:[%s12197_s2 + $0x380] sm:$0xff]   ;;  %v10142_v0 = vld [vmem:[%s12197_s2 + $0x308] sm:$0xff]   ;;  %v10161_v20 = vld [vmem:[%s12197_s2 + $0x338] sm:$0xff]  }
0x1ecd   :  { %10333 = vpow2.f32 %v6750_v47  ;;  %v6752_v1 = vmul.f32 1.442695, %v6737_v44  ;;  %v10143_v47 = vld [vmem:[%s12197_s2 + $0x350] sm:$0xff]  }
0x1ece   :  { %v10144_v44 = vld [vmem:[%s12197_s2 + $0x310] sm:$0xff]  }
0x1ecf   :  { %v11888_v51 = vpop.eup %10329  ;;  %10335 = vpow2.f32 %v6752_v1  ;;  %v10145_v1 = vld [vmem:[%s12197_s2 + $0x358] sm:$0xff]  }
0x1ed0   :  { %v6766_v3 = vsel %vm896_vm3, %v11888_v51, 0.0 }
0x1ed1   :  { %v11892_v46 = vpop.eup %10331  ;;  %6767 = vadd.xlane.f32.xlu0 %v6766_v3  ;;  %v10147_v3 = vld [vmem:[%s12197_s2 + $0x360] sm:$0xff]  }
0x1ed2   :  { %v6769_v50 = vsel %vm896_vm3, %v11892_v46, 0.0 }
0x1ed3   :  { %6770 = vadd.xlane.f32.xlu1 %v6769_v50  ;;  %v10151_v50 = vld [vmem:[%s12197_s2 + $0x368] sm:$0xff]  }
0x1ed7   :  { %v11896_v12 = vpop.eup %10333 }
0x1ed8   :  { %v6772_v13 = vsel %vm896_vm3, %v11896_v12, 0.0 }
0x1ed9   :  { %v11900_v15 = vpop.eup %10335  ;;  %6773 = vadd.xlane.f32.xlu0 %v6772_v13  ;;  %v10153_v13 = vld [vmem:[%s12197_s2 + $0x328] sm:$0xff]  }
0x1eda   :  { %v6775_v14 = vsel %vm896_vm3, %v11900_v15, 0.0 }
0x1edb   :  { %6776 = vadd.xlane.f32.xlu1 %v6775_v14  ;;  %v10155_v14 = vld [vmem:[%s12197_s2 + $0x370] sm:$0xff]  }
0x1f4e   :  { %v6756_v17 = vpop.xlane.xlu0 %6755 }
0x1f4f   :  { %10337 = vrcp.f32 %v6756_v17  ;;  %v10156_v17 = vld [vmem:[%s12197_s2 + $0x3d0] sm:$0xff]  }
0x1f50   :  { %v6759_v2 = vpop.xlane.xlu1 %6758 }
0x1f51   :  { %10339 = vrcp.f32 %v6759_v2  ;;  %v10157_v2 = vld [vmem:[%s12197_s2 + $0x330] sm:$0xff]  }
0x1f56   :  { %v6762_v19 = vpop.xlane.xlu0 %6761 }
0x1f57   :  { %10341 = vrcp.f32 %v6762_v19  ;;  %v10158_v19 = vld [vmem:[%s12197_s2 + $0x390] sm:$0xff]  }
0x1f58   :  { %v6765_v9 = vpop.xlane.xlu1 %6764 }
0x1f59   :  { %v10338_v59 = vpop.eup %10337  ;;  %10343 = vrcp.f32 %v6765_v9  ;;  %v10159_v9 = vld [vmem:[%s12197_s2 + $0x378] sm:$0xff]  }
0x1f5a   :  { %v6786_v24 = vmul.f32 %v10338_v59, %v10322_v48  ;;  %v10160_v59 = vld [vmem:[%s12197_s2 + $0x3d8] sm:$0xff]  }
0x1f5b   :  { %v10340_v63 = vpop.eup %10339 }
0x1f5c   :  { %v6787_v28 = vmul.f32 %v10340_v63, %v10324_v41  ;;  %v6794_v29 = vpack.c.bf16 %v6786_v24, %v6786_v24  ;;  %v10162_v24 = vld [vmem:[%s12197_s2 + $0x398] sm:$0xff]   ;;  %v10163_v63 = vld [vmem:[%s12197_s2 + $0x3e0] sm:$0xff]  }
0x1f5e   :  { %9769 = vmatmul.mubr.msk.bf16.vlgmr.msra.gmra.mrb[180].mxu1 %vm896_vm3, %v6794_v29  ;;  %v6768_v4 = vpop.xlane.xlu0 %6767  ;;  %v6795_v30 = vpack.c.bf16 %v6787_v28, %v6787_v28  ;;  %v10165_v28 = vld [vmem:[%s12197_s2 + $0x3e8] sm:$0xff]  }
0x1f5f   :  { %9779 = vmatpush3.bf16.msra.mxu1 %v6898_v25  ;;  %10345 = vrcp.f32 %v6768_v4  ;;  %9780 = vmatprep.mubr.msk.bf16.mxu1 %vm10439_vm1, %v10438_v56  ;;  %v10166_v29 = vld [vmem:[%s12197_s2 + $0x3a8] sm:$0xff]   ;;  %v10167_v25 = vld [vmem:[%s12197_s2 + $0x3f0] sm:$0xff]  }
0x1f60   :  { %9775 = vmatmul.mubr.msk.bf16.vlgmr.msra.gmra.mrb[188].mxu0 %vm896_vm3, %v6795_v30  ;;  %v6771_v5 = vpop.xlane.xlu1 %6770  ;;  %9790 = vmatprep.subr.bf16.mxu1 %v10438_v56  ;;  %v10168_v4 = vld [vmem:[%s12197_s2 + $0x3b0] sm:$0xff]   ;;  %v10169_v30 = vld [vmem:[%s12197_s2 + $0x3f8] sm:$0xff]  }
0x1f61   :  { %v10342_v22 = vpop.eup %10341  ;;  %9785 = vmatpush3.bf16.msra.mxu0 %v6944_v6  ;;  %10347 = vrcp.f32 %v6771_v5  ;;  %9786 = vmatprep.mubr.msk.bf16.mxu0 %vm10439_vm1, %v10438_v56  ;;  %v10170_v6 = vld [vmem:[%s12197_s2 + $0x3b8] sm:$0xff]  }
0x1f62   :  { %v6788_v11 = vmul.f32 %v10342_v22, %v10326_v38  ;;  %9796 = vmatprep.subr.bf16.mxu0 %v10438_v56  ;;  %v10140_v38 = vld [vmem:[%s12197_s2 + $0x300] sm:$0xff]  }
0x1f63   :  { %v10344_v33 = vpop.eup %10343 }
0x1f64   :  { %v6789_v27 = vmul.f32 %v10344_v33, %v10328_v61  ;;  %v6796_v31 = vpack.c.bf16 %v6788_v11, %v6788_v11  ;;  %v10141_v61 = vld [vmem:[%s12197_s2 + $0x348] sm:$0xff]  }
0x1f66   :  { %9781 = vmatmul.mubr.msk.bf16.vlgmr.msra.gmra.mrb[184].mxu1 %vm896_vm3, %v6796_v31  ;;  %v6774_v40 = vpop.xlane.xlu0 %6773  ;;  %v6797_v23 = vpack.c.bf16 %v6789_v27, %v6789_v27 }
0x1f67   :  { %10349 = vrcp.f32 %v6774_v40  ;;  %9791 = vmatpush3.bf16.msra.mxu1 %v6990_v16  ;;  %9792 = vmatprep.mubr.msk.bf16.mxu1 %vm10439_vm1, %v10438_v56 }
0x1f68   :  { %9787 = vmatmul.mubr.msk.bf16.vlgmr.msra.gmra.mrb[192].mxu0 %vm896_vm3, %v6797_v23  ;;  %v6777_v42 = vpop.xlane.xlu1 %6776  ;;  %9802 = vmatprep.subr.bf16.mxu1 %v10438_v56 }
0x1f69   :  { %v10346_v37 = vpop.eup %10345  ;;  %9797 = vmatpush3.bf16.msra.mxu0 %v7036_v7  ;;  %10351 = vrcp.f32 %v6777_v42  ;;  %9798 = vmatprep.mubr.msk.bf16.mxu0 %vm10439_vm1, %v10438_v56 }
0x1f6a   :  { %v6790_v21 = vmul.f32 %v10346_v37, %v11888_v51  ;;  %9808 = vmatprep.subr.bf16.mxu0 %v10438_v56  ;;  %v10146_v51 = vld [vmem:[%s12197_s2 + $0x318] sm:$0xff]  }
0x1f6b   :  { %v10348_v48 = vpop.eup %10347 }
0x1f6c   :  { %v6791_v52 = vmul.f32 %v10348_v48, %v11892_v46  ;;  %v6798_v41 = vpack.c.bf16 %v6790_v21, %v6790_v21  ;;  %v10149_v46 = vld [vmem:[%s12197_s2 + $0x320] sm:$0xff]  }
0x1f6e   :  { %9793 = vmatmul.mubr.msk.bf16.vlgmr.msra.gmra.mrb[188].mxu1 %vm896_vm3, %v6798_v41  ;;  %v6799_v34 = vpack.c.bf16 %v6791_v52, %v6791_v52 }
0x1f6f   :  { %9803 = vmatpush3.bf16.msra.mxu1 %v7082_v54  ;;  %9804 = vmatprep.mubr.msk.bf16.mxu1 %vm10439_vm1, %v10438_v56 }
0x1f70   :  { %9799 = vmatmul.mubr.msk.bf16.vlgmr.msra.gmra.mrb[196].mxu0 %vm896_vm3, %v6799_v34  ;;  %9284 = vmatprep.subr.bf16.mxu1 %v10139_v53 }
0x1f71   :  { %v10350_v36 = vpop.eup %10349  ;;  %9809 = vmatpush3.bf16.msra.mxu0 %v7128_v39  ;;  %9810 = vmatprep.mubr.msk.bf16.mxu0 %vm10439_vm1, %v10438_v56 }
0x1f72   :  { %v6792_v55 = vmul.f32 %v10350_v36, %v11896_v12  ;;  %9306 = vmatprep.subr.bf16.mxu0 %v10148_v45  ;;  %v10152_v12 = vld [vmem:[%s12197_s2 + $0x3c8] sm:$0xff]  }
0x1f73   :  { %v10352_v57 = vpop.eup %10351 }
0x1f74   :  { %v6793_v58 = vmul.f32 %v10352_v57, %v11900_v15  ;;  %v6800_v60 = vpack.c.bf16 %v6792_v55, %v6792_v55  ;;  %v10154_v15 = vld [vmem:[%s12197_s2 + $0x388] sm:$0xff]  }
0x1f76   :  { %9805 = vmatmul.mubr.msk.bf16.vlgmr.msra.gmra.mrb[192].mxu1 %vm896_vm3, %v6800_v60  ;;  %v6801_v43 = vpack.c.bf16 %v6793_v58, %v6793_v58 }
0x1f77   :  { %9285 = vmatpush3.bf16.msra.mxu1 %v10140_v38 }
0x1f78   :  { %9811 = vmatmul.mubr.msk.bf16.vlgmr.msra.gmra.mrb[200].mxu0 %vm896_vm3, %v6801_v43  ;;  %9286 = vmatprep.subr.bf16.mxu1 %v10141_v61 }
0x1f79   :  { %9307 = vmatpush3.bf16.msra.mxu0 %v10150_v62 }
0x1f7a   :  { %9308 = vmatprep.subr.bf16.mxu0 %v10152_v12  ;;  %v8793_v12 = vld [vmem:[%s12200_s5 + $0x1c] ss:$0 sm:$0xff] }
0x1f7b   :  { %9287 = vmatpush3.bf16.msra.mxu1 %v10142_v0 }
0x1f7c   :  { %9288 = vmatprep.subr.bf16.mxu1 %v10143_v47 }
0x1f7d   :  { %9309 = vmatpush3.bf16.msra.mxu0 %v10154_v15 }
0x1f7e   :  { %9310 = vmatprep.subr.bf16.mxu0 %v10156_v17 }
0x1f7f   :  { %9289 = vmatpush3.bf16.msra.mxu1 %v10144_v44 }
0x1f80   :  { %9290 = vmatprep.subr.bf16.mxu1 %v10145_v1 }
0x1f81   :  { %9311 = vmatpush3.bf16.msra.mxu0 %v10158_v19 }
0x1f82   :  { %9312 = vmatprep.subr.bf16.mxu0 %v10160_v59 }
0x1f83   :  { %9291 = vmatpush3.bf16.msra.mxu1 %v10146_v51 }
0x1f84   :  { %9292 = vmatprep.subr.bf16.mxu1 %v10147_v3 }
0x1f85   :  { %9313 = vmatpush3.bf16.msra.mxu0 %v10162_v24 }
0x1f86   :  { %9314 = vmatprep.subr.bf16.mxu0 %v10163_v63 }
0x1f87   :  { %9293 = vmatpush3.bf16.msra.mxu1 %v10149_v46 }
0x1f88   :  { %9294 = vmatprep.subr.bf16.mxu1 %v10151_v50 }
0x1f89   :  { %9315 = vmatpush3.bf16.msra.mxu0 %v10164_v26 }
0x1f8a   :  { %9316 = vmatprep.subr.bf16.mxu0 %v10165_v28 }
0x1f8b   :  { %9295 = vmatpush3.bf16.msra.mxu1 %v10153_v13 }
0x1f8c   :  { %9296 = vmatprep.subr.bf16.mxu1 %v10155_v14 }
0x1f8d   :  { %9317 = vmatpush3.bf16.msra.mxu0 %v10166_v29 }
0x1f8e   :  { %9318 = vmatprep.subr.bf16.mxu0 %v10167_v25 }
0x1f8f   :  { %9297 = vmatpush3.bf16.msra.mxu1 %v10157_v2 }
0x1f90   :  { %9298 = vmatprep.subr.bf16.mxu1 %v10159_v9 }
0x1f91   :  { %9319 = vmatpush3.bf16.msra.mxu0 %v10168_v4 }
0x1f92   :  { %9320 = vmatprep.subr.bf16.mxu0 %v10169_v30 }
0x1f93   :  { %9299 = vmatpush3.bf16.msra.mxu1 %v10161_v20 }
0x1f94   :  { %9814 = vmatprep.subr.bf16.mxu1 %v10438_v56 }
0x1f95   :  { %9321 = vmatpush3.bf16.msra.mxu0 %v10170_v6 }
0x1f96   :  { %9822 = vmatprep.subr.bf16.mxu0 %v10438_v56 }
0x2031   :  { %v6842_v5 = vpop.f32.mrb[180].mxu1 }
0x2032   :  { %v9770_v22 = vpop.f32.mrb[181].mxu1 }
0x2033   :  { %v6845_v32 = vpop.f32.mrb[182].mxu1  ;;  %v6888_v11 = vpop.f32.mrb[188].mxu0 }
0x2034   :  { %v8984_v33 = vpack.c.bf16 %v6888_v11, %v6842_v5  ;;  %v9771_v35 = vpop.f32.mrb[183].mxu1  ;;  %v9776_v27 = vpop.f32.mrb[189].mxu0 }
0x2035   :  { %v6891_v31 = vpop.f32.mrb[190].mxu0  ;;  %v10172_v35 = vld [vmem:[%s12198_s3 + $0x38] sm:$0xff]  }
0x2036   :  { %v9777_v16 = vpop.f32.mrb[191].mxu0 }
0x2039   :  { %v6934_v40 = vpop.f32.mrb[184].mxu1 }
0x203a   :  { %v9782_v23 = vpop.f32.mrb[185].mxu1 }
0x203b   :  { %v6937_v7 = vpop.f32.mrb[186].mxu1  ;;  %v6980_v42 = vpop.f32.mrb[192].mxu0 }
0x203c   :  { %v8985_v37 = vpack.c.bf16 %v6980_v42, %v6934_v40  ;;  %v9783_v18 = vpop.f32.mrb[187].mxu1  ;;  %v9788_v21 = vpop.f32.mrb[193].mxu0 }
0x203d   :  { %v6983_v48 = vpop.f32.mrb[194].mxu0 }
0x203e   :  { %v9789_v49 = vpop.f32.mrb[195].mxu0  ;;  %7496 = vmatprep.mubr.bf16.mxu1 %v8985_v37  ;;  %v8828_v37 = vld [vmem:[%s12200_s5 + $0x1a] ss:$0 sm:$0xff] }
0x203f   :  { %7497 = vmatmul.mubr.bf16.vlgmr.msra.gmra.mrb[196].mxu1 %v8984_v33  ;;  %v10171_v33 = vld [vmem:[%s12198_s3 + $0x30] sm:$0xff]  }
0x2040   :  { %9818 = vmatprep.mubr.msk.bf16.mxu1 %vm10439_vm1, %v10438_v56  ;;  %9815 = vmatpush3.bf16.msra.mxu1 %v10171_v33 }
0x2041   :  { %v7026_v52 = vpop.f32.mrb[188].mxu1  ;;  %9816 = vmatprep.subr.bf16.mxu1 %v10438_v56 }
0x2042   :  { %v9794_v41 = vpop.f32.mrb[189].mxu1 }
0x2043   :  { %v7029_v53 = vpop.f32.mrb[190].mxu1  ;;  %v7072_v54 = vpop.f32.mrb[196].mxu0 }
0x2044   :  { %v8986_v34 = vpack.c.bf16 %v7072_v54, %v7026_v52  ;;  %v9795_v45 = vpop.f32.mrb[191].mxu1  ;;  %v9800_v39 = vpop.f32.mrb[197].mxu0  ;;  %9817 = vmatpush3.bf16.msra.mxu1 %v10172_v35  ;;  %v8829_v52 = vld [vmem:[%s12200_s5 + $0x1b] ss:$0 sm:$0xff] }
0x2045   :  { %v7075_v36 = vpop.f32.mrb[198].mxu0  ;;  %9842 = vmatprep.subr.bf16.mxu1 %v10438_v56  ;;  %v10173_v45 = vld [vmem:[%s12199_s4 + $0xc0] sm:$0xff]   ;;  %v10174_v39 = vld [vmem:[%s12199_s4 + $0xc8] sm:$0xff]  }
0x2046   :  { %v9801_v55 = vpop.f32.mrb[199].mxu0  ;;  %v10175_v36 = vld [vmem:[%s12199_s4 + $0xd0] sm:$0xff]  }
0x2047   :  { %v10176_v55 = vld [vmem:[%s12199_s4 + $0xd8] sm:$0xff]  }
0x2049   :  { %v7118_v57 = vpop.f32.mrb[192].mxu1 }
0x204a   :  { %v9806_v38 = vpop.f32.mrb[193].mxu1 }
0x204b   :  { %v7121_v58 = vpop.f32.mrb[194].mxu1  ;;  %v7164_v60 = vpop.f32.mrb[200].mxu0  ;;  %v10178_v38 = vld [vmem:[%s12199_s4 + $0xe8] sm:$0xff]  }
0x204c   :  { %v8987_v61 = vpack.c.bf16 %v7164_v60, %v7118_v57  ;;  %v9807_v62 = vpop.f32.mrb[195].mxu1  ;;  %v9812_v43 = vpop.f32.mrb[201].mxu0  ;;  %v10177_v57 = vld [vmem:[%s12199_s4 + $0xe0] sm:$0xff]   ;;  %v10179_v58 = vld [vmem:[%s12199_s4 + $0xf0] sm:$0xff]   ;;  %v10180_v60 = vld [vmem:[%s12199_s4 + $0xf8] sm:$0xff]  }
0x204d   :  { %v7167_v0 = vpop.f32.mrb[202].mxu0 }
0x204e   :  { %v9813_v47 = vpop.f32.mrb[203].mxu0  ;;  %7537 = vmatprep.mubr.bf16.mxu0 %v8987_v61  ;;  %v8835_v61 = vld [vmem:[%s12200_s5 + $0x1e] ss:$0 sm:$0xff] }
0x204f   :  { %7538 = vmatmul.mubr.bf16.vlgmr.msra.gmra.mrb[204].mxu0 %v8986_v34 }
0x2050   :  { %9838 = vmatprep.mubr.msk.bf16.mxu0 %vm10439_vm1, %v10438_v56  ;;  %9823 = vmatpush3.bf16.msra.mxu0 %v10173_v45 }
0x2051   :  { %9824 = vmatprep.subr.bf16.mxu0 %v10438_v56 }
0x2054   :  { %9825 = vmatpush3.bf16.msra.mxu0 %v10174_v39  ;;  %v8865_v39 = vld [vmem:[%s12203_s8] ss:$0 sm:$0xff] }
0x2055   :  { %9826 = vmatprep.subr.bf16.mxu0 %v10438_v56 }
0x2058   :  { %9827 = vmatpush3.bf16.msra.mxu0 %v10175_v36 }
0x2059   :  { %9828 = vmatprep.subr.bf16.mxu0 %v10438_v56 }
0x205c   :  { %9829 = vmatpush3.bf16.msra.mxu0 %v10176_v55 }
0x205d   :  { %9830 = vmatprep.subr.bf16.mxu0 %v10438_v56 }
0x2060   :  { %9831 = vmatpush3.bf16.msra.mxu0 %v10177_v57  ;;  %v8866_v57 = vld [vmem:[%s12203_s8 + $0x1] ss:$0 sm:$0xff] }
0x2061   :  { %9832 = vmatprep.subr.bf16.mxu0 %v10438_v56 }
0x2064   :  { %9833 = vmatpush3.bf16.msra.mxu0 %v10178_v38 }
0x2065   :  { %9834 = vmatprep.subr.bf16.mxu0 %v10438_v56 }
0x2068   :  { %9835 = vmatpush3.bf16.msra.mxu0 %v10179_v58 }
0x2069   :  { %9836 = vmatprep.subr.bf16.mxu0 %v10438_v56 }
0x206c   :  { %9837 = vmatpush3.bf16.msra.mxu0 %v10180_v60 }
0x2112   :  { %v9300_v44 = vpop.f32.mrb[196].mxu1 }
0x2113   :  { %v9301_v1 = vpop.f32.mrb[197].mxu1 }
0x2114   :  { %v9302_v51 = vadd.f32 %v9301_v1, %v9300_v44  ;;  %v9303_v3 = vpop.f32.mrb[198].mxu1 }
0x2115   :  { %v9304_v46 = vpop.f32.mrb[199].mxu1 }
0x2116   :  { %v9305_v50 = vadd.f32 %v9304_v46, %v9303_v3  ;;  %v7499_v14 = vadd.f32 %v9302_v51, %v8793_v12 }
0x2118   :  { %v7502_v9 = vadd.f32 %v9305_v50, %v8793_v12 }
0x2122   :  { %v9322_v13 = vpop.f32.mrb[204].mxu0 }
0x2123   :  { %v9323_v15 = vpop.f32.mrb[205].mxu0 }
0x2124   :  { %v9324_v17 = vadd.f32 %v9323_v15, %v9322_v13  ;;  %v9325_v2 = vpop.f32.mrb[206].mxu0 }
0x2125   :  { %v9326_v19 = vpop.f32.mrb[207].mxu0 }
0x2126   :  { %v7540_v59 = vadd.f32 %v9324_v17, %v7499_v14  ;;  %v9327_v20 = vadd.f32 %v9326_v19, %v9325_v2 }
0x2128   :  { %v12056_v24 = vadd.f32 %v7540_v59, %v11717_v10  ;;  %v7543_v63 = vadd.f32 %v9327_v20, %v7502_v9 }
0x212a   :  { %v12059_v26 = vadd.f32 %v7543_v63, %v11720_v8  ;;  %v7550_v28 = vsel %vm42_vm0, %v12056_v24, 0.0 }
0x212b   :  { %7551 = vadd.xlane.f32.xlu0 %v7550_v28 }
0x212c   :  { %v7553_v29 = vsel %vm42_vm0, %v12059_v26, 0.0 }
0x212d   :  { %7554 = vadd.xlane.f32.xlu1 %v7553_v29 }
0x21b8   :  { %v7552_v25 = vpop.xlane.xlu0 %7551 }
0x21b9   :  { %v7556_v4 = vmul.f32 0.03125, %v7552_v25 }
0x21ba   :  { %v7555_v30 = vpop.xlane.xlu1 %7554 }
0x21bb   :  { %v7558_v6 = vsub.f32 %v12056_v24, %v7556_v4  ;;  %v7557_v5 = vmul.f32 0.03125, %v7555_v30  ;;  %v8856_v30 = vld [vmem:[%s12200_s5 + $0x1d] ss:$0 sm:$0xff] }
0x21bd   :  { %v7559_v10 = vsub.f32 %v12059_v26, %v7557_v5  ;;  %v7560_v22 = vmul.f32 %v7558_v6, %v7558_v6 }
0x21bf   :  { %v7562_v8 = vsel %vm42_vm0, %v7560_v22, 0.0  ;;  %v7561_v32 = vmul.f32 %v7559_v10, %v7559_v10 }
0x21c0   :  { %7563 = vadd.xlane.f32.xlu0 %v7562_v8 }
0x21c1   :  { %v7565_v11 = vsel %vm42_vm0, %v7561_v32, 0.0 }
0x21c2   :  { %7566 = vadd.xlane.f32.xlu1 %v7565_v11 }
0x224d   :  { %v7564_v27 = vpop.xlane.xlu0 %7563 }
0x224e   :  { %v7568_v31 = vmul.f32 0.03125, %v7564_v27 }
0x224f   :  { %v7567_v16 = vpop.xlane.xlu1 %7566 }
0x2250   :  { %v7570_v40 = vadd.f32 1e-05, %v7568_v31  ;;  %v7569_v23 = vmul.f32 0.03125, %v7567_v16 }
0x2252   :  { %10353 = vrsqrt.f32 %v7570_v40  ;;  %v7571_v7 = vadd.f32 1e-05, %v7569_v23 }
0x2254   :  { %10355 = vrsqrt.f32 %v7571_v7 }
0x225c   :  { %v10354_v42 = vpop.eup %10353 }
0x225d   :  { %v7574_v18 = vmul.f32 %v10354_v42, %v7558_v6 }
0x225e   :  { %v10356_v21 = vpop.eup %10355 }
0x225f   :  { %v7580_v48 = vmul.f32 %v8828_v37, %v7574_v18  ;;  %v7575_v49 = vmul.f32 %v10356_v21, %v7559_v10 }
0x2261   :  { %v7581_v41 = vmul.f32 %v8828_v37, %v7575_v49  ;;  %v7586_v53 = vadd.f32 %v8829_v52, %v7580_v48  ;;  %v10182_v48 = vld [vmem:[%s12201_s6 + $0x8] sm:$0xff]  }
0x2263   :  { %v7587_v54 = vadd.f32 %v8829_v52, %v7581_v41 }
0x2265   :  { %v7588_v34 = vpack.c.bf16 %v7587_v54, %v7586_v53 }
0x2267   :  { %9819 = vmatmul.mubr.msk.bf16.vlgmr.msra.gmra.mrb[200].mxu1 %vm42_vm0, %v7588_v34 }
0x2268   :  { %9846 = vmatprep.mubr.msk.bf16.mxu1 %vm10439_vm1, %v10438_v56 }
0x233a   :  { %v7648_v62 = vpop.f32.mrb[200].mxu1 }
0x233b   :  { %v7649_v43 = vadd.f32 %v8835_v61, %v7648_v62  ;;  %v9820_v0 = vpop.f32.mrb[201].mxu1 }
0x233c   :  { %v7651_v47 = vpop.f32.mrb[202].mxu1 }
0x233d   :  { %v7655_v44 = vmul.f32 %v7649_v43, %v7649_v43  ;;  %v7652_v1 = vadd.f32 %v8835_v61, %v7651_v47  ;;  %v9821_v51 = vpop.f32.mrb[203].mxu1  ;;  %v10183_v47 = vld [vmem:[%s12202_s7] sm:$0xff]  }
0x233f   :  { %v7657_v3 = vmul.f32 %v7655_v44, %v7649_v43  ;;  %v7656_v46 = vmul.f32 %v7652_v1, %v7652_v1 }
0x2341   :  { %v7659_v50 = vmul.f32 0.044715, %v7657_v3  ;;  %v7658_v12 = vmul.f32 %v7656_v46, %v7652_v1 }
0x2343   :  { %v7661_v13 = vadd.f32 %v7659_v50, %v7649_v43  ;;  %v7660_v15 = vmul.f32 0.044715, %v7658_v12  ;;  %v10184_v12 = vld [vmem:[%s12202_s7 + $0x8] sm:$0xff]   ;;  %s10440_s7 = smov [#allocation2]  }
0x2344   :  { %s8014_s15 = sshll.u32 %s10440_s7, 4  ;;  %s8015_s15 = int_to_ptr.vmem [resolvable:$true] %s8014_s15 }
0x2345   :  { %v7663_v14 = vmul.f32 0.7978846, %v7661_v13  ;;  %v7662_v17 = vadd.f32 %v7660_v15, %v7652_v1  ;;  %s10367_s16 = scalar_lea.vmem %s8015_s15, 256  ;;  %p10372_p1 = scmp.lt.s32.totalorder %s8015_s15, %s8015_s15 }
0x2346   :  { %p10368_p0 = scmp.ne.s32.totalorder %s8015_s15, %s10367_s16  ;;  %p10373_p2 = scmp.lt.s32.totalorder %s10367_s16, %s10367_s16 }
0x2347   :  { %10357 = vtanh.f32 %v7663_v14  ;;  %v7664_v2 = vmul.f32 0.7978846, %v7662_v17 }
0x2348   :  { %p10374_p3 = por %p10373_p2, %p10372_p1 }
0x2349   :  { %10359 = vtanh.f32 %v7664_v2 }
0x234a   :  { %p10375_p4 = pnand %p10374_p3, %p10368_p0 }
0x2351   :  { %v10358_v19 = vpop.eup %10357 }
0x2352   :  { %v7667_v9 = vadd.f32 1.0, %v10358_v19 }
0x2353   :  { %v10360_v59 = vpop.eup %10359 }
0x2354   :  { %v7669_v20 = vmul.f32 0.5, %v7667_v9  ;;  %v7668_v63 = vadd.f32 1.0, %v10360_v59 }
0x2356   :  { %v7670_v28 = vmul.f32 0.5, %v7668_v63  ;;  %v7671_v29 = vmul.f32 %v7669_v20, %v7649_v43 }
0x2358   :  { %v7672_v25 = vmul.f32 %v7670_v28, %v7652_v1 }
0x235a   :  { %v7673_v4 = vpack.c.bf16 %v7672_v25, %v7671_v29 }
0x235c   :  { %9839 = vmatmul.mubr.bf16.vlgmr.msra.gmra.mrb[208].mxu0 %v7673_v4 }
0x242f   :  { %v7778_v6 = vpop.f32.mrb[208].mxu0 }
0x2430   :  { %v7779_v5 = vadd.f32 %v8856_v30, %v7778_v6  ;;  %v9840_v10 = vpop.f32.mrb[209].mxu0 }
0x2431   :  { %v7781_v22 = vpop.f32.mrb[210].mxu0 }
0x2432   :  { %v7782_v8 = vadd.f32 %v8856_v30, %v7781_v22  ;;  %v9841_v32 = vpop.f32.mrb[211].mxu0  ;;  %v7785_v11 = vadd.f32 %v7779_v5, %v12056_v24 }
0x2434   :  { %v7789_v33 = vsel %vm42_vm0, %v7785_v11, 0.0  ;;  %v7786_v35 = vadd.f32 %v7782_v8, %v12059_v26  ;;  %v10181_v26 = vld [vmem:[%s12201_s6] sm:$0xff]  }
0x2435   :  { %7790 = vadd.xlane.f32.xlu0 %v7789_v33  ;;  %9843 = vmatpush3.bf16.msra.mxu1 %v10181_v26 }
0x2436   :  { %v7792_v27 = vsel %vm42_vm0, %v7786_v35, 0.0  ;;  %9844 = vmatprep.subr.bf16.mxu1 %v10438_v56 }
0x2437   :  { %7793 = vadd.xlane.f32.xlu1 %v7792_v27 }
0x2439   :  { %9845 = vmatpush3.bf16.msra.mxu1 %v10182_v48 }
0x243a   :  { %9850 = vmatprep.subr.bf16.mxu1 %v10438_v56 }
0x24c2   :  { %v7791_v31 = vpop.xlane.xlu0 %7790 }
0x24c3   :  { %v7795_v16 = vmul.f32 0.03125, %v7791_v31 }
0x24c4   :  { %v7794_v40 = vpop.xlane.xlu1 %7793 }
0x24c5   :  { %v7797_v23 = vsub.f32 %v7785_v11, %v7795_v16  ;;  %v7796_v7 = vmul.f32 0.03125, %v7794_v40 }
0x24c7   :  { %v7798_v42 = vsub.f32 %v7786_v35, %v7796_v7  ;;  %v7799_v37 = vmul.f32 %v7797_v23, %v7797_v23 }
0x24c9   :  { %v7801_v18 = vsel %vm42_vm0, %v7799_v37, 0.0  ;;  %v7800_v21 = vmul.f32 %v7798_v42, %v7798_v42 }
0x24ca   :  { %7802 = vadd.xlane.f32.xlu0 %v7801_v18 }
0x24cb   :  { %v7804_v24 = vsel %vm42_vm0, %v7800_v21, 0.0 }
0x24cc   :  { %7805 = vadd.xlane.f32.xlu1 %v7804_v24 }
0x2557   :  { %v7803_v49 = vpop.xlane.xlu0 %7802 }
0x2558   :  { %v7807_v52 = vmul.f32 0.03125, %v7803_v49 }
0x2559   :  { %v7806_v41 = vpop.xlane.xlu1 %7805 }
0x255a   :  { %v7809_v53 = vadd.f32 1e-05, %v7807_v52  ;;  %v7808_v54 = vmul.f32 0.03125, %v7806_v41 }
0x255c   :  { %10361 = vrsqrt.f32 %v7809_v53  ;;  %v7810_v34 = vadd.f32 1e-05, %v7808_v54 }
0x255e   :  { %10363 = vrsqrt.f32 %v7810_v34 }
0x2566   :  { %v10362_v45 = vpop.eup %10361 }
0x2567   :  { %v7813_v36 = vmul.f32 %v10362_v45, %v7797_v23 }
0x2568   :  { %v10364_v55 = vpop.eup %10363 }
0x2569   :  { %v7819_v38 = vmul.f32 %v8865_v39, %v7813_v36  ;;  %v7814_v58 = vmul.f32 %v10364_v55, %v7798_v42 }
0x256b   :  { %v7820_v60 = vmul.f32 %v8865_v39, %v7814_v58  ;;  %v7825_v61 = vadd.f32 %v8866_v57, %v7819_v38 }
0x256d   :  { %v7826_v62 = vadd.f32 %v8866_v57, %v7820_v60  ;;  %v7827_v43 = vsel %vm42_vm0, %v7825_v61, 0.0 }
0x256e   :  { %v7894_v0 = vrot.slane %v7827_v43, 4  ;;  %7829 = vst [vmem:[#allocation2] sm:$0xff] %v7827_v43 }
0x256f   :  { %v7828_v44 = vsel %vm42_vm0, %v7826_v62, 0.0  ;;  %v7831_v1 = vpack.c.bf16 %v7826_v62, %v7825_v61 }
0x2570   :  { %v7895_v51 = vadd.f32 %v7894_v0, %v7827_v43  ;;  %v7900_v3 = vrot.slane %v7828_v44, 4  ;;  %7830 = vst [vmem:[#allocation2 + $0x8] sm:$0xff] %v7828_v44 }
0x2571   :  { %9847 = vmatmul.mubr.msk.bf16.vlgmr.msra.gmra.mrb[204].mxu1 %vm42_vm0, %v7831_v1 }
0x2572   :  { %v7896_v46 = vrot.slane %v7895_v51, 2  ;;  %v7901_v50 = vadd.f32 %v7900_v3, %v7828_v44  ;;  %9851 = vmatpush3.bf16.msra.mxu1 %v10183_v47  ;;  %9854 = vmatprep.mubr.msk.bf16.mxu1 %vm10439_vm1, %v10438_v56 }
0x2573   :  { %9852 = vmatprep.subr.bf16.mxu1 %v10438_v56 }
0x2574   :  { %v7902_v13 = vrot.slane %v7901_v50, 2  ;;  %v7897_v15 = vadd.f32 %v7896_v46, %v7895_v51 }
0x2576   :  { %9853 = vmatpush3.bf16.msra.mxu1 %v10184_v12  ;;  %v7898_v14 = vrot.slane %v7897_v15, 1  ;;  %v7903_v17 = vadd.f32 %v7902_v13, %v7901_v50 }
0x2578   :  { %v7899_v2 = vadd.f32 %v7898_v14, %v7897_v15  ;;  %v7904_v19 = vrot.slane %v7903_v17, 1 }
0x257a   :  { %v7905_v9 = vadd.f32 %v7904_v19, %v7903_v17  ;;  %v7907_v59 = vmul.f32 0.125, %v7899_v2 }
0x257c   :  { %v7908_v20 = vmul.f32 0.125, %v7905_v9  ;;  %v7909_v63 = vpack.c.bf16 %v7907_v59, %v7907_v59 }
0x257e   :  { %v7910_v28 = vpack.c.bf16 %v7908_v20, %v7908_v20  ;;  %v7922_v29 = vunpack.c.l.b16 %v7909_v63 }
0x2580   :  { %v7923_v25 = vunpack.c.l.b16 %v7910_v28 }
0x2582   :  { %v7925_v4 = vsel %vm7924_vm4, %v7923_v25, %v7922_v29 }
0x2583   :  { %v7926_v30 = vpack.c.b16 %v7925_v4, %v7925_v4 }
0x2585   :  { %9855 = vmatmul.mubr.msk.bf16.vlgmr.msra.gmra.mrb[208].mxu1 %vm42_vm0, %v7926_v30 }
0x2586   :  { %10378 = shalt.err (!%p10375_p4)
}
0x2587   :  { %s10379_s19 = scalar_lea.hbm %s12204_s9, 256 }
0x2588   :  { %p10380_p5 = scmp.ne.s32.totalorder %s12204_s9, %s10379_s19  ;;  %p10383_p6 = scmp.lt.u32.totalorder %s10379_s19, %s12204_s9 }
0x258a   :  { %p10385_p7 = pnand %p10383_p6, %p10380_p5 }
0x258c   :  { %10388 = shalt.err (!%p10385_p7)
}
0x258d   :  { %s10441_s22 = smov 128   ;;  %s10442_s23 = smov 8  }
0x258e   :  { %8020 = dma.vmem_to_hbm [thread:$0]  %s8015_s15, 256, %s12204_s9, [#allocation3], %s10441_s22, %s10441_s22, %s10442_s23  }
0x258f   :  { %s10443_s25 = smov [#allocation4]  }
0x2590   :  { %s8026_s5 = sshll.u32 %s10443_s25, 4  ;;  %s8027_s5 = int_to_ptr.vmem [resolvable:$true] %s8026_s5 }
0x2591   :  { %s10389_s26 = scalar_lea.vmem %s8027_s5, 256  ;;  %p10394_p9 = scmp.lt.s32.totalorder %s8027_s5, %s8027_s5 }
0x2592   :  { %p10390_p8 = scmp.ne.s32.totalorder %s8027_s5, %s10389_s26  ;;  %p10395_p10 = scmp.lt.s32.totalorder %s10389_s26, %s10389_s26 }
0x2594   :  { %p10396_p11 = por %p10395_p10, %p10394_p9 }
0x2596   :  { %p10397_p12 = pnand %p10396_p11, %p10390_p8 }
0x2644   :  { %v7885_v56 = vpop.f32.mrb[204].mxu1 }
0x2645   :  { %7892 = vst [vmem:[#allocation4] sm:$0xff] %v7885_v56  ;;  %v9848_v6 = vpop.f32.mrb[205].mxu1 }
0x2646   :  { %v7888_v5 = vpop.f32.mrb[206].mxu1 }
0x2647   :  { %7893 = vst [vmem:[#allocation4 + $0x8] sm:$0xff] %v7888_v5  ;;  %v9849_v10 = vpop.f32.mrb[207].mxu1 }
0x2648   :  { %10400 = shalt.err (!%p10397_p12)
}
0x2649   :  { %s10401_s9 = scalar_lea.hbm %s12205_s10, 256 }
0x264a   :  { %p10402_p13 = scmp.ne.s32.totalorder %s12205_s10, %s10401_s9  ;;  %p10405_p0 = scmp.lt.u32.totalorder %s10401_s9, %s12205_s10 }
0x264c   :  { %p10407_p1 = pnand %p10405_p0, %p10402_p13 }
0x264e   :  { %10410 = shalt.err (!%p10407_p1)
}
0x264f   :  { %8032 = dma.vmem_to_hbm [thread:$0]  %s8027_s5, 256, %s12205_s10, [#allocation5], %s10441_s22, %s10441_s22, %s10442_s23   ;;  %v10444_v22 = vmov 1966171168   ;;  %v7986_v32 = vlaneseq }
0x2650   :  { %v7984_v8 = vunpack.c.l.s4 %v10444_v22  ;;  %v8870_v35 = vld [vmem:[%s12203_s8 + $0x2] ss:$0 sm:$0xff]  ;;  %s10445_s7 = smov [#allocation6]  }
0x2651   :  { %v7987_v33 = vshrl.u32 %v7986_v32, 7  ;;  %s8038_s15 = sshll.u32 %s10445_s7, 4  ;;  %s8039_s15 = int_to_ptr.vmem [resolvable:$true] %s8038_s15 }
0x2652   :  { %v7985_v11 = vunpack.c.0.s8 %v7984_v8  ;;  %s10411_s10 = scalar_lea.vmem %s8039_s15, 32  ;;  %p10416_p3 = scmp.lt.s32.totalorder %s8039_s15, %s8039_s15 }
0x2653   :  { %p10412_p2 = scmp.ne.s32.totalorder %s8039_s15, %s10411_s10  ;;  %p10417_p4 = scmp.lt.s32.totalorder %s10411_s10, %s10411_s10 }
0x2654   :  { %v7988_v27 = vsub.s32 %v7985_v11, %v7987_v33 }
0x2655   :  { %p10418_p5 = por %p10417_p4, %p10416_p3 }
0x2657   :  { %p10419_p6 = pnand %p10418_p5, %p10412_p2 }
0x2658   :  { %v7976_v31 = vpop.f32.mrb[208].mxu1 }
0x2659   :  { %v7977_v16 = vadd.f32 %v8870_v35, %v7976_v31  ;;  %v9856_v40 = vpop.f32.mrb[209].mxu1 }
0x265a   :  { %v7979_v23 = vpop.f32.mrb[210].mxu1 }
0x265b   :  { %v7989_v7 = vrot.slane %v7977_v16, %v7988_v27  ;;  %v9857_v42 = vpop.f32.mrb[211].mxu1 }
0x265d   :  { %v7990_v37 = vcombine.high %v7989_v7, %v7989_v7  ;;  %8874 = vst.sshfl [vmem:[#allocation6] sm:$0x1 pattern:$0x73625140] %v7989_v7 }
0x265f   :  { %8875 = vst.sshfl [vmem:[#allocation6 + $0x1] sm:$0x1 pattern:$0x73625140] %v7990_v37 }
0x2660   :  { %10422 = shalt.err (!%p10419_p6)
}
0x2661   :  { %s10423_s17 = scalar_lea.hbm %s12206_s11, 32 }
0x2662   :  { %p10424_p7 = scmp.ne.s32.totalorder %s12206_s11, %s10423_s17  ;;  %p10427_p8 = scmp.lt.u32.totalorder %s10423_s17, %s12206_s11 }
0x2664   :  { %p10429_p9 = pnand %p10427_p8, %p10424_p7 }
0x2666   :  { %10432 = shalt.err (!%p10429_p9)
}
0x2667   :  { %s10446_s2 = smov 16   ;;  %s10447_s21 = smov 1  }
0x2668   :  { %8044 = dma.vmem_to_hbm [thread:$0]  %s8039_s15, 32, %s12206_s11, [#allocation5], %s10446_s2, %s10446_s2, %s10447_s21  }
0x2669   :  { %10433 = dma.done.wait [#allocation3], 256  }
0x266a   :  { %10434 = vsyncadd [#allocation3], 4294967040 }
0x266b   :  { %10435 = dma.done.wait [#allocation5], 288  }
0x266c   :  { %10436 = vsyncadd [#allocation5], 4294967008 }
0x266d   :  { %8054 = vsyncpa [#allocation3], 1 }
0x266e   :  { %8055 = vsyncpa [#allocation5], 1 }

</bundles_post_ra>
